<compile_context>
chip_gen: v7x
topology: tpu7x:2x2x1
jax: 0.10.0
libtpu: 0.0.40
codegen_flags: <defaults>
</compile_context>

<pallas_src>
import functools

import jax
import jax.numpy as jnp
from jax import lax
from jax.experimental import pallas as pl
from jax.experimental.pallas import tpu as pltpu


# ---------------------------------------------------------------------------
# exact (erf-based) GELU, matching torch.nn.GELU(approximate='none').
# erf built from exp/mul/add (Numerical-Recipes erfc rational approx,
# |err| < 1.5e-7), guaranteed to lower on the TPU VPU/EUP.
# ---------------------------------------------------------------------------
def _erf(x):
    a = jnp.abs(x)
    t = 1.0 / (1.0 + 0.5 * a)
    tau = t * jnp.exp(
        -a * a - 1.26551223
        + t * (1.00002368
        + t * (0.37409196
        + t * (0.09678418
        + t * (-0.18628806
        + t * (0.27886807
        + t * (-1.13520398
        + t * (1.48851587
        + t * (-0.82215223
        + t * 0.17087277)))))))))
    return jnp.where(x >= 0.0, 1.0 - tau, tau - 1.0)


def _gelu(x):
    return 0.5 * x * (1.0 + _erf(x * 0.7071067811865476))


# ---------------------------------------------------------------------------
# Fused kernel: feature MLP -> hoisted x-projection -> unrolled LSTM -> classifier
#
# Inputs (all f32; hidden padded to `hp` lanes, gate blocks padded to hp each,
# batch padded to `batch` (multiple of 8) sublanes):
#   x_ref   : (S*batch, i_dim)   time-major rows (row t*batch + b)
#   w1,b1   : (i_dim, hp), (1, hp)
#   w2,b2   : (hp, hp),    (1, hp)
#   wih,bih : (hp, 4*hp),  (1, 4*hp)   combined LSTM bias (b_ih+b_hh) folded in
#   whh     : (hp, 4*hp)
#   wc,bc   : (hp, op),    (1, op)
#   o_ref   : (batch, op)
# PyTorch LSTM gate order: i, f, g, o.
# ---------------------------------------------------------------------------
def _fused_kernel(x_ref, w1_ref, b1_ref, w2_ref, b2_ref,
                  wih_ref, bih_ref, whh_ref, wc_ref, bc_ref,
                  o_ref, *, batch, seq, hp):
    # ---- feature MLP over all S*batch rows in one shot (Flatten/Linear/GELU x2)
    h = jnp.dot(x_ref[...], w1_ref[...],
                preferred_element_type=jnp.float32) + b1_ref[...]
    h = _gelu(h)
    h = jnp.dot(h, w2_ref[...],
                preferred_element_type=jnp.float32) + b2_ref[...]
    feats = _gelu(h)                                          # (S*batch, hp)

    # ---- hoisted LSTM input projection for ALL timesteps (M = S*batch matmul)
    xproj = jnp.dot(feats, wih_ref[...],
                    preferred_element_type=jnp.float32) + bih_ref[...]  # (S*batch, 4hp)

    # ---- LSTM recurrence: fully unrolled, only h @ W_hh on the serial path ----
    whh = whh_ref[...]
    h_t = jnp.zeros((batch, hp), jnp.float32)
    c_t = jnp.zeros((batch, hp), jnp.float32)
    for t in range(seq):                         # static, small -> full unroll
        # batch is a multiple of 8 -> this slice is (8,128)-tile aligned.
        gates = (xproj[t * batch:(t + 1) * batch, :]
                 + jnp.dot(h_t, whh, preferred_element_type=jnp.float32))
        i_g = jax.nn.sigmoid(gates[:, 0 * hp:1 * hp])   # 128-lane aligned slices
        f_g = jax.nn.sigmoid(gates[:, 1 * hp:2 * hp])
        g_g = jnp.tanh(gates[:, 2 * hp:3 * hp])
        o_g = jax.nn.sigmoid(gates[:, 3 * hp:4 * hp])
        c_t = f_g * c_t + i_g * g_g
        h_t = o_g * jnp.tanh(c_t)

    # ---- classifier on final hidden state (== lstm_out[:, -1]) ----
    o_ref[...] = (jnp.dot(h_t, wc_ref[...],
                          preferred_element_type=jnp.float32) + bc_ref[...])


def fused_forward(x2d_tm, w1, b1, w2, b2, wih, bih, whh, wc, bc, *, batch, seq):
    hp = w1.shape[1]
    op = wc.shape[1]
    kernel = functools.partial(_fused_kernel, batch=batch, seq=seq, hp=hp)

    def full(arr):  # whole-array resident block (all operands are 2D)
        return pl.BlockSpec(arr.shape, lambda i: (0, 0))

    return pl.pallas_call(
        kernel,
        out_shape=jax.ShapeDtypeStruct((batch, op), jnp.float32),
        grid_spec=pltpu.PrefetchScalarGridSpec(
            num_scalar_prefetch=0,
            grid=(1,),
            in_specs=[full(x2d_tm), full(w1), full(b1), full(w2), full(b2),
                      full(wih), full(bih), full(whh), full(wc), full(bc)],
            out_specs=pl.BlockSpec((batch, op), lambda i: (0, 0)),
        ),
        compiler_params=pltpu.CompilerParams(
            dimension_semantics=("arbitrary",)),
    )(x2d_tm, w1, b1, w2, b2, wih, bih, whh, wc, bc)


# ---------------------------------------------------------------------------
# Wrapper: zero-pad hidden/gate/output widths to full 128-lane groups, pad the
# batch to a multiple of 8 sublanes, and flatten the input time-major.
# Padded hidden lanes stay exactly 0 through the whole network and padded
# batch rows are row-independent, so results match the unpadded math.
# ---------------------------------------------------------------------------
def _round_up(n, m):
    return ((n + m - 1) // m) * m


def _pad2d(a, rows, cols):
    return jnp.zeros((rows, cols), a.dtype).at[:a.shape[0], :a.shape[1]].set(a)


def _pad_gate_mat(w, hd, hp):            # (hd, 4*hd) -> (hp, 4*hp), per-gate blocks
    w4 = w.reshape(hd, 4, hd)
    return jnp.zeros((hp, 4, hp), w.dtype).at[:hd, :, :hd].set(w4).reshape(hp, 4 * hp)


def _pad_gate_vec(b, hd, hp):            # (4*hd,) -> (4*hp,)
    b4 = b.reshape(4, hd)
    return jnp.zeros((4, hp), b.dtype).at[:, :hd].set(b4).reshape(4 * hp)


def recurrent_net_forward(x, params):
    b, s = x.shape[:2]
    hd = params["w1"].shape[1]
    i_dim = params["w1"].shape[0]
    o_dim = params["w_cls"].shape[1]
    hp = _round_up(hd, 128)
    op = _round_up(o_dim, 128)
    bp = _round_up(b, 8)                  # sublane-aligned per-step row slices

    # time-major flattened rows with padded batch: row = t*bp + b
    x_tm = x.transpose(1, 0, 2, 3, 4).reshape(s, b, -1).astype(jnp.float32)
    x2d = (jnp.zeros((s, bp, i_dim), jnp.float32)
           .at[:, :b, :].set(x_tm).reshape(s * bp, i_dim))

    w1 = _pad2d(params["w1"], i_dim, hp)
    b1 = _pad2d(params["b1"], 1, hp)
    w2 = _pad2d(params["w2"], hp, hp)
    b2 = _pad2d(params["b2"], 1, hp)
    wih = _pad_gate_mat(params["w_ih"], hd, hp)
    bih = _pad_gate_vec(params["b_lstm"].reshape(-1), hd, hp)[None, :]
    whh = _pad_gate_mat(params["w_hh"], hd, hp)
    wc = _pad2d(params["w_cls"], hp, op)
    bc = _pad2d(params["b_cls"], 1, op)

    out = fused_forward(x2d, w1, b1, w2, b2, wih, bih, whh, wc, bc,
                        batch=bp, seq=s)
    return out[:b, :o_dim]


# ---------------------------------------------------------------------------
# Parameters (deterministic, PyTorch-style uniform init), stored in the
# (in_dim, out_dim) layout the kernel consumes (transposed vs torch).
# ---------------------------------------------------------------------------
def init_params(key, i_dim, h_dim, o_dim):
    ks = jax.random.split(key, 10)

    def u(k, shape, fan_in):
        bound = 1.0 / float(fan_in) ** 0.5
        return jax.random.uniform(k, shape, jnp.float32, -bound, bound)

    w1_t = u(ks[0], (h_dim, i_dim), i_dim); b1 = u(ks[1], (h_dim,), i_dim)
    w2_t = u(ks[2], (h_dim, h_dim), h_dim); b2 = u(ks[3], (h_dim,), h_dim)
    wih_t = u(ks[4], (4 * h_dim, h_dim), h_dim); bih = u(ks[5], (4 * h_dim,), h_dim)
    whh_t = u(ks[6], (4 * h_dim, h_dim), h_dim); bhh = u(ks[7], (4 * h_dim,), h_dim)
    wc_t = u(ks[8], (o_dim, h_dim), h_dim); bc = u(ks[9], (o_dim,), h_dim)
    return dict(
        w1=w1_t.T, b1=b1[None, :],
        w2=w2_t.T, b2=b2[None, :],
        w_ih=wih_t.T, w_hh=whh_t.T, b_lstm=(bih + bhh)[None, :],
        w_cls=wc_t.T, b_cls=bc[None, :],
    )


# ---------------------------------------------------------------------------
# Pure-JAX reference (unpadded) for a sanity check.
# ---------------------------------------------------------------------------
def ref_forward(x, params):
    hprec = lax.Precision.HIGHEST
    b, s = x.shape[:2]
    hd = params["w1"].shape[1]
    x2d = x.reshape(b * s, -1).astype(jnp.float32)
    h = jax.nn.gelu(jnp.dot(x2d, params["w1"], precision=hprec) + params["b1"],
                    approximate=False)
    h = jax.nn.gelu(jnp.dot(h, params["w2"], precision=hprec) + params["b2"],
                    approximate=False)
    seq = h.reshape(b, s, hd).transpose(1, 0, 2)

    def step(carry, xt):
        hprev, cprev = carry
        gates = (jnp.dot(xt, params["w_ih"], precision=hprec)
                 + jnp.dot(hprev, params["w_hh"], precision=hprec)
                 + params["b_lstm"])
        i = jax.nn.sigmoid(gates[:, 0 * hd:1 * hd])
        f = jax.nn.sigmoid(gates[:, 1 * hd:2 * hd])
        g = jnp.tanh(gates[:, 2 * hd:3 * hd])
        o = jax.nn.sigmoid(gates[:, 3 * hd:4 * hd])
        c = f * cprev + i * g
        return (o * jnp.tanh(c), c), None

    init = (jnp.zeros((b, hd), jnp.float32), jnp.zeros((b, hd), jnp.float32))
    (h_t, _), _ = lax.scan(step, init, seq)
    return jnp.dot(h_t, params["w_cls"], precision=hprec) + params["b_cls"]


if __name__ == "__main__":
    B, S, C, Hh, Ww = 2, 8, 4, 8, 8            # input frames: (B, S, C, H, W)
    i_dim = C * Hh * Ww                         # 256
    h_dim = 32
    o_dim = 8

    key = jax.random.PRNGKey(0)
    kx, kp = jax.random.split(key)
    x = jax.random.normal(kx, (B, S, C, Hh, Ww), jnp.float32)
    params = init_params(kp, i_dim, h_dim, o_dim)

    out = jax.block_until_ready(recurrent_net_forward(x, params))
    ref = jax.block_until_ready(ref_forward(x, params))

    assert out.shape == (B, o_dim), out.shape
    assert bool(jnp.all(jnp.isfinite(out)))
    max_err = float(jnp.max(jnp.abs(out - ref)))
    assert max_err < 5e-2, f"mismatch vs reference: {max_err}"
    print("KERNEL_OK")
</pallas_src>

<mosaic_0001>
module attributes {stable_mosaic.version = 11 : i64} {
  func.func @_fused_kernel(%arg0: i32, %arg1: memref<64x256xf32, #tpu.memory_space<vmem>>, %arg2: memref<256x128xf32, #tpu.memory_space<vmem>>, %arg3: memref<1x128xf32, #tpu.memory_space<vmem>>, %arg4: memref<128x128xf32, #tpu.memory_space<vmem>>, %arg5: memref<1x128xf32, #tpu.memory_space<vmem>>, %arg6: memref<128x512xf32, #tpu.memory_space<vmem>>, %arg7: memref<1x512xf32, #tpu.memory_space<vmem>>, %arg8: memref<128x512xf32, #tpu.memory_space<vmem>>, %arg9: memref<128x128xf32, #tpu.memory_space<vmem>>, %arg10: memref<1x128xf32, #tpu.memory_space<vmem>>, %arg11: memref<8x128xf32, #tpu.memory_space<vmem>>) attributes {dimension_semantics = [#tpu.dimension_semantics<arbitrary>], iteration_bounds = array<i64: 1>, scalar_prefetch = 0 : i64, scratch_operands = 0 : i64, tpu.core_type = #tpu.core_type<tc>, window_params = [{pipeline_mode = #tpu.pipeline_mode<synchronous>, transform_indices = @transform_0, window_bounds = array<i64: 64, 256>}, {pipeline_mode = #tpu.pipeline_mode<synchronous>, transform_indices = @transform_1, window_bounds = array<i64: 256, 128>}, {pipeline_mode = #tpu.pipeline_mode<synchronous>, transform_indices = @transform_2, window_bounds = array<i64: 1, 128>}, {pipeline_mode = #tpu.pipeline_mode<synchronous>, transform_indices = @transform_3, window_bounds = array<i64: 128, 128>}, {pipeline_mode = #tpu.pipeline_mode<synchronous>, transform_indices = @transform_4, window_bounds = array<i64: 1, 128>}, {pipeline_mode = #tpu.pipeline_mode<synchronous>, transform_indices = @transform_5, window_bounds = array<i64: 128, 512>}, {pipeline_mode = #tpu.pipeline_mode<synchronous>, transform_indices = @transform_6, window_bounds = array<i64: 1, 512>}, {pipeline_mode = #tpu.pipeline_mode<synchronous>, transform_indices = @transform_7, window_bounds = array<i64: 128, 512>}, {pipeline_mode = #tpu.pipeline_mode<synchronous>, transform_indices = @transform_8, window_bounds = array<i64: 128, 128>}, {pipeline_mode = #tpu.pipeline_mode<synchronous>, transform_indices = @transform_9, window_bounds = array<i64: 1, 128>}, {pipeline_mode = #tpu.pipeline_mode<synchronous>, transform_indices = @transform_10, window_bounds = array<i64: 8, 128>}]} {
    %c0 = arith.constant 0 : index
    %c0_0 = arith.constant 0 : index
    %0 = vector.load %arg1[%c0, %c0_0] : memref<64x256xf32, #tpu.memory_space<vmem>>, vector<64x256xf32>
    %c0_1 = arith.constant 0 : index
    %c0_2 = arith.constant 0 : index
    %1 = vector.load %arg2[%c0_1, %c0_2] : memref<256x128xf32, #tpu.memory_space<vmem>>, vector<256x128xf32>
    %cst = arith.constant dense<0.000000e+00> : vector<64x128xf32>
    %2 = tpu.matmul %0, %1, %cst {dimension_numbers = #tpu.dot_dimension_numbers<[1], [0], [0], [1], [0, 0, 1, 1], [], []>} : vector<64x256xf32>, vector<256x128xf32>, vector<64x128xf32> -> vector<64x128xf32>
    %c0_3 = arith.constant 0 : index
    %c0_4 = arith.constant 0 : index
    %3 = vector.load %arg3[%c0_3, %c0_4] : memref<1x128xf32, #tpu.memory_space<vmem>>, vector<1x128xf32>
    %4 = vector.broadcast %3 : vector<1x128xf32> to vector<64x128xf32>
    %5 = arith.addf %2, %4 : vector<64x128xf32>
    %cst_5 = arith.constant 5.000000e-01 : f32
    %6 = vector.broadcast %cst_5 : f32 to vector<64x128xf32>
    %7 = arith.mulf %6, %5 : vector<64x128xf32>
    %cst_6 = arith.constant 0.707106769 : f32
    %8 = vector.broadcast %cst_6 : f32 to vector<64x128xf32>
    %9 = arith.mulf %5, %8 : vector<64x128xf32>
    %10 = math.absf %9 : vector<64x128xf32>
    %cst_7 = arith.constant 5.000000e-01 : f32
    %11 = vector.broadcast %cst_7 : f32 to vector<64x128xf32>
    %12 = arith.mulf %11, %10 : vector<64x128xf32>
    %cst_8 = arith.constant 1.000000e+00 : f32
    %13 = vector.broadcast %cst_8 : f32 to vector<64x128xf32>
    %14 = arith.addf %13, %12 : vector<64x128xf32>
    %cst_9 = arith.constant 1.000000e+00 : f32
    %15 = vector.broadcast %cst_9 : f32 to vector<64x128xf32>
    %16 = arith.divf %15, %14 : vector<64x128xf32>
    %cst_10 = arith.constant 0.000000e+00 : f32
    %17 = vector.broadcast %cst_10 : f32 to vector<64x128xf32>
    %18 = arith.subf %17, %10 : vector<64x128xf32>
    %19 = arith.mulf %18, %10 : vector<64x128xf32>
    %cst_11 = arith.constant 1.26551223 : f32
    %20 = vector.broadcast %cst_11 : f32 to vector<64x128xf32>
    %21 = arith.subf %19, %20 : vector<64x128xf32>
    %cst_12 = arith.constant 0.170872763 : f32
    %22 = vector.broadcast %cst_12 : f32 to vector<64x128xf32>
    %23 = arith.mulf %16, %22 : vector<64x128xf32>
    %cst_13 = arith.constant -0.822152256 : f32
    %24 = vector.broadcast %cst_13 : f32 to vector<64x128xf32>
    %25 = arith.addf %24, %23 : vector<64x128xf32>
    %26 = arith.mulf %16, %25 : vector<64x128xf32>
    %cst_14 = arith.constant 1.48851585 : f32
    %27 = vector.broadcast %cst_14 : f32 to vector<64x128xf32>
    %28 = arith.addf %27, %26 : vector<64x128xf32>
    %29 = arith.mulf %16, %28 : vector<64x128xf32>
    %cst_15 = arith.constant -1.13520396 : f32
    %30 = vector.broadcast %cst_15 : f32 to vector<64x128xf32>
    %31 = arith.addf %30, %29 : vector<64x128xf32>
    %32 = arith.mulf %16, %31 : vector<64x128xf32>
    %cst_16 = arith.constant 0.278868079 : f32
    %33 = vector.broadcast %cst_16 : f32 to vector<64x128xf32>
    %34 = arith.addf %33, %32 : vector<64x128xf32>
    %35 = arith.mulf %16, %34 : vector<64x128xf32>
    %cst_17 = arith.constant -0.186288059 : f32
    %36 = vector.broadcast %cst_17 : f32 to vector<64x128xf32>
    %37 = arith.addf %36, %35 : vector<64x128xf32>
    %38 = arith.mulf %16, %37 : vector<64x128xf32>
    %cst_18 = arith.constant 0.0967841818 : f32
    %39 = vector.broadcast %cst_18 : f32 to vector<64x128xf32>
    %40 = arith.addf %39, %38 : vector<64x128xf32>
    %41 = arith.mulf %16, %40 : vector<64x128xf32>
    %cst_19 = arith.constant 0.374091953 : f32
    %42 = vector.broadcast %cst_19 : f32 to vector<64x128xf32>
    %43 = arith.addf %42, %41 : vector<64x128xf32>
    %44 = arith.mulf %16, %43 : vector<64x128xf32>
    %cst_20 = arith.constant 1.00002372 : f32
    %45 = vector.broadcast %cst_20 : f32 to vector<64x128xf32>
    %46 = arith.addf %45, %44 : vector<64x128xf32>
    %47 = arith.mulf %16, %46 : vector<64x128xf32>
    %48 = arith.addf %21, %47 : vector<64x128xf32>
    %49 = math.exp %48 : vector<64x128xf32>
    %50 = arith.mulf %16, %49 : vector<64x128xf32>
    %cst_21 = arith.constant 0.000000e+00 : f32
    %51 = vector.broadcast %cst_21 : f32 to vector<64x128xf32>
    %52 = arith.cmpf oge, %9, %51 : vector<64x128xf32>
    %cst_22 = arith.constant 1.000000e+00 : f32
    %53 = vector.broadcast %cst_22 : f32 to vector<64x128xf32>
    %54 = arith.subf %53, %50 : vector<64x128xf32>
    %cst_23 = arith.constant 1.000000e+00 : f32
    %55 = vector.broadcast %cst_23 : f32 to vector<64x128xf32>
    %56 = arith.subf %50, %55 : vector<64x128xf32>
    %57 = arith.select %52, %54, %56 : vector<64x128xi1>, vector<64x128xf32>
    %cst_24 = arith.constant 1.000000e+00 : f32
    %58 = vector.broadcast %cst_24 : f32 to vector<64x128xf32>
    %59 = arith.addf %58, %57 : vector<64x128xf32>
    %60 = arith.mulf %7, %59 : vector<64x128xf32>
    %c0_25 = arith.constant 0 : index
    %c0_26 = arith.constant 0 : index
    %61 = vector.load %arg4[%c0_25, %c0_26] : memref<128x128xf32, #tpu.memory_space<vmem>>, vector<128x128xf32>
    %cst_27 = arith.constant dense<0.000000e+00> : vector<64x128xf32>
    %62 = tpu.matmul %60, %61, %cst_27 {dimension_numbers = #tpu.dot_dimension_numbers<[1], [0], [0], [1], [0, 0, 1, 1], [], []>} : vector<64x128xf32>, vector<128x128xf32>, vector<64x128xf32> -> vector<64x128xf32>
    %c0_28 = arith.constant 0 : index
    %c0_29 = arith.constant 0 : index
    %63 = vector.load %arg5[%c0_28, %c0_29] : memref<1x128xf32, #tpu.memory_space<vmem>>, vector<1x128xf32>
    %64 = vector.broadcast %63 : vector<1x128xf32> to vector<64x128xf32>
    %65 = arith.addf %62, %64 : vector<64x128xf32>
    %cst_30 = arith.constant 5.000000e-01 : f32
    %66 = vector.broadcast %cst_30 : f32 to vector<64x128xf32>
    %67 = arith.mulf %66, %65 : vector<64x128xf32>
    %cst_31 = arith.constant 0.707106769 : f32
    %68 = vector.broadcast %cst_31 : f32 to vector<64x128xf32>
    %69 = arith.mulf %65, %68 : vector<64x128xf32>
    %70 = math.absf %69 : vector<64x128xf32>
    %cst_32 = arith.constant 5.000000e-01 : f32
    %71 = vector.broadcast %cst_32 : f32 to vector<64x128xf32>
    %72 = arith.mulf %71, %70 : vector<64x128xf32>
    %cst_33 = arith.constant 1.000000e+00 : f32
    %73 = vector.broadcast %cst_33 : f32 to vector<64x128xf32>
    %74 = arith.addf %73, %72 : vector<64x128xf32>
    %cst_34 = arith.constant 1.000000e+00 : f32
    %75 = vector.broadcast %cst_34 : f32 to vector<64x128xf32>
    %76 = arith.divf %75, %74 : vector<64x128xf32>
    %cst_35 = arith.constant 0.000000e+00 : f32
    %77 = vector.broadcast %cst_35 : f32 to vector<64x128xf32>
    %78 = arith.subf %77, %70 : vector<64x128xf32>
    %79 = arith.mulf %78, %70 : vector<64x128xf32>
    %cst_36 = arith.constant 1.26551223 : f32
    %80 = vector.broadcast %cst_36 : f32 to vector<64x128xf32>
    %81 = arith.subf %79, %80 : vector<64x128xf32>
    %cst_37 = arith.constant 0.170872763 : f32
    %82 = vector.broadcast %cst_37 : f32 to vector<64x128xf32>
    %83 = arith.mulf %76, %82 : vector<64x128xf32>
    %cst_38 = arith.constant -0.822152256 : f32
    %84 = vector.broadcast %cst_38 : f32 to vector<64x128xf32>
    %85 = arith.addf %84, %83 : vector<64x128xf32>
    %86 = arith.mulf %76, %85 : vector<64x128xf32>
    %cst_39 = arith.constant 1.48851585 : f32
    %87 = vector.broadcast %cst_39 : f32 to vector<64x128xf32>
    %88 = arith.addf %87, %86 : vector<64x128xf32>
    %89 = arith.mulf %76, %88 : vector<64x128xf32>
    %cst_40 = arith.constant -1.13520396 : f32
    %90 = vector.broadcast %cst_40 : f32 to vector<64x128xf32>
    %91 = arith.addf %90, %89 : vector<64x128xf32>
    %92 = arith.mulf %76, %91 : vector<64x128xf32>
    %cst_41 = arith.constant 0.278868079 : f32
    %93 = vector.broadcast %cst_41 : f32 to vector<64x128xf32>
    %94 = arith.addf %93, %92 : vector<64x128xf32>
    %95 = arith.mulf %76, %94 : vector<64x128xf32>
    %cst_42 = arith.constant -0.186288059 : f32
    %96 = vector.broadcast %cst_42 : f32 to vector<64x128xf32>
    %97 = arith.addf %96, %95 : vector<64x128xf32>
    %98 = arith.mulf %76, %97 : vector<64x128xf32>
    %cst_43 = arith.constant 0.0967841818 : f32
    %99 = vector.broadcast %cst_43 : f32 to vector<64x128xf32>
    %100 = arith.addf %99, %98 : vector<64x128xf32>
    %101 = arith.mulf %76, %100 : vector<64x128xf32>
    %cst_44 = arith.constant 0.374091953 : f32
    %102 = vector.broadcast %cst_44 : f32 to vector<64x128xf32>
    %103 = arith.addf %102, %101 : vector<64x128xf32>
    %104 = arith.mulf %76, %103 : vector<64x128xf32>
    %cst_45 = arith.constant 1.00002372 : f32
    %105 = vector.broadcast %cst_45 : f32 to vector<64x128xf32>
    %106 = arith.addf %105, %104 : vector<64x128xf32>
    %107 = arith.mulf %76, %106 : vector<64x128xf32>
    %108 = arith.addf %81, %107 : vector<64x128xf32>
    %109 = math.exp %108 : vector<64x128xf32>
    %110 = arith.mulf %76, %109 : vector<64x128xf32>
    %cst_46 = arith.constant 0.000000e+00 : f32
    %111 = vector.broadcast %cst_46 : f32 to vector<64x128xf32>
    %112 = arith.cmpf oge, %69, %111 : vector<64x128xf32>
    %cst_47 = arith.constant 1.000000e+00 : f32
    %113 = vector.broadcast %cst_47 : f32 to vector<64x128xf32>
    %114 = arith.subf %113, %110 : vector<64x128xf32>
    %cst_48 = arith.constant 1.000000e+00 : f32
    %115 = vector.broadcast %cst_48 : f32 to vector<64x128xf32>
    %116 = arith.subf %110, %115 : vector<64x128xf32>
    %117 = arith.select %112, %114, %116 : vector<64x128xi1>, vector<64x128xf32>
    %cst_49 = arith.constant 1.000000e+00 : f32
    %118 = vector.broadcast %cst_49 : f32 to vector<64x128xf32>
    %119 = arith.addf %118, %117 : vector<64x128xf32>
    %120 = arith.mulf %67, %119 : vector<64x128xf32>
    %c0_50 = arith.constant 0 : index
    %c0_51 = arith.constant 0 : index
    %121 = vector.load %arg6[%c0_50, %c0_51] : memref<128x512xf32, #tpu.memory_space<vmem>>, vector<128x512xf32>
    %cst_52 = arith.constant dense<0.000000e+00> : vector<64x512xf32>
    %122 = tpu.matmul %120, %121, %cst_52 {dimension_numbers = #tpu.dot_dimension_numbers<[1], [0], [0], [1], [0, 0, 1, 1], [], []>} : vector<64x128xf32>, vector<128x512xf32>, vector<64x512xf32> -> vector<64x512xf32>
    %c0_53 = arith.constant 0 : index
    %c0_54 = arith.constant 0 : index
    %123 = vector.load %arg7[%c0_53, %c0_54] : memref<1x512xf32, #tpu.memory_space<vmem>>, vector<1x512xf32>
    %124 = vector.broadcast %123 : vector<1x512xf32> to vector<64x512xf32>
    %125 = arith.addf %122, %124 : vector<64x512xf32>
    %c0_55 = arith.constant 0 : index
    %c0_56 = arith.constant 0 : index
    %126 = vector.load %arg8[%c0_55, %c0_56] : memref<128x512xf32, #tpu.memory_space<vmem>>, vector<128x512xf32>
    %cst_57 = arith.constant 0.000000e+00 : f32
    %127 = vector.broadcast %cst_57 : f32 to vector<8x128xf32>
    %cst_58 = arith.constant 0.000000e+00 : f32
    %128 = vector.broadcast %cst_58 : f32 to vector<8x128xf32>
    %129 = vector.extract_strided_slice %125 {offsets = [0, 0], sizes = [8, 512], strides = [1, 1]} : vector<64x512xf32> to vector<8x512xf32>
    %cst_59 = arith.constant dense<0.000000e+00> : vector<8x512xf32>
    %130 = tpu.matmul %127, %126, %cst_59 {dimension_numbers = #tpu.dot_dimension_numbers<[1], [0], [0], [1], [0, 0, 1, 1], [], []>} : vector<8x128xf32>, vector<128x512xf32>, vector<8x512xf32> -> vector<8x512xf32>
    %131 = arith.addf %129, %130 : vector<8x512xf32>
    %132 = vector.extract_strided_slice %131 {offsets = [0, 0], sizes = [8, 128], strides = [1, 1]} : vector<8x512xf32> to vector<8x128xf32>
    %133 = arith.negf %132 : vector<8x128xf32>
    %134 = math.exp %133 : vector<8x128xf32>
    %cst_60 = arith.constant 1.000000e+00 : f32
    %135 = vector.broadcast %cst_60 : f32 to vector<8x128xf32>
    %136 = arith.addf %135, %134 : vector<8x128xf32>
    %137 = arith.divf %135, %136 : vector<8x128xf32>
    %138 = vector.extract_strided_slice %131 {offsets = [0, 128], sizes = [8, 128], strides = [1, 1]} : vector<8x512xf32> to vector<8x128xf32>
    %139 = arith.negf %138 : vector<8x128xf32>
    %140 = math.exp %139 : vector<8x128xf32>
    %cst_61 = arith.constant 1.000000e+00 : f32
    %141 = vector.broadcast %cst_61 : f32 to vector<8x128xf32>
    %142 = arith.addf %141, %140 : vector<8x128xf32>
    %143 = arith.divf %141, %142 : vector<8x128xf32>
    %144 = vector.extract_strided_slice %131 {offsets = [0, 256], sizes = [8, 128], strides = [1, 1]} : vector<8x512xf32> to vector<8x128xf32>
    %145 = math.tanh %144 : vector<8x128xf32>
    %146 = vector.extract_strided_slice %131 {offsets = [0, 384], sizes = [8, 128], strides = [1, 1]} : vector<8x512xf32> to vector<8x128xf32>
    %147 = arith.negf %146 : vector<8x128xf32>
    %148 = math.exp %147 : vector<8x128xf32>
    %cst_62 = arith.constant 1.000000e+00 : f32
    %149 = vector.broadcast %cst_62 : f32 to vector<8x128xf32>
    %150 = arith.addf %149, %148 : vector<8x128xf32>
    %151 = arith.divf %149, %150 : vector<8x128xf32>
    %152 = arith.mulf %143, %128 : vector<8x128xf32>
    %153 = arith.mulf %137, %145 : vector<8x128xf32>
    %154 = arith.addf %152, %153 : vector<8x128xf32>
    %155 = math.tanh %154 : vector<8x128xf32>
    %156 = arith.mulf %151, %155 : vector<8x128xf32>
    %157 = vector.extract_strided_slice %125 {offsets = [8, 0], sizes = [8, 512], strides = [1, 1]} : vector<64x512xf32> to vector<8x512xf32>
    %cst_63 = arith.constant dense<0.000000e+00> : vector<8x512xf32>
    %158 = tpu.matmul %156, %126, %cst_63 {dimension_numbers = #tpu.dot_dimension_numbers<[1], [0], [0], [1], [0, 0, 1, 1], [], []>} : vector<8x128xf32>, vector<128x512xf32>, vector<8x512xf32> -> vector<8x512xf32>
    %159 = arith.addf %157, %158 : vector<8x512xf32>
    %160 = vector.extract_strided_slice %159 {offsets = [0, 0], sizes = [8, 128], strides = [1, 1]} : vector<8x512xf32> to vector<8x128xf32>
    %161 = arith.negf %160 : vector<8x128xf32>
    %162 = math.exp %161 : vector<8x128xf32>
    %cst_64 = arith.constant 1.000000e+00 : f32
    %163 = vector.broadcast %cst_64 : f32 to vector<8x128xf32>
    %164 = arith.addf %163, %162 : vector<8x128xf32>
    %165 = arith.divf %163, %164 : vector<8x128xf32>
    %166 = vector.extract_strided_slice %159 {offsets = [0, 128], sizes = [8, 128], strides = [1, 1]} : vector<8x512xf32> to vector<8x128xf32>
    %167 = arith.negf %166 : vector<8x128xf32>
    %168 = math.exp %167 : vector<8x128xf32>
    %cst_65 = arith.constant 1.000000e+00 : f32
    %169 = vector.broadcast %cst_65 : f32 to vector<8x128xf32>
    %170 = arith.addf %169, %168 : vector<8x128xf32>
    %171 = arith.divf %169, %170 : vector<8x128xf32>
    %172 = vector.extract_strided_slice %159 {offsets = [0, 256], sizes = [8, 128], strides = [1, 1]} : vector<8x512xf32> to vector<8x128xf32>
    %173 = math.tanh %172 : vector<8x128xf32>
    %174 = vector.extract_strided_slice %159 {offsets = [0, 384], sizes = [8, 128], strides = [1, 1]} : vector<8x512xf32> to vector<8x128xf32>
    %175 = arith.negf %174 : vector<8x128xf32>
    %176 = math.exp %175 : vector<8x128xf32>
    %cst_66 = arith.constant 1.000000e+00 : f32
    %177 = vector.broadcast %cst_66 : f32 to vector<8x128xf32>
    %178 = arith.addf %177, %176 : vector<8x128xf32>
    %179 = arith.divf %177, %178 : vector<8x128xf32>
    %180 = arith.mulf %171, %154 : vector<8x128xf32>
    %181 = arith.mulf %165, %173 : vector<8x128xf32>
    %182 = arith.addf %180, %181 : vector<8x128xf32>
    %183 = math.tanh %182 : vector<8x128xf32>
    %184 = arith.mulf %179, %183 : vector<8x128xf32>
    %185 = vector.extract_strided_slice %125 {offsets = [16, 0], sizes = [8, 512], strides = [1, 1]} : vector<64x512xf32> to vector<8x512xf32>
    %cst_67 = arith.constant dense<0.000000e+00> : vector<8x512xf32>
    %186 = tpu.matmul %184, %126, %cst_67 {dimension_numbers = #tpu.dot_dimension_numbers<[1], [0], [0], [1], [0, 0, 1, 1], [], []>} : vector<8x128xf32>, vector<128x512xf32>, vector<8x512xf32> -> vector<8x512xf32>
    %187 = arith.addf %185, %186 : vector<8x512xf32>
    %188 = vector.extract_strided_slice %187 {offsets = [0, 0], sizes = [8, 128], strides = [1, 1]} : vector<8x512xf32> to vector<8x128xf32>
    %189 = arith.negf %188 : vector<8x128xf32>
    %190 = math.exp %189 : vector<8x128xf32>
    %cst_68 = arith.constant 1.000000e+00 : f32
    %191 = vector.broadcast %cst_68 : f32 to vector<8x128xf32>
    %192 = arith.addf %191, %190 : vector<8x128xf32>
    %193 = arith.divf %191, %192 : vector<8x128xf32>
    %194 = vector.extract_strided_slice %187 {offsets = [0, 128], sizes = [8, 128], strides = [1, 1]} : vector<8x512xf32> to vector<8x128xf32>
    %195 = arith.negf %194 : vector<8x128xf32>
    %196 = math.exp %195 : vector<8x128xf32>
    %cst_69 = arith.constant 1.000000e+00 : f32
    %197 = vector.broadcast %cst_69 : f32 to vector<8x128xf32>
    %198 = arith.addf %197, %196 : vector<8x128xf32>
    %199 = arith.divf %197, %198 : vector<8x128xf32>
    %200 = vector.extract_strided_slice %187 {offsets = [0, 256], sizes = [8, 128], strides = [1, 1]} : vector<8x512xf32> to vector<8x128xf32>
    %201 = math.tanh %200 : vector<8x128xf32>
    %202 = vector.extract_strided_slice %187 {offsets = [0, 384], sizes = [8, 128], strides = [1, 1]} : vector<8x512xf32> to vector<8x128xf32>
    %203 = arith.negf %202 : vector<8x128xf32>
    %204 = math.exp %203 : vector<8x128xf32>
    %cst_70 = arith.constant 1.000000e+00 : f32
    %205 = vector.broadcast %cst_70 : f32 to vector<8x128xf32>
    %206 = arith.addf %205, %204 : vector<8x128xf32>
    %207 = arith.divf %205, %206 : vector<8x128xf32>
    %208 = arith.mulf %199, %182 : vector<8x128xf32>
    %209 = arith.mulf %193, %201 : vector<8x128xf32>
    %210 = arith.addf %208, %209 : vector<8x128xf32>
    %211 = math.tanh %210 : vector<8x128xf32>
    %212 = arith.mulf %207, %211 : vector<8x128xf32>
    %213 = vector.extract_strided_slice %125 {offsets = [24, 0], sizes = [8, 512], strides = [1, 1]} : vector<64x512xf32> to vector<8x512xf32>
    %cst_71 = arith.constant dense<0.000000e+00> : vector<8x512xf32>
    %214 = tpu.matmul %212, %126, %cst_71 {dimension_numbers = #tpu.dot_dimension_numbers<[1], [0], [0], [1], [0, 0, 1, 1], [], []>} : vector<8x128xf32>, vector<128x512xf32>, vector<8x512xf32> -> vector<8x512xf32>
    %215 = arith.addf %213, %214 : vector<8x512xf32>
    %216 = vector.extract_strided_slice %215 {offsets = [0, 0], sizes = [8, 128], strides = [1, 1]} : vector<8x512xf32> to vector<8x128xf32>
    %217 = arith.negf %216 : vector<8x128xf32>
    %218 = math.exp %217 : vector<8x128xf32>
    %cst_72 = arith.constant 1.000000e+00 : f32
    %219 = vector.broadcast %cst_72 : f32 to vector<8x128xf32>
    %220 = arith.addf %219, %218 : vector<8x128xf32>
    %221 = arith.divf %219, %220 : vector<8x128xf32>
    %222 = vector.extract_strided_slice %215 {offsets = [0, 128], sizes = [8, 128], strides = [1, 1]} : vector<8x512xf32> to vector<8x128xf32>
    %223 = arith.negf %222 : vector<8x128xf32>
    %224 = math.exp %223 : vector<8x128xf32>
    %cst_73 = arith.constant 1.000000e+00 : f32
    %225 = vector.broadcast %cst_73 : f32 to vector<8x128xf32>
    %226 = arith.addf %225, %224 : vector<8x128xf32>
    %227 = arith.divf %225, %226 : vector<8x128xf32>
    %228 = vector.extract_strided_slice %215 {offsets = [0, 256], sizes = [8, 128], strides = [1, 1]} : vector<8x512xf32> to vector<8x128xf32>
    %229 = math.tanh %228 : vector<8x128xf32>
    %230 = vector.extract_strided_slice %215 {offsets = [0, 384], sizes = [8, 128], strides = [1, 1]} : vector<8x512xf32> to vector<8x128xf32>
    %231 = arith.negf %230 : vector<8x128xf32>
    %232 = math.exp %231 : vector<8x128xf32>
    %cst_74 = arith.constant 1.000000e+00 : f32
    %233 = vector.broadcast %cst_74 : f32 to vector<8x128xf32>
    %234 = arith.addf %233, %232 : vector<8x128xf32>
    %235 = arith.divf %233, %234 : vector<8x128xf32>
    %236 = arith.mulf %227, %210 : vector<8x128xf32>
    %237 = arith.mulf %221, %229 : vector<8x128xf32>
    %238 = arith.addf %236, %237 : vector<8x128xf32>
    %239 = math.tanh %238 : vector<8x128xf32>
    %240 = arith.mulf %235, %239 : vector<8x128xf32>
    %241 = vector.extract_strided_slice %125 {offsets = [32, 0], sizes = [8, 512], strides = [1, 1]} : vector<64x512xf32> to vector<8x512xf32>
    %cst_75 = arith.constant dense<0.000000e+00> : vector<8x512xf32>
    %242 = tpu.matmul %240, %126, %cst_75 {dimension_numbers = #tpu.dot_dimension_numbers<[1], [0], [0], [1], [0, 0, 1, 1], [], []>} : vector<8x128xf32>, vector<128x512xf32>, vector<8x512xf32> -> vector<8x512xf32>
    %243 = arith.addf %241, %242 : vector<8x512xf32>
    %244 = vector.extract_strided_slice %243 {offsets = [0, 0], sizes = [8, 128], strides = [1, 1]} : vector<8x512xf32> to vector<8x128xf32>
    %245 = arith.negf %244 : vector<8x128xf32>
    %246 = math.exp %245 : vector<8x128xf32>
    %cst_76 = arith.constant 1.000000e+00 : f32
    %247 = vector.broadcast %cst_76 : f32 to vector<8x128xf32>
    %248 = arith.addf %247, %246 : vector<8x128xf32>
    %249 = arith.divf %247, %248 : vector<8x128xf32>
    %250 = vector.extract_strided_slice %243 {offsets = [0, 128], sizes = [8, 128], strides = [1, 1]} : vector<8x512xf32> to vector<8x128xf32>
    %251 = arith.negf %250 : vector<8x128xf32>
    %252 = math.exp %251 : vector<8x128xf32>
    %cst_77 = arith.constant 1.000000e+00 : f32
    %253 = vector.broadcast %cst_77 : f32 to vector<8x128xf32>
    %254 = arith.addf %253, %252 : vector<8x128xf32>
    %255 = arith.divf %253, %254 : vector<8x128xf32>
    %256 = vector.extract_strided_slice %243 {offsets = [0, 256], sizes = [8, 128], strides = [1, 1]} : vector<8x512xf32> to vector<8x128xf32>
    %257 = math.tanh %256 : vector<8x128xf32>
    %258 = vector.extract_strided_slice %243 {offsets = [0, 384], sizes = [8, 128], strides = [1, 1]} : vector<8x512xf32> to vector<8x128xf32>
    %259 = arith.negf %258 : vector<8x128xf32>
    %260 = math.exp %259 : vector<8x128xf32>
    %cst_78 = arith.constant 1.000000e+00 : f32
    %261 = vector.broadcast %cst_78 : f32 to vector<8x128xf32>
    %262 = arith.addf %261, %260 : vector<8x128xf32>
    %263 = arith.divf %261, %262 : vector<8x128xf32>
    %264 = arith.mulf %255, %238 : vector<8x128xf32>
    %265 = arith.mulf %249, %257 : vector<8x128xf32>
    %266 = arith.addf %264, %265 : vector<8x128xf32>
    %267 = math.tanh %266 : vector<8x128xf32>
    %268 = arith.mulf %263, %267 : vector<8x128xf32>
    %269 = vector.extract_strided_slice %125 {offsets = [40, 0], sizes = [8, 512], strides = [1, 1]} : vector<64x512xf32> to vector<8x512xf32>
    %cst_79 = arith.constant dense<0.000000e+00> : vector<8x512xf32>
    %270 = tpu.matmul %268, %126, %cst_79 {dimension_numbers = #tpu.dot_dimension_numbers<[1], [0], [0], [1], [0, 0, 1, 1], [], []>} : vector<8x128xf32>, vector<128x512xf32>, vector<8x512xf32> -> vector<8x512xf32>
    %271 = arith.addf %269, %270 : vector<8x512xf32>
    %272 = vector.extract_strided_slice %271 {offsets = [0, 0], sizes = [8, 128], strides = [1, 1]} : vector<8x512xf32> to vector<8x128xf32>
    %273 = arith.negf %272 : vector<8x128xf32>
    %274 = math.exp %273 : vector<8x128xf32>
    %cst_80 = arith.constant 1.000000e+00 : f32
    %275 = vector.broadcast %cst_80 : f32 to vector<8x128xf32>
    %276 = arith.addf %275, %274 : vector<8x128xf32>
    %277 = arith.divf %275, %276 : vector<8x128xf32>
    %278 = vector.extract_strided_slice %271 {offsets = [0, 128], sizes = [8, 128], strides = [1, 1]} : vector<8x512xf32> to vector<8x128xf32>
    %279 = arith.negf %278 : vector<8x128xf32>
    %280 = math.exp %279 : vector<8x128xf32>
    %cst_81 = arith.constant 1.000000e+00 : f32
    %281 = vector.broadcast %cst_81 : f32 to vector<8x128xf32>
    %282 = arith.addf %281, %280 : vector<8x128xf32>
    %283 = arith.divf %281, %282 : vector<8x128xf32>
    %284 = vector.extract_strided_slice %271 {offsets = [0, 256], sizes = [8, 128], strides = [1, 1]} : vector<8x512xf32> to vector<8x128xf32>
    %285 = math.tanh %284 : vector<8x128xf32>
    %286 = vector.extract_strided_slice %271 {offsets = [0, 384], sizes = [8, 128], strides = [1, 1]} : vector<8x512xf32> to vector<8x128xf32>
    %287 = arith.negf %286 : vector<8x128xf32>
    %288 = math.exp %287 : vector<8x128xf32>
    %cst_82 = arith.constant 1.000000e+00 : f32
    %289 = vector.broadcast %cst_82 : f32 to vector<8x128xf32>
    %290 = arith.addf %289, %288 : vector<8x128xf32>
    %291 = arith.divf %289, %290 : vector<8x128xf32>
    %292 = arith.mulf %283, %266 : vector<8x128xf32>
    %293 = arith.mulf %277, %285 : vector<8x128xf32>
    %294 = arith.addf %292, %293 : vector<8x128xf32>
    %295 = math.tanh %294 : vector<8x128xf32>
    %296 = arith.mulf %291, %295 : vector<8x128xf32>
    %297 = vector.extract_strided_slice %125 {offsets = [48, 0], sizes = [8, 512], strides = [1, 1]} : vector<64x512xf32> to vector<8x512xf32>
    %cst_83 = arith.constant dense<0.000000e+00> : vector<8x512xf32>
    %298 = tpu.matmul %296, %126, %cst_83 {dimension_numbers = #tpu.dot_dimension_numbers<[1], [0], [0], [1], [0, 0, 1, 1], [], []>} : vector<8x128xf32>, vector<128x512xf32>, vector<8x512xf32> -> vector<8x512xf32>
    %299 = arith.addf %297, %298 : vector<8x512xf32>
    %300 = vector.extract_strided_slice %299 {offsets = [0, 0], sizes = [8, 128], strides = [1, 1]} : vector<8x512xf32> to vector<8x128xf32>
    %301 = arith.negf %300 : vector<8x128xf32>
    %302 = math.exp %301 : vector<8x128xf32>
    %cst_84 = arith.constant 1.000000e+00 : f32
    %303 = vector.broadcast %cst_84 : f32 to vector<8x128xf32>
    %304 = arith.addf %303, %302 : vector<8x128xf32>
    %305 = arith.divf %303, %304 : vector<8x128xf32>
    %306 = vector.extract_strided_slice %299 {offsets = [0, 128], sizes = [8, 128], strides = [1, 1]} : vector<8x512xf32> to vector<8x128xf32>
    %307 = arith.negf %306 : vector<8x128xf32>
    %308 = math.exp %307 : vector<8x128xf32>
    %cst_85 = arith.constant 1.000000e+00 : f32
    %309 = vector.broadcast %cst_85 : f32 to vector<8x128xf32>
    %310 = arith.addf %309, %308 : vector<8x128xf32>
    %311 = arith.divf %309, %310 : vector<8x128xf32>
    %312 = vector.extract_strided_slice %299 {offsets = [0, 256], sizes = [8, 128], strides = [1, 1]} : vector<8x512xf32> to vector<8x128xf32>
    %313 = math.tanh %312 : vector<8x128xf32>
    %314 = vector.extract_strided_slice %299 {offsets = [0, 384], sizes = [8, 128], strides = [1, 1]} : vector<8x512xf32> to vector<8x128xf32>
    %315 = arith.negf %314 : vector<8x128xf32>
    %316 = math.exp %315 : vector<8x128xf32>
    %cst_86 = arith.constant 1.000000e+00 : f32
    %317 = vector.broadcast %cst_86 : f32 to vector<8x128xf32>
    %318 = arith.addf %317, %316 : vector<8x128xf32>
    %319 = arith.divf %317, %318 : vector<8x128xf32>
    %320 = arith.mulf %311, %294 : vector<8x128xf32>
    %321 = arith.mulf %305, %313 : vector<8x128xf32>
    %322 = arith.addf %320, %321 : vector<8x128xf32>
    %323 = math.tanh %322 : vector<8x128xf32>
    %324 = arith.mulf %319, %323 : vector<8x128xf32>
    %325 = vector.extract_strided_slice %125 {offsets = [56, 0], sizes = [8, 512], strides = [1, 1]} : vector<64x512xf32> to vector<8x512xf32>
    %cst_87 = arith.constant dense<0.000000e+00> : vector<8x512xf32>
    %326 = tpu.matmul %324, %126, %cst_87 {dimension_numbers = #tpu.dot_dimension_numbers<[1], [0], [0], [1], [0, 0, 1, 1], [], []>} : vector<8x128xf32>, vector<128x512xf32>, vector<8x512xf32> -> vector<8x512xf32>
    %327 = arith.addf %325, %326 : vector<8x512xf32>
    %328 = vector.extract_strided_slice %327 {offsets = [0, 0], sizes = [8, 128], strides = [1, 1]} : vector<8x512xf32> to vector<8x128xf32>
    %329 = arith.negf %328 : vector<8x128xf32>
    %330 = math.exp %329 : vector<8x128xf32>
    %cst_88 = arith.constant 1.000000e+00 : f32
    %331 = vector.broadcast %cst_88 : f32 to vector<8x128xf32>
    %332 = arith.addf %331, %330 : vector<8x128xf32>
    %333 = arith.divf %331, %332 : vector<8x128xf32>
    %334 = vector.extract_strided_slice %327 {offsets = [0, 128], sizes = [8, 128], strides = [1, 1]} : vector<8x512xf32> to vector<8x128xf32>
    %335 = arith.negf %334 : vector<8x128xf32>
    %336 = math.exp %335 : vector<8x128xf32>
    %cst_89 = arith.constant 1.000000e+00 : f32
    %337 = vector.broadcast %cst_89 : f32 to vector<8x128xf32>
    %338 = arith.addf %337, %336 : vector<8x128xf32>
    %339 = arith.divf %337, %338 : vector<8x128xf32>
    %340 = vector.extract_strided_slice %327 {offsets = [0, 256], sizes = [8, 128], strides = [1, 1]} : vector<8x512xf32> to vector<8x128xf32>
    %341 = math.tanh %340 : vector<8x128xf32>
    %342 = vector.extract_strided_slice %327 {offsets = [0, 384], sizes = [8, 128], strides = [1, 1]} : vector<8x512xf32> to vector<8x128xf32>
    %343 = arith.negf %342 : vector<8x128xf32>
    %344 = math.exp %343 : vector<8x128xf32>
    %cst_90 = arith.constant 1.000000e+00 : f32
    %345 = vector.broadcast %cst_90 : f32 to vector<8x128xf32>
    %346 = arith.addf %345, %344 : vector<8x128xf32>
    %347 = arith.divf %345, %346 : vector<8x128xf32>
    %348 = arith.mulf %339, %322 : vector<8x128xf32>
    %349 = arith.mulf %333, %341 : vector<8x128xf32>
    %350 = arith.addf %348, %349 : vector<8x128xf32>
    %351 = math.tanh %350 : vector<8x128xf32>
    %352 = arith.mulf %347, %351 : vector<8x128xf32>
    %c0_91 = arith.constant 0 : index
    %c0_92 = arith.constant 0 : index
    %353 = vector.load %arg9[%c0_91, %c0_92] : memref<128x128xf32, #tpu.memory_space<vmem>>, vector<128x128xf32>
    %cst_93 = arith.constant dense<0.000000e+00> : vector<8x128xf32>
    %354 = tpu.matmul %352, %353, %cst_93 {dimension_numbers = #tpu.dot_dimension_numbers<[1], [0], [0], [1], [0, 0, 1, 1], [], []>} : vector<8x128xf32>, vector<128x128xf32>, vector<8x128xf32> -> vector<8x128xf32>
    %c0_94 = arith.constant 0 : index
    %c0_95 = arith.constant 0 : index
    %355 = vector.load %arg10[%c0_94, %c0_95] : memref<1x128xf32, #tpu.memory_space<vmem>>, vector<1x128xf32>
    %356 = vector.broadcast %355 : vector<1x128xf32> to vector<8x128xf32>
    %357 = arith.addf %354, %356 : vector<8x128xf32>
    %c0_96 = arith.constant 0 : index
    %c0_97 = arith.constant 0 : index
    %358 = vector.load %arg11[%c0_96, %c0_97] : memref<8x128xf32, #tpu.memory_space<vmem>>, vector<8x128xf32>
    tpu.vector_store %arg11[%c0_96, %c0_97], %357 {strides = array<i32>} : memref<8x128xf32, #tpu.memory_space<vmem>>, vector<8x128xf32>,
    return
  }
  func.func @transform_0(%arg0: i32) -> (i32, i32) {
    %c0_i32 = arith.constant 0 : i32
    %c0_i32_0 = arith.constant 0 : i32
    %c0_i32_1 = arith.constant 0 : i32
    return %c0_i32, %c0_i32_0 : i32, i32
  }
  func.func @transform_1(%arg0: i32) -> (i32, i32) {
    %c0_i32 = arith.constant 0 : i32
    %c0_i32_0 = arith.constant 0 : i32
    %c0_i32_1 = arith.constant 0 : i32
    return %c0_i32, %c0_i32_0 : i32, i32
  }
  func.func @transform_2(%arg0: i32) -> (i32, i32) {
    %c0_i32 = arith.constant 0 : i32
    %c0_i32_0 = arith.constant 0 : i32
    %c0_i32_1 = arith.constant 0 : i32
    return %c0_i32, %c0_i32_0 : i32, i32
  }
  func.func @transform_3(%arg0: i32) -> (i32, i32) {
    %c0_i32 = arith.constant 0 : i32
    %c0_i32_0 = arith.constant 0 : i32
    %c0_i32_1 = arith.constant 0 : i32
    return %c0_i32, %c0_i32_0 : i32, i32
  }
  func.func @transform_4(%arg0: i32) -> (i32, i32) {
    %c0_i32 = arith.constant 0 : i32
    %c0_i32_0 = arith.constant 0 : i32
    %c0_i32_1 = arith.constant 0 : i32
    return %c0_i32, %c0_i32_0 : i32, i32
  }
  func.func @transform_5(%arg0: i32) -> (i32, i32) {
    %c0_i32 = arith.constant 0 : i32
    %c0_i32_0 = arith.constant 0 : i32
    %c0_i32_1 = arith.constant 0 : i32
    return %c0_i32, %c0_i32_0 : i32, i32
  }
  func.func @transform_6(%arg0: i32) -> (i32, i32) {
    %c0_i32 = arith.constant 0 : i32
    %c0_i32_0 = arith.constant 0 : i32
    %c0_i32_1 = arith.constant 0 : i32
    return %c0_i32, %c0_i32_0 : i32, i32
  }
  func.func @transform_7(%arg0: i32) -> (i32, i32) {
    %c0_i32 = arith.constant 0 : i32
    %c0_i32_0 = arith.constant 0 : i32
    %c0_i32_1 = arith.constant 0 : i32
    return %c0_i32, %c0_i32_0 : i32, i32
  }
  func.func @transform_8(%arg0: i32) -> (i32, i32) {
    %c0_i32 = arith.constant 0 : i32
    %c0_i32_0 = arith.constant 0 : i32
    %c0_i32_1 = arith.constant 0 : i32
    return %c0_i32, %c0_i32_0 : i32, i32
  }
  func.func @transform_9(%arg0: i32) -> (i32, i32) {
    %c0_i32 = arith.constant 0 : i32
    %c0_i32_0 = arith.constant 0 : i32
    %c0_i32_1 = arith.constant 0 : i32
    return %c0_i32, %c0_i32_0 : i32, i32
  }
  func.func @transform_10(%arg0: i32) -> (i32, i32) {
    %c0_i32 = arith.constant 0 : i32
    %c0_i32_0 = arith.constant 0 : i32
    %c0_i32_1 = arith.constant 0 : i32
    return %c0_i32, %c0_i32_0 : i32, i32
  }
}

</mosaic_0001>

<bundles_post_ra>
// kernel: tpu_custom_call.1
= control target key start
LH: loop header
LB: loop body
LE: loop exit
PB: predicated region body
PF: predicated region fallthrough
CT: control target
= control target key end

     0   :  { %15 = vsyncpa [#allocation3], 0  ;;  %s5212_s0 = inlined_call_operand.hbm [shape: f32[64,256], index: 0, kind: input, shape index: {}]   ;;  %s5213_s1 = inlined_call_operand.hbm [shape: f32[256,128], index: 1, kind: input, shape index: {}]   ;;  %s5214_s2 = inlined_call_operand.vmem [shape: f32[1,128], index: 2, kind: input, shape index: {}]   ;;  %s5215_s3 = inlined_call_operand.hbm [shape: f32[128,128], index: 3, kind: input, shape index: {}]   ;;  %s5216_s4 = inlined_call_operand.vmem [shape: f32[1,128], index: 4, kind: input, shape index: {}]   ;;  %s5217_s5 = inlined_call_operand.hbm [shape: f32[128,512], index: 5, kind: input, shape index: {}]   ;;  %s5218_s6 = inlined_call_operand.vmem [shape: f32[1,512], index: 6, kind: input, shape index: {}]   ;;  %s5219_s7 = inlined_call_operand.hbm [shape: f32[128,512], index: 7, kind: input, shape index: {}]   ;;  %s5220_s8 = inlined_call_operand.hbm [shape: f32[128,128], index: 8, kind: input, shape index: {}]   ;;  %s5221_s9 = inlined_call_operand.vmem [shape: f32[1,128], index: 9, kind: input, shape index: {}]   ;;  %s5222_s10 = inlined_call_operand.hbm [shape: f32[8,128], index: 10, kind: output, shape index: {}]  }
   0x1   :  { %16 = vsyncpa [#allocation6], 0 }
   0x2   :  { %17 = vsyncpa [#allocation9], 0 }
   0x3   :  { %18 = vsyncpa [#allocation12], 0 }
   0x4   :  { %19 = vsyncpa [#allocation4], 0  ;;  %s4181_s13 = smov [#allocation5]   ;;  %s4017_s17 = scalar_lea.hbm %s5213_s1, 4096 }
   0x5   :  { %s37_s14 = sshll.u32 %s4181_s13, 4  ;;  %p4018_p0 = scmp.ne.s32.totalorder %s5213_s1, %s4017_s17  ;;  %s38_s14 = int_to_ptr.vmem [resolvable:$true] %s37_s14 }
   0x6   :  { %p4021_p1 = scmp.lt.u32.totalorder %s4017_s17, %s5213_s1 }
   0x8   :  { %p4023_p2 = pnand %p4021_p1, %p4018_p0 }
   0xa   :  { %4026 = shalt.err (!%p4023_p2)
}
   0xb   :  { %s4027_s22 = scalar_lea.vmem %s38_s14, 4096  ;;  %p4032_p4 = scmp.lt.s32.totalorder %s38_s14, %s38_s14 }
   0xc   :  { %p4028_p3 = scmp.ne.s32.totalorder %s38_s14, %s4027_s22  ;;  %p4033_p5 = scmp.lt.s32.totalorder %s4027_s22, %s4027_s22 }
   0xe   :  { %p4034_p6 = por %p4033_p5, %p4032_p4 }
  0x10   :  { %p4035_p7 = pnand %p4034_p6, %p4028_p3 }
  0x12   :  { %4038 = shalt.err (!%p4035_p7)
}
  0x13   :  { %s4182_s23 = smov 128   ;;  %s4183_s24 = smov 8  }
  0x14   :  { %43 = dma.hbm_to_vmem [thread:$0]  %s5213_s1, 4096, %s38_s14, [#allocation6], %s4182_s23, %s4182_s23, %s4183_s24  }
  0x15   :  { %s4184_s27 = smov [#allocation8]   ;;  %s4039_s11 = scalar_lea.hbm %s5217_s5, 8192 }
  0x16   :  { %s65_s28 = sshll.u32 %s4184_s27, 4  ;;  %p4040_p8 = scmp.ne.s32.totalorder %s5217_s5, %s4039_s11  ;;  %s66_s28 = int_to_ptr.vmem [resolvable:$true] %s65_s28 }
  0x17   :  { %p4043_p9 = scmp.lt.u32.totalorder %s4039_s11, %s5217_s5 }
  0x19   :  { %p4045_p10 = pnand %p4043_p9, %p4040_p8 }
  0x1b   :  { %4048 = shalt.err (!%p4045_p10)
}
  0x1c   :  { %s4049_s17 = scalar_lea.vmem %s66_s28, 8192  ;;  %p4054_p12 = scmp.lt.s32.totalorder %s66_s28, %s66_s28 }
  0x1d   :  { %p4050_p11 = scmp.ne.s32.totalorder %s66_s28, %s4049_s17  ;;  %p4055_p13 = scmp.lt.s32.totalorder %s4049_s17, %s4049_s17 }
  0x1f   :  { %p4056_p0 = por %p4055_p13, %p4054_p12 }
  0x21   :  { %p4057_p1 = pnand %p4056_p0, %p4050_p11 }
  0x23   :  { %4060 = shalt.err (!%p4057_p1)
}
  0x24   :  { %s4185_s1 = smov 512   ;;  %s4186_s14 = smov 32  }
  0x25   :  { %71 = dma.hbm_to_vmem [thread:$0]  %s5217_s5, 8192, %s66_s28, [#allocation9], %s4185_s1, %s4185_s1, %s4186_s14  }
  0x26   :  { %s4187_s20 = smov [#allocation2]   ;;  %s4061_s26 = scalar_lea.hbm %s5212_s0, 2048 }
  0x27   :  { %s25_s21 = sshll.u32 %s4187_s20, 4  ;;  %p4062_p2 = scmp.ne.s32.totalorder %s5212_s0, %s4061_s26  ;;  %s26_s21 = int_to_ptr.vmem [resolvable:$true] %s25_s21 }
  0x28   :  { %p4065_p3 = scmp.lt.u32.totalorder %s4061_s26, %s5212_s0 }
  0x2a   :  { %p4067_p4 = pnand %p4065_p3, %p4062_p2 }
  0x2c   :  { %4070 = shalt.err (!%p4067_p4)
}
  0x2d   :  { %s4071_s12 = scalar_lea.vmem %s26_s21, 2048  ;;  %p4076_p6 = scmp.lt.s32.totalorder %s26_s21, %s26_s21 }
  0x2e   :  { %p4072_p5 = scmp.ne.s32.totalorder %s26_s21, %s4071_s12  ;;  %p4077_p7 = scmp.lt.s32.totalorder %s4071_s12, %s4071_s12 }
  0x30   :  { %p4078_p8 = por %p4077_p7, %p4076_p6 }
  0x32   :  { %p4079_p9 = pnand %p4078_p8, %p4072_p5 }
  0x34   :  { %4082 = shalt.err (!%p4079_p9)
}
  0x35   :  { %s4188_s5 = smov 256   ;;  %s4189_s28 = smov 16  }
  0x36   :  { %31 = dma.hbm_to_vmem [thread:$0]  %s5212_s0, 2048, %s26_s21, [#allocation3], %s4188_s5, %s4188_s5, %s4189_s28  }
  0x37   :  { %s4190_s16 = smov [#allocation7]   ;;  %s4191_s18 = smov [#allocation10]  }
  0x38   :  { %s51_s17 = sshll.u32 %s4190_s16, 4  ;;  %s79_s19 = sshll.u32 %s4191_s18, 4  ;;  %s52_s17 = int_to_ptr.vmem [resolvable:$true] %s51_s17  ;;  %s80_s19 = int_to_ptr.vmem [resolvable:$true] %s79_s19 }
  0x39   :  { %s4083_s25 = scalar_lea.hbm %s5215_s3, 2048 }
  0x3a   :  { %p4084_p10 = scmp.ne.s32.totalorder %s5215_s3, %s4083_s25  ;;  %p4087_p11 = scmp.lt.u32.totalorder %s4083_s25, %s5215_s3 }
  0x3c   :  { %p4089_p12 = pnand %p4087_p11, %p4084_p10 }
  0x3e   :  { %4092 = shalt.err (!%p4089_p12)
}
  0x3f   :  { %s4093_s0 = scalar_lea.vmem %s52_s17, 2048  ;;  %p4098_p0 = scmp.lt.s32.totalorder %s52_s17, %s52_s17 }
  0x40   :  { %p4094_p13 = scmp.ne.s32.totalorder %s52_s17, %s4093_s0  ;;  %p4099_p1 = scmp.lt.s32.totalorder %s4093_s0, %s4093_s0 }
  0x42   :  { %p4100_p2 = por %p4099_p1, %p4098_p0 }
  0x44   :  { %p4101_p3 = pnand %p4100_p2, %p4094_p13 }
  0x46   :  { %4104 = shalt.err (!%p4101_p3)
}
  0x47   :  { %57 = dma.hbm_to_vmem [thread:$0]  %s5215_s3, 2048, %s52_s17, [#allocation6], %s4182_s23, %s4182_s23, %s4183_s24  }
  0x48   :  { %s4105_s28 = scalar_lea.hbm %s5219_s7, 8192 }
  0x49   :  { %p4106_p4 = scmp.ne.s32.totalorder %s5219_s7, %s4105_s28  ;;  %p4109_p5 = scmp.lt.u32.totalorder %s4105_s28, %s5219_s7 }
  0x4b   :  { %p4111_p6 = pnand %p4109_p5, %p4106_p4 }
  0x4d   :  { %4114 = shalt.err (!%p4111_p6)
}
  0x4e   :  { %s4115_s20 = scalar_lea.vmem %s80_s19, 8192  ;;  %p4120_p8 = scmp.lt.s32.totalorder %s80_s19, %s80_s19 }
  0x4f   :  { %p4116_p7 = scmp.ne.s32.totalorder %s80_s19, %s4115_s20  ;;  %p4121_p9 = scmp.lt.s32.totalorder %s4115_s20, %s4115_s20 }
  0x51   :  { %p4122_p10 = por %p4121_p9, %p4120_p8 }
  0x53   :  { %p4123_p11 = pnand %p4122_p10, %p4116_p7 }
  0x55   :  { %4126 = shalt.err (!%p4123_p11)
}
  0x56   :  { %85 = dma.hbm_to_vmem [thread:$0]  %s5219_s7, 8192, %s80_s19, [#allocation9], %s4185_s1, %s4185_s1, %s4186_s14  }
  0x57   :  { %s4192_s22 = smov [#allocation11]   ;;  %s4127_s29 = scalar_lea.hbm %s5220_s8, 2048 }
  0x58   :  { %s91_s25 = sshll.u32 %s4192_s22, 4  ;;  %p4128_p12 = scmp.ne.s32.totalorder %s5220_s8, %s4127_s29  ;;  %s92_s25 = int_to_ptr.vmem [resolvable:$true] %s91_s25 }
  0x59   :  { %p4131_p13 = scmp.lt.u32.totalorder %s4127_s29, %s5220_s8 }
  0x5b   :  { %p4133_p0 = pnand %p4131_p13, %p4128_p12 }
  0x5d   :  { %4136 = shalt.err (!%p4133_p0)
}
  0x5e   :  { %s4137_s12 = scalar_lea.vmem %s92_s25, 2048  ;;  %p4142_p2 = scmp.lt.s32.totalorder %s92_s25, %s92_s25 }
  0x5f   :  { %p4138_p1 = scmp.ne.s32.totalorder %s92_s25, %s4137_s12  ;;  %p4143_p3 = scmp.lt.s32.totalorder %s4137_s12, %s4137_s12 }
  0x61   :  { %p4144_p4 = por %p4143_p3, %p4142_p2 }
  0x63   :  { %p4145_p5 = pnand %p4144_p4, %p4138_p1 }
  0x65   :  { %4148 = shalt.err (!%p4145_p5)
}
  0x66   :  { %97 = dma.hbm_to_vmem [thread:$0]  %s5220_s8, 2048, %s92_s25, [#allocation12], %s4182_s23, %s4182_s23, %s4183_s24  }
  0x67   :  { %4171 = dma.done.wait [#allocation3], 2048  }
  0x68   :  { %4172 = vsyncadd [#allocation3], 4294965248 }
  0x69   :  { %4173 = dma.done.wait [#allocation6], 6144  }
  0x6a   :  { %4174 = vsyncadd [#allocation6], 4294961152 }
  0x6b   :  { %4175 = dma.done.wait [#allocation9], 16384  }
  0x6c   :  { %4176 = vsyncadd [#allocation9], 4294950912 }
  0x6d   :  { %4177 = dma.done.wait [#allocation12], 2048  }
  0x6e   :  { %4178 = vsyncadd [#allocation12], 4294965248  ;;  %v150_v0 = vld [vmem:[#allocation5 + $0x80] sm:$0xff]  ;;  %v151_v1 = vld [vmem:[#allocation5 + $0x88] sm:$0xff]  ;;  %s4196_s5 = smov [#allocation13]  }
  0x6f   :  { %v134_v2 = vld [vmem:[#allocation5] sm:$0xff]  ;;  %v3081_v3 = vpack.c.bf16 %v151_v1, %v150_v0  ;;  %v135_v4 = vld [vmem:[#allocation5 + $0x8] sm:$0xff]  ;;  %v152_v5 = vld [vmem:[#allocation5 + $0x90] sm:$0xff]  ;;  %s2834_s28 = sshll.u32 %s4196_s5, 4  ;;  %s2835_s28 = int_to_ptr.vmem [resolvable:$true] %s2834_s28 }
  0x70   :  { %v153_v6 = vld [vmem:[#allocation5 + $0x98] sm:$0xff]  ;;  %v3083_v7 = vpack.c.bf16 %v135_v4, %v134_v2  ;;  %v136_v9 = vld [vmem:[#allocation5 + $0x10] sm:$0xff]  ;;  %v154_v11 = vld [vmem:[#allocation5 + $0xa0] sm:$0xff]  ;;  %s4149_s13 = scalar_lea.vmem %s2835_s28, 128  ;;  %p4154_p7 = scmp.lt.s32.totalorder %s2835_s28, %s2835_s28 }
  0x71   :  { %v3085_v8 = vpack.c.bf16 %v153_v6, %v152_v5  ;;  %v137_v10 = vld [vmem:[#allocation5 + $0x18] sm:$0xff]  ;;  %3082 = vmatprep.subr.bf16.mxu0 %v3081_v3  ;;  %v155_v12 = vld [vmem:[#allocation5 + $0xa8] sm:$0xff]  ;;  %v138_v15 = vld [vmem:[#allocation5 + $0x20] sm:$0xff]  ;;  %p4150_p6 = scmp.ne.s32.totalorder %s2835_s28, %s4149_s13  ;;  %p4155_p8 = scmp.lt.s32.totalorder %s4149_s13, %s4149_s13 }
  0x72   :  { %3084 = vmatpush3.bf16.msra.mxu0 %v3083_v7  ;;  %v3087_v13 = vpack.c.bf16 %v137_v10, %v136_v9  ;;  %v3089_v14 = vpack.c.bf16 %v155_v12, %v154_v11  ;;  %v139_v16 = vld [vmem:[#allocation5 + $0x28] sm:$0xff]  ;;  %v156_v17 = vld [vmem:[#allocation5 + $0xb0] sm:$0xff]  ;;  %v157_v18 = vld [vmem:[#allocation5 + $0xb8] sm:$0xff] }
  0x73   :  { %3086 = vmatprep.subr.bf16.mxu0 %v3085_v8  ;;  %v3091_v19 = vpack.c.bf16 %v139_v16, %v138_v15  ;;  %v3093_v20 = vpack.c.bf16 %v157_v18, %v156_v17  ;;  %v140_v21 = vld [vmem:[#allocation5 + $0x30] sm:$0xff]  ;;  %v141_v22 = vld [vmem:[#allocation5 + $0x38] sm:$0xff]  ;;  %v158_v23 = vld [vmem:[#allocation5 + $0xc0] sm:$0xff]  ;;  %p4156_p9 = por %p4155_p8, %p4154_p7 }
  0x74   :  { %v159_v24 = vld [vmem:[#allocation5 + $0xc8] sm:$0xff]  ;;  %v3095_v26 = vpack.c.bf16 %v141_v22, %v140_v21  ;;  %v142_v28 = vld [vmem:[#allocation5 + $0x40] sm:$0xff]  ;;  %v160_v30 = vld [vmem:[#allocation5 + $0xd0] sm:$0xff] }
  0x75   :  { %v119_v25 = vld [vmem:[#allocation2 + $0x8] sm:$0xff]  ;;  %v3097_v27 = vpack.c.bf16 %v159_v24, %v158_v23  ;;  %v161_v31 = vld [vmem:[#allocation5 + $0xd8] sm:$0xff]  ;;  %v144_v34 = vld [vmem:[#allocation5 + $0x50] sm:$0xff]  ;;  %p4157_p10 = pnand %p4156_p9, %p4150_p6 }
  0x76   :  { %3088 = vmatpush3.bf16.msra.mxu0 %v3087_v13  ;;  %237 = vmatprep.mubr.f32.mxu0 %v119_v25  ;;  %v143_v29 = vld [vmem:[#allocation5 + $0x48] sm:$0xff]  ;;  %v3101_v33 = vpack.c.bf16 %v161_v31, %v160_v30  ;;  %v145_v35 = vld [vmem:[#allocation5 + $0x58] sm:$0xff]  ;;  %v162_v36 = vld [vmem:[#allocation5 + $0xe0] sm:$0xff] }
  0x77   :  { %3090 = vmatprep.subr.bf16.mxu0 %v3089_v14  ;;  %v3099_v32 = vpack.c.bf16 %v143_v29, %v142_v28  ;;  %v163_v37 = vld [vmem:[#allocation5 + $0xe8] sm:$0xff]  ;;  %v3103_v38 = vpack.c.bf16 %v145_v35, %v144_v34  ;;  %v146_v40 = vld [vmem:[#allocation5 + $0x60] sm:$0xff]  ;;  %v164_v42 = vld [vmem:[#allocation5 + $0xf0] sm:$0xff] }
  0x78   :  { %v3105_v39 = vpack.c.bf16 %v163_v37, %v162_v36  ;;  %v147_v41 = vld [vmem:[#allocation5 + $0x68] sm:$0xff]  ;;  %v165_v43 = vld [vmem:[#allocation5 + $0xf8] sm:$0xff]  ;;  %v148_v46 = vld [vmem:[#allocation5 + $0x70] sm:$0xff] }
  0x79   :  { %v3107_v44 = vpack.c.bf16 %v147_v41, %v146_v40  ;;  %v3109_v45 = vpack.c.bf16 %v165_v43, %v164_v42  ;;  %v149_v47 = vld [vmem:[#allocation5 + $0x78] sm:$0xff]  ;;  %v118_v49 = vld [vmem:[#allocation2] sm:$0xff]  ;;  %v120_v51 = vld [vmem:[#allocation2 + $0x10] sm:$0xff] }
  0x7a   :  { %3092 = vmatpush3.bf16.msra.mxu0 %v3091_v19  ;;  %v3111_v48 = vpack.c.bf16 %v149_v47, %v148_v46  ;;  %v121_v50 = vld [vmem:[#allocation2 + $0x18] sm:$0xff]  ;;  %v123_v52 = vld [vmem:[#allocation2 + $0x28] sm:$0xff]  ;;  %v122_v53 = vld [vmem:[#allocation2 + $0x20] sm:$0xff] }
  0x7b   :  { %3094 = vmatprep.subr.bf16.mxu0 %v3093_v20  ;;  %v125_v54 = vld [vmem:[#allocation2 + $0x38] sm:$0xff]  ;;  %v124_v55 = vld [vmem:[#allocation2 + $0x30] sm:$0xff]  ;;  %v127_v56 = vld [vmem:[#allocation2 + $0x48] sm:$0xff] }
  0x7c   :  { %v126_v57 = vld [vmem:[#allocation2 + $0x40] sm:$0xff]  ;;  %v129_v58 = vld [vmem:[#allocation2 + $0x58] sm:$0xff]  ;;  %v128_v59 = vld [vmem:[#allocation2 + $0x50] sm:$0xff] }
  0x7d   :  { %v131_v60 = vld [vmem:[#allocation2 + $0x68] sm:$0xff]  ;;  %v130_v61 = vld [vmem:[#allocation2 + $0x60] sm:$0xff]  ;;  %v133_v62 = vld [vmem:[#allocation2 + $0x78] sm:$0xff] }
  0x7e   :  { %3096 = vmatpush3.bf16.msra.mxu0 %v3095_v26  ;;  %v132_v63 = vld [vmem:[#allocation2 + $0x70] sm:$0xff]  ;;  %v574_v0 = vld [vmem:[#allocation7] sm:$0xff]  ;;  %v575_v1 = vld [vmem:[#allocation7 + $0x8] sm:$0xff] }
  0x7f   :  { %3098 = vmatprep.subr.bf16.mxu0 %v3097_v27  ;;  %v3113_v2 = vpack.c.bf16 %v575_v1, %v574_v0  ;;  %v576_v3 = vld [vmem:[#allocation7 + $0x10] sm:$0xff]  ;;  %v577_v4 = vld [vmem:[#allocation7 + $0x18] sm:$0xff]  ;;  %v578_v6 = vld [vmem:[#allocation7 + $0x20] sm:$0xff] }
  0x80   :  { %v3117_v5 = vpack.c.bf16 %v577_v4, %v576_v3  ;;  %v579_v7 = vld [vmem:[#allocation7 + $0x28] sm:$0xff]  ;;  %v580_v9 = vld [vmem:[#allocation7 + $0x30] sm:$0xff]  ;;  %v581_v10 = vld [vmem:[#allocation7 + $0x38] sm:$0xff] }
  0x81   :  { %3114 = vmatprep.subr.bf16.mxu1 %v3113_v2  ;;  %v3121_v8 = vpack.c.bf16 %v579_v7, %v578_v6  ;;  %v3125_v11 = vpack.c.bf16 %v581_v10, %v580_v9  ;;  %v582_v12 = vld [vmem:[#allocation7 + $0x40] sm:$0xff]  ;;  %v583_v13 = vld [vmem:[#allocation7 + $0x48] sm:$0xff]  ;;  %v584_v15 = vld [vmem:[#allocation7 + $0x50] sm:$0xff] }
  0x82   :  { %3100 = vmatpush3.bf16.msra.mxu0 %v3099_v32  ;;  %3116 = vmatpush3.bf16.msra.mxu1 %v3113_v2  ;;  %v3129_v14 = vpack.c.bf16 %v583_v13, %v582_v12  ;;  %v585_v16 = vld [vmem:[#allocation7 + $0x58] sm:$0xff]  ;;  %v586_v18 = vld [vmem:[#allocation7 + $0x60] sm:$0xff]  ;;  %v587_v19 = vld [vmem:[#allocation7 + $0x68] sm:$0xff] }
  0x83   :  { %3102 = vmatprep.subr.bf16.mxu0 %v3101_v33  ;;  %3118 = vmatprep.subr.bf16.mxu1 %v3117_v5  ;;  %v3133_v17 = vpack.c.bf16 %v585_v16, %v584_v15  ;;  %v3137_v20 = vpack.c.bf16 %v587_v19, %v586_v18  ;;  %v588_v21 = vld [vmem:[#allocation7 + $0x70] sm:$0xff]  ;;  %v589_v22 = vld [vmem:[#allocation7 + $0x78] sm:$0xff]  ;;  %v4342_v25 = vld [vmem:[%s5214_s2] ss:$0 sm:$0xff] }
  0x84   :  { %v3141_v23 = vpack.c.bf16 %v589_v22, %v588_v21 }
  0x86   :  { %3104 = vmatpush3.bf16.msra.mxu0 %v3103_v38  ;;  %3120 = vmatpush3.bf16.msra.mxu1 %v3117_v5 }
  0x87   :  { %3106 = vmatprep.subr.bf16.mxu0 %v3105_v39  ;;  %3122 = vmatprep.subr.bf16.mxu1 %v3121_v8 }
  0x8a   :  { %3108 = vmatpush3.bf16.msra.mxu0 %v3107_v44  ;;  %3124 = vmatpush3.bf16.msra.mxu1 %v3121_v8 }
  0x8b   :  { %3110 = vmatprep.subr.bf16.mxu0 %v3109_v45  ;;  %3126 = vmatprep.subr.bf16.mxu1 %v3125_v11 }
  0x8e   :  { %3112 = vmatpush3.bf16.msra.mxu0 %v3111_v48  ;;  %3128 = vmatpush3.bf16.msra.mxu1 %v3125_v11 }
  0x8f   :  { %3130 = vmatprep.subr.bf16.mxu1 %v3129_v14 }
  0x91   :  { %238 = vmatmul.mubr.f32.vlgmr.msra.gmra.mrb[0].mxu0 %v118_v49 }
  0x92   :  { %242 = vmatprep.mubr.f32.mxu0 %v121_v50  ;;  %3132 = vmatpush3.bf16.msra.mxu1 %v3129_v14 }
  0x93   :  { %3134 = vmatprep.subr.bf16.mxu1 %v3133_v17 }
  0x95   :  { %243 = vmatmul.mubr.f32.gmra.mrb[2].mxu0 %v120_v51 }
  0x96   :  { %247 = vmatprep.mubr.f32.mxu0 %v123_v52  ;;  %3136 = vmatpush3.bf16.msra.mxu1 %v3133_v17 }
  0x97   :  { %3138 = vmatprep.subr.bf16.mxu1 %v3137_v20 }
  0x99   :  { %248 = vmatmul.mubr.f32.gmra.mrb[4].mxu0 %v122_v53 }
  0x9a   :  { %252 = vmatprep.mubr.f32.mxu0 %v125_v54  ;;  %3140 = vmatpush3.bf16.msra.mxu1 %v3137_v20 }
  0x9b   :  { %3142 = vmatprep.subr.bf16.mxu1 %v3141_v23 }
  0x9d   :  { %253 = vmatmul.mubr.f32.gmra.mrb[6].mxu0 %v124_v55 }
  0x9e   :  { %257 = vmatprep.mubr.f32.mxu0 %v127_v56  ;;  %3144 = vmatpush3.bf16.msra.mxu1 %v3141_v23 }
  0xa1   :  { %258 = vmatmul.mubr.f32.gmra.mrb[8].mxu0 %v126_v57 }
  0xa2   :  { %262 = vmatprep.mubr.f32.mxu0 %v129_v58 }
  0xa5   :  { %263 = vmatmul.mubr.f32.gmra.mrb[10].mxu0 %v128_v59 }
  0xa6   :  { %267 = vmatprep.mubr.f32.mxu0 %v131_v60 }
  0xa9   :  { %268 = vmatmul.mubr.f32.gmra.mrb[12].mxu0 %v130_v61 }
  0xaa   :  { %272 = vmatprep.mubr.f32.mxu0 %v133_v62 }
  0xad   :  { %273 = vmatmul.mubr.f32.gmra.mrb[14].mxu0 %v132_v63 }
 0x164   :  { %v2937_v24 = vpop.f32.mrb[0].mxu0 }
 0x165   :  { %v2938_v26 = vpop.f32.mrb[1].mxu0 }
 0x166   :  { %v2939_v27 = vadd.f32 %v2938_v26, %v2937_v24 }
 0x168   :  { %v4345_v28 = vadd.f32 %v2939_v27, %v4342_v25  ;;  %v2940_v29 = vpop.f32.mrb[2].mxu0 }
 0x169   :  { %v2941_v30 = vpop.f32.mrb[3].mxu0 }
 0x16a   :  { %v4348_v31 = vmul.f32 0.70710677, %v4345_v28  ;;  %v2942_v32 = vadd.f32 %v2941_v30, %v2940_v29 }
 0x16c   :  { %v4351_v33 = vand.u32 2147483647, %v4348_v31  ;;  %v4354_v34 = vadd.f32 %v2942_v32, %v4342_v25  ;;  %v2943_v35 = vpop.f32.mrb[4].mxu0  ;;  %vm526_vm0 = vcmp.ge.f32.partialorder %v4348_v31, 0.0 }
 0x16d   :  { %v2944_v36 = vpop.f32.mrb[5].mxu0 }
 0x16e   :  { %v302_v37 = vmul.f32 0.5, %v4351_v33  ;;  %v4358_v38 = vmul.f32 0.70710677, %v4354_v34  ;;  %v2945_v39 = vadd.f32 %v2944_v36, %v2943_v35  ;;  %v334_v32 = vsub.f32 0.0, %v4351_v33 }
 0x170   :  { %v310_v40 = vadd.f32 1.0, %v302_v37  ;;  %v4361_v41 = vand.u32 2147483647, %v4358_v38  ;;  %v2946_v42 = vpop.f32.mrb[6].mxu0  ;;  %v4364_v43 = vadd.f32 %v2945_v39, %v4342_v25  ;;  %vm527_vm1 = vcmp.ge.f32.partialorder %v4358_v38, 0.0 }
 0x171   :  { %v2947_v44 = vpop.f32.mrb[7].mxu0 }
 0x172   :  { %3825 = vrcp.f32 %v310_v40  ;;  %v303_v45 = vmul.f32 0.5, %v4361_v41  ;;  %v4368_v46 = vmul.f32 0.70710677, %v4364_v43  ;;  %v2948_v47 = vadd.f32 %v2947_v44, %v2946_v42 }
 0x174   :  { %v311_v48 = vadd.f32 1.0, %v303_v45  ;;  %v2949_v49 = vpop.f32.mrb[8].mxu0  ;;  %v4371_v50 = vand.u32 2147483647, %v4368_v46  ;;  %v4374_v51 = vadd.f32 %v2948_v47, %v4342_v25  ;;  %vm528_vm2 = vcmp.ge.f32.partialorder %v4368_v46, 0.0 }
 0x175   :  { %v2950_v52 = vpop.f32.mrb[9].mxu0 }
 0x176   :  { %3827 = vrcp.f32 %v311_v48  ;;  %v2951_v53 = vadd.f32 %v2950_v52, %v2949_v49  ;;  %v304_v54 = vmul.f32 0.5, %v4371_v50  ;;  %v4378_v55 = vmul.f32 0.70710677, %v4374_v51 }
 0x177   :  { %v342_v48 = vmul.f32 %v334_v32, %v4351_v33 }
 0x178   :  { %v4381_v56 = vadd.f32 %v2951_v53, %v4342_v25  ;;  %v2952_v57 = vpop.f32.mrb[10].mxu0  ;;  %v312_v58 = vadd.f32 1.0, %v304_v54  ;;  %v4384_v59 = vand.u32 2147483647, %v4378_v55  ;;  %vm529_vm3 = vcmp.ge.f32.partialorder %v4378_v55, 0.0 }
 0x179   :  { %v2953_v60 = vpop.f32.mrb[11].mxu0 }
 0x17a   :  { %v4387_v61 = vmul.f32 0.70710677, %v4381_v56  ;;  %v2954_v62 = vadd.f32 %v2953_v60, %v2952_v57  ;;  %3829 = vrcp.f32 %v312_v58  ;;  %v305_v63 = vmul.f32 0.5, %v4384_v59 }
 0x17c   :  { %v4390_v0 = vpop.eup %3825  ;;  %v4393_v1 = vand.u32 2147483647, %v4387_v61  ;;  %v4396_v2 = vadd.f32 %v2954_v62, %v4342_v25  ;;  %v2955_v3 = vpop.f32.mrb[12].mxu0  ;;  %v313_v5 = vadd.f32 1.0, %v305_v63  ;;  %v335_v62 = vsub.f32 0.0, %v4361_v41 }
 0x17d   :  { %v358_v4 = vmul.f32 0.17087276, %v4390_v0  ;;  %v2956_v6 = vpop.f32.mrb[13].mxu0  ;;  %vm530_vm4 = vcmp.ge.f32.partialorder %v4387_v61, 0.0 }
 0x17e   :  { %v306_v7 = vmul.f32 0.5, %v4393_v1  ;;  %v4401_v8 = vmul.f32 0.70710677, %v4396_v2  ;;  %3831 = vrcp.f32 %v313_v5  ;;  %v2957_v10 = vadd.f32 %v2956_v6, %v2955_v3 }
 0x17f   :  { %v366_v9 = vadd.f32 -0.82215226, %v358_v4 }
 0x180   :  { %v4403_v11 = vpop.eup %3827  ;;  %v314_v12 = vadd.f32 1.0, %v306_v7  ;;  %v4406_v13 = vand.u32 2147483647, %v4401_v8  ;;  %v2958_v14 = vpop.f32.mrb[14].mxu0  ;;  %v4411_v17 = vadd.f32 %v2957_v10, %v4342_v25  ;;  %v4450_v7 = vadd.f32 -1.2655122, %v342_v48 }
 0x181   :  { %v374_v15 = vmul.f32 %v4390_v0, %v366_v9  ;;  %v359_v16 = vmul.f32 0.17087276, %v4403_v11  ;;  %v2959_v18 = vpop.f32.mrb[15].mxu0  ;;  %v336_v9 = vsub.f32 0.0, %v4371_v50  ;;  %vm531_vm5 = vcmp.ge.f32.partialorder %v4401_v8, 0.0 }
 0x182   :  { %3833 = vrcp.f32 %v314_v12  ;;  %v307_v19 = vmul.f32 0.5, %v4406_v13  ;;  %v2960_v22 = vadd.f32 %v2959_v18, %v2958_v14  ;;  %v4415_v24 = vmul.f32 0.70710677, %v4411_v17 }
 0x183   :  { %v382_v20 = vadd.f32 1.4885159, %v374_v15  ;;  %v367_v21 = vadd.f32 -0.82215226, %v359_v16 }
 0x184   :  { %v315_v23 = vadd.f32 1.0, %v307_v19  ;;  %v4417_v26 = vpop.eup %3829  ;;  %v4422_v30 = vadd.f32 %v2960_v22, %v4342_v25  ;;  %v4427_v36 = vand.u32 2147483647, %v4415_v24  ;;  %v343_v19 = vmul.f32 %v335_v62, %v4361_v41 }
 0x185   :  { %v390_v27 = vmul.f32 %v4390_v0, %v382_v20  ;;  %v375_v29 = vmul.f32 %v4403_v11, %v367_v21  ;;  %v360_v35 = vmul.f32 0.17087276, %v4417_v26  ;;  %vm532_vm6 = vcmp.ge.f32.partialorder %v4415_v24, 0.0  ;;  %v999_v24 = vld [vmem:[#allocation8 + $0x8] sm:$0xff] }
 0x186   :  { %3835 = vrcp.f32 %v315_v23  ;;  %v308_v42 = vmul.f32 0.5, %v4427_v36  ;;  %v4431_v44 = vmul.f32 0.70710677, %v4422_v30 }
 0x187   :  { %v398_v37 = vadd.f32 -1.135204, %v390_v27  ;;  %v383_v39 = vadd.f32 1.4885159, %v375_v29  ;;  %v368_v40 = vadd.f32 -0.82215226, %v360_v35  ;;  %v344_v35 = vmul.f32 %v336_v9, %v4371_v50 }
 0x188   :  { %v4433_v45 = vpop.eup %3831  ;;  %v316_v53 = vadd.f32 1.0, %v308_v42  ;;  %v4441_v58 = vand.u32 2147483647, %v4431_v44  ;;  %vm533_vm7 = vcmp.ge.f32.partialorder %v4431_v44, 0.0 }
 0x189   :  { %v406_v25 = vmul.f32 %v4390_v0, %v398_v37  ;;  %v391_v47 = vmul.f32 %v4403_v11, %v383_v39  ;;  %v376_v49 = vmul.f32 %v4417_v26, %v368_v40  ;;  %v361_v52 = vmul.f32 0.17087276, %v4433_v45 }
 0x18a   :  { %3837 = vrcp.f32 %v316_v53  ;;  %v309_v6 = vmul.f32 0.5, %v4441_v58  ;;  %v4470_v50 = vadd.f32 -1.2655122, %v344_v35 }
 0x18b   :  { %v414_v54 = vadd.f32 0.27886808, %v406_v25  ;;  %v399_v57 = vadd.f32 -1.135204, %v391_v47  ;;  %v384_v63 = vadd.f32 1.4885159, %v376_v49 }
 0x18c   :  { %v4443_v60 = vpop.eup %3833  ;;  %v369_v3 = vadd.f32 -0.82215226, %v361_v52  ;;  %v317_v22 = vadd.f32 1.0, %v309_v6  ;;  %v2848_v52 = vadd.f32 -1.2655122, %v343_v19 }
 0x18d   :  { %v422_v4 = vmul.f32 %v4390_v0, %v414_v54  ;;  %v407_v33 = vmul.f32 %v4403_v11, %v399_v57  ;;  %v362_v5 = vmul.f32 0.17087276, %v4443_v60  ;;  %v392_v10 = vmul.f32 %v4417_v26, %v384_v63 }
 0x18e   :  { %v377_v12 = vmul.f32 %v4433_v45, %v369_v3  ;;  %3839 = vrcp.f32 %v317_v22 }
 0x18f   :  { %v430_v14 = vadd.f32 -0.18628806, %v422_v4  ;;  %v415_v15 = vadd.f32 0.27886808, %v407_v33  ;;  %v370_v16 = vadd.f32 -0.82215226, %v362_v5 }
 0x190   :  { %v4455_v18 = vpop.eup %3835  ;;  %v400_v20 = vadd.f32 -1.135204, %v392_v10  ;;  %v385_v21 = vadd.f32 1.4885159, %v377_v12 }
 0x191   :  { %v438_v23 = vmul.f32 %v4390_v0, %v430_v14  ;;  %v423_v27 = vmul.f32 %v4403_v11, %v415_v15  ;;  %v378_v29 = vmul.f32 %v4443_v60, %v370_v16  ;;  %v363_v32 = vmul.f32 0.17087276, %v4455_v18 }
 0x192   :  { %v408_v37 = vmul.f32 %v4417_v26, %v400_v20  ;;  %v393_v39 = vmul.f32 %v4433_v45, %v385_v21  ;;  %v337_v20 = vsub.f32 0.0, %v4384_v59 }
 0x193   :  { %v446_v40 = vadd.f32 0.09678418, %v438_v23  ;;  %v431_v41 = vadd.f32 -0.18628806, %v423_v27  ;;  %v386_v42 = vadd.f32 1.4885159, %v378_v29 }
 0x194   :  { %v416_v25 = vadd.f32 0.27886808, %v408_v37  ;;  %v401_v47 = vadd.f32 -1.135204, %v393_v39  ;;  %v371_v48 = vadd.f32 -0.82215226, %v363_v32  ;;  %v4468_v57 = vpop.eup %3837 }
 0x195   :  { %v454_v49 = vmul.f32 %v4390_v0, %v446_v40  ;;  %v439_v53 = vmul.f32 %v4403_v11, %v431_v41  ;;  %v394_v54 = vmul.f32 %v4443_v60, %v386_v42  ;;  %v364_v16 = vmul.f32 0.17087276, %v4468_v57 }
 0x196   :  { %v424_v62 = vmul.f32 %v4417_v26, %v416_v25  ;;  %v409_v63 = vmul.f32 %v4433_v45, %v401_v47  ;;  %v379_v3 = vmul.f32 %v4455_v18, %v371_v48 }
 0x197   :  { %v462_v4 = vadd.f32 0.37409195, %v454_v49  ;;  %v447_v33 = vadd.f32 0.09678418, %v439_v53  ;;  %v402_v5 = vadd.f32 -1.135204, %v394_v54 }
 0x198   :  { %v432_v6 = vadd.f32 -0.18628806, %v424_v62  ;;  %v417_v9 = vadd.f32 0.27886808, %v409_v63  ;;  %v387_v10 = vadd.f32 1.4885159, %v379_v3  ;;  %v4483_v32 = vpop.eup %3839 }
 0x199   :  { %v470_v12 = vmul.f32 %v4390_v0, %v462_v4  ;;  %v455_v14 = vmul.f32 %v4403_v11, %v447_v33  ;;  %v410_v15 = vmul.f32 %v4443_v60, %v402_v5  ;;  %v372_v25 = vadd.f32 -0.82215226, %v364_v16 }
 0x19a   :  { %v440_v19 = vmul.f32 %v4417_v26, %v432_v6  ;;  %v425_v21 = vmul.f32 %v4433_v45, %v417_v9  ;;  %v395_v22 = vmul.f32 %v4455_v18, %v387_v10  ;;  %v365_v53 = vmul.f32 0.17087276, %v4483_v32 }
 0x19b   :  { %v478_v23 = vadd.f32 1.0000237, %v470_v12  ;;  %v463_v27 = vadd.f32 0.37409195, %v455_v14  ;;  %v418_v29 = vadd.f32 0.27886808, %v410_v15  ;;  %v380_v3 = vmul.f32 %v4468_v57, %v372_v25 }
 0x19c   :  { %v448_v35 = vadd.f32 0.09678418, %v440_v19  ;;  %v433_v37 = vadd.f32 -0.18628806, %v425_v21  ;;  %v403_v39 = vadd.f32 -1.135204, %v395_v22  ;;  %v345_v33 = vmul.f32 %v337_v20, %v4384_v59 }
 0x19d   :  { %v486_v40 = vmul.f32 %v4390_v0, %v478_v23  ;;  %v471_v41 = vmul.f32 %v4403_v11, %v463_v27  ;;  %v426_v42 = vmul.f32 %v4443_v60, %v418_v29  ;;  %v388_v14 = vadd.f32 1.4885159, %v380_v3 }
 0x19e   :  { %v456_v47 = vmul.f32 %v4417_v26, %v448_v35  ;;  %v441_v48 = vmul.f32 %v4433_v45, %v433_v37  ;;  %v411_v49 = vmul.f32 %v4455_v18, %v403_v39  ;;  %v373_v19 = vadd.f32 -0.82215226, %v365_v53 }
 0x19f   :  { %v494_v54 = vadd.f32 %v4450_v7, %v486_v40  ;;  %v479_v62 = vadd.f32 1.0000237, %v471_v41  ;;  %v434_v63 = vadd.f32 -0.18628806, %v426_v42  ;;  %v396_v59 = vmul.f32 %v4468_v57, %v388_v14 }
 0x1a0   :  { %v464_v4 = vadd.f32 0.37409195, %v456_v47  ;;  %v449_v5 = vadd.f32 0.09678418, %v441_v48  ;;  %v419_v6 = vadd.f32 0.27886808, %v411_v49  ;;  %v381_v29 = vmul.f32 %v4483_v32, %v373_v19 }
 0x1a1   :  { %v502_v9 = vmul.f32 1.442695, %v494_v54  ;;  %v487_v10 = vmul.f32 %v4403_v11, %v479_v62  ;;  %v442_v12 = vmul.f32 %v4443_v60, %v434_v63  ;;  %v338_v37 = vsub.f32 0.0, %v4393_v1 }
 0x1a2   :  { %v472_v15 = vmul.f32 %v4417_v26, %v464_v4  ;;  %v457_v16 = vmul.f32 %v4433_v45, %v449_v5  ;;  %v427_v7 = vmul.f32 %v4455_v18, %v419_v6  ;;  %v404_v40 = vadd.f32 -1.135204, %v396_v59 }
 0x1a3   :  { %3841 = vpow2.f32 %v502_v9  ;;  %v495_v21 = vadd.f32 %v2848_v52, %v487_v10  ;;  %v450_v22 = vadd.f32 0.09678418, %v442_v12  ;;  %v389_v25 = vadd.f32 1.4885159, %v381_v29 }
 0x1a4   :  { %v480_v20 = vadd.f32 1.0000237, %v472_v15  ;;  %v465_v23 = vadd.f32 0.37409195, %v457_v16  ;;  %v435_v27 = vadd.f32 -0.18628806, %v427_v7  ;;  %v412_v49 = vmul.f32 %v4468_v57, %v404_v40 }
 0x1a5   :  { %v504_v35 = vmul.f32 1.442695, %v495_v21  ;;  %v458_v39 = vmul.f32 %v4443_v60, %v450_v22  ;;  %v339_v48 = vsub.f32 0.0, %v4406_v13  ;;  %v397_v63 = vmul.f32 %v4483_v32, %v389_v25 }
 0x1a6   :  { %v488_v41 = vmul.f32 %v4417_v26, %v480_v20  ;;  %v473_v42 = vmul.f32 %v4433_v45, %v465_v23  ;;  %v443_v52 = vmul.f32 %v4455_v18, %v435_v27  ;;  %v2850_v3 = vadd.f32 -1.2655122, %v345_v33 }
 0x1a7   :  { %3843 = vpow2.f32 %v504_v35  ;;  %v466_v47 = vadd.f32 0.37409195, %v458_v39  ;;  %v346_v4 = vmul.f32 %v338_v37, %v4393_v1  ;;  %v420_v6 = vadd.f32 0.27886808, %v412_v49 }
 0x1a8   :  { %v496_v53 = vadd.f32 %v4470_v50, %v488_v41  ;;  %v481_v54 = vadd.f32 1.0000237, %v473_v42  ;;  %v451_v62 = vadd.f32 0.09678418, %v443_v52  ;;  %v405_v14 = vadd.f32 -1.135204, %v397_v63 }
 0x1a9   :  { %v474_v5 = vmul.f32 %v4443_v60, %v466_v47  ;;  %v347_v16 = vmul.f32 %v339_v48, %v4406_v13  ;;  %v428_v50 = vmul.f32 %v4468_v57, %v420_v6  ;;  %v2851_v21 = vadd.f32 -1.2655122, %v346_v4 }
 0x1aa   :  { %v506_v9 = vmul.f32 1.442695, %v496_v53  ;;  %v489_v10 = vmul.f32 %v4433_v45, %v481_v54  ;;  %v459_v12 = vmul.f32 %v4455_v18, %v451_v62  ;;  %v413_v33 = vmul.f32 %v4483_v32, %v405_v14 }
 0x1ab   :  { %v482_v15 = vadd.f32 1.0000237, %v474_v5  ;;  %v436_v59 = vadd.f32 -0.18628806, %v428_v50  ;;  %v2852_v13 = vadd.f32 -1.2655122, %v347_v16 }
 0x1ac   :  { %3845 = vpow2.f32 %v506_v9  ;;  %v497_v7 = vadd.f32 %v2850_v3, %v489_v10  ;;  %v467_v19 = vadd.f32 0.37409195, %v459_v12  ;;  %v421_v27 = vadd.f32 0.27886808, %v413_v33 }
 0x1ad   :  { %v3842_v1 = vpop.eup %3841  ;;  %v490_v22 = vmul.f32 %v4443_v60, %v482_v15  ;;  %v444_v37 = vmul.f32 %v4468_v57, %v436_v59  ;;  %v340_v49 = vsub.f32 0.0, %v4427_v36  ;;  %v278_v62 = vmul.f32 0.5, %v4345_v28 }
 0x1ae   :  { %v508_v20 = vmul.f32 1.442695, %v497_v7  ;;  %v475_v23 = vmul.f32 %v4455_v18, %v467_v19  ;;  %v518_v29 = vmul.f32 %v3842_v1, %v4390_v0  ;;  %v429_v40 = vmul.f32 %v4483_v32, %v421_v27 }
 0x1af   :  { %v498_v35 = vadd.f32 %v2851_v21, %v490_v22  ;;  %v452_v25 = vadd.f32 0.09678418, %v444_v37  ;;  %v348_v14 = vmul.f32 %v340_v49, %v4427_v36  ;;  %v341_v28 = vsub.f32 0.0, %v4441_v58 }
 0x1b0   :  { %3847 = vpow2.f32 %v508_v20  ;;  %v483_v39 = vadd.f32 1.0000237, %v475_v23  ;;  %v534_v41 = vsub.f32 1.0, %v518_v29  ;;  %v2855_v47 = vadd.f32 -1.0, %v518_v29 }
 0x1b1   :  { %v3844_v42 = vpop.eup %3843  ;;  %v510_v52 = vmul.f32 1.442695, %v498_v35  ;;  %v437_v0 = vadd.f32 -0.18628806, %v429_v40  ;;  %v460_v54 = vmul.f32 %v4468_v57, %v452_v25  ;;  %v279_v19 = vmul.f32 0.5, %v4354_v34 }
 0x1b2   :  { %v491_v48 = vmul.f32 %v4455_v18, %v483_v39  ;;  %v519_v53 = vmul.f32 %v3844_v42, %v4403_v11  ;;  %v550_v63 = vsel %vm526_vm0, %v534_v41, %v2855_v47  ;;  %v2853_v59 = vadd.f32 -1.2655122, %v348_v14 }
 0x1b3   :  { %3849 = vpow2.f32 %v510_v52  ;;  %v445_v4 = vmul.f32 %v4483_v32, %v437_v0  ;;  %v558_v5 = vadd.f32 1.0, %v550_v63  ;;  %v468_v31 = vadd.f32 0.37409195, %v460_v54 }
 0x1b4   :  { %v499_v3 = vadd.f32 %v2852_v13, %v491_v48  ;;  %v535_v6 = vsub.f32 1.0, %v519_v53  ;;  %v2856_v9 = vadd.f32 -1.0, %v519_v53  ;;  %v280_v35 = vmul.f32 0.5, %v4364_v43 }
 0x1b5   :  { %v453_v11 = vadd.f32 0.09678418, %v445_v4  ;;  %v566_v15 = vmul.f32 %v558_v5, %v278_v62  ;;  %v476_v16 = vmul.f32 %v4468_v57, %v468_v31  ;;  %vm4195_vm0 = vmmov 0  }
 0x1b6   :  { %v3846_v10 = vpop.eup %3845  ;;  %v512_v12 = vmul.f32 1.442695, %v499_v3  ;;  %v551_v50 = vsel %vm527_vm1, %v535_v6, %v2856_v9  ;;  %v283_v9 = vmul.f32 0.5, %v4396_v2 }
 0x1b7   :  { %v520_v7 = vmul.f32 %v3846_v10, %v4417_v26  ;;  %v461_v38 = vmul.f32 %v4483_v32, %v453_v11  ;;  %3034 = vmatprep.mubr.f32.mxu1 %v566_v15  ;;  %v559_v33 = vadd.f32 1.0, %v551_v50  ;;  %v484_v1 = vadd.f32 1.0000237, %v476_v16 }
 0x1b8   :  { %3851 = vpow2.f32 %v512_v12  ;;  %v349_v26 = vmul.f32 %v341_v28, %v4441_v58  ;;  %v281_v58 = vmul.f32 0.5, %v4374_v51  ;;  %v284_v28 = vmul.f32 0.5, %v4411_v17  ;;  %v998_v17 = vld [vmem:[#allocation8] sm:$0xff] }
 0x1b9   :  { %v536_v21 = vsub.f32 1.0, %v520_v7  ;;  %v2857_v22 = vadd.f32 -1.0, %v520_v7  ;;  %v469_v20 = vadd.f32 0.37409195, %v461_v38  ;;  %v567_v23 = vmul.f32 %v559_v33, %v279_v19 }
 0x1ba   :  { %v3848_v36 = vpop.eup %3847  ;;  %v492_v27 = vmul.f32 %v4468_v57, %v484_v1 }
 0x1bb   :  { %v552_v29 = vsel %vm528_vm2, %v536_v21, %v2857_v22  ;;  %v521_v34 = vmul.f32 %v3848_v36, %v4433_v45  ;;  %v477_v13 = vmul.f32 %v4483_v32, %v469_v20  ;;  %3035 = vmatmul.mubr.f32.vlgmr.msra.gmra.mrb[0].mxu1 %v567_v23  ;;  %v2854_v45 = vadd.f32 -1.2655122, %v349_v26  ;;  %v1003_v21 = vld [vmem:[#allocation8 + $0x28] sm:$0xff]  ;;  %v1001_v22 = vld [vmem:[#allocation8 + $0x18] sm:$0xff]  ;;  %v1004_v26 = vld [vmem:[#allocation8 + $0x30] sm:$0xff] }
 0x1bc   :  { %v560_v37 = vadd.f32 1.0, %v552_v29  ;;  %v500_v40 = vadd.f32 %v2853_v59, %v492_v27  ;;  %v3145_v36 = vpack.c.bf16 %v1003_v21, %v999_v24  ;;  %v1002_v59 = vld [vmem:[#allocation8 + $0x20] sm:$0xff]  ;;  %v1005_v20 = vld [vmem:[#allocation8 + $0x38] sm:$0xff]  ;;  %v1000_v27 = vld [vmem:[#allocation8 + $0x10] sm:$0xff] }
 0x1bd   :  { %v3850_v39 = vpop.eup %3849  ;;  %v537_v41 = vsub.f32 1.0, %v521_v34  ;;  %v2858_v46 = vadd.f32 -1.0, %v521_v34  ;;  %v485_v42 = vadd.f32 1.0000237, %v477_v13  ;;  %v3177_v23 = vpack.c.bf16 %v1005_v20, %v1001_v22  ;;  %v1007_v29 = vld [vmem:[#allocation8 + $0x48] sm:$0xff]  ;;  %v1009_v34 = vld [vmem:[#allocation8 + $0x58] sm:$0xff] }
 0x1be   :  { %v568_v52 = vmul.f32 %v560_v37, %v280_v35  ;;  %v522_v25 = vmul.f32 %v3850_v39, %v4443_v60  ;;  %v514_v47 = vmul.f32 1.442695, %v500_v40  ;;  %v282_v60 = vmul.f32 0.5, %v4381_v56  ;;  %3146 = vmatprep.subr.bf16.mxu0 %v3145_v36  ;;  %v1006_v13 = vld [vmem:[#allocation8 + $0x40] sm:$0xff]  ;;  %v1013_v39 = vld [vmem:[#allocation8 + $0x78] sm:$0xff]  ;;  %v1044_v20 = vld [vmem:[#allocation8 + $0x170] sm:$0xff] }
 0x1bf   :  { %v553_v48 = vsel %vm529_vm3, %v537_v41, %v2858_v46  ;;  %v493_v43 = vmul.f32 %v4483_v32, %v485_v42  ;;  %v3179_v44 = vpack.c.bf16 %v1004_v26, %v1000_v27  ;;  %3178 = vmatprep.subr.bf16.mxu1 %v3177_v23  ;;  %v1010_v37 = vld [vmem:[#allocation8 + $0x60] sm:$0xff]  ;;  %v3181_v41 = vpack.c.bf16 %v1013_v39, %v1009_v34  ;;  %v1008_v46 = vld [vmem:[#allocation8 + $0x50] sm:$0xff]  ;;  %v1045_v22 = vld [vmem:[#allocation8 + $0x178] sm:$0xff] }
 0x1c0   :  { %3037 = vmatprep.mubr.f32.mxu1 %v568_v52  ;;  %v561_v49 = vadd.f32 1.0, %v553_v48  ;;  %v538_v0 = vsub.f32 1.0, %v522_v25  ;;  %v2859_v53 = vadd.f32 -1.0, %v522_v25  ;;  %3853 = vpow2.f32 %v514_v47  ;;  %v1012_v42 = vld [vmem:[#allocation8 + $0x70] sm:$0xff]  ;;  %v1015_v25 = vld [vmem:[#allocation8 + $0x88] sm:$0xff]  ;;  %v1017_v47 = vld [vmem:[#allocation8 + $0x98] sm:$0xff] }
 0x1c1   :  { %v501_v55 = vadd.f32 %v2854_v45, %v493_v43  ;;  %3180 = vmatpush1.bf16.msra.mxu1 %v3179_v44  ;;  %v3151_v40 = vpack.c.bf16 %v1010_v37, %v1006_v13  ;;  %v3183_v52 = vpack.c.bf16 %v1012_v42, %v1008_v46  ;;  %v1014_v48 = vld [vmem:[#allocation8 + $0x80] sm:$0xff]  ;;  %v1047_v23 = vld [vmem:[#allocation8 + $0x188] sm:$0xff]  ;;  %v1049_v26 = vld [vmem:[#allocation8 + $0x198] sm:$0xff] }
 0x1c2   :  { %v3852_v54 = vpop.eup %3851  ;;  %v569_v62 = vmul.f32 %v561_v49, %v281_v58  ;;  %v554_v63 = vsel %vm530_vm4, %v538_v0, %v2859_v53  ;;  %3182 = vmatprep.subr.bf16.mxu1 %v3181_v41  ;;  %v1019_v58 = vld [vmem:[#allocation8 + $0xa8] sm:$0xff]  ;;  %v1018_v43 = vld [vmem:[#allocation8 + $0xa0] sm:$0xff]  ;;  %v1021_v49 = vld [vmem:[#allocation8 + $0xb8] sm:$0xff] }
 0x1c3   :  { %v562_v3 = vadd.f32 1.0, %v554_v63  ;;  %v523_v51 = vmul.f32 %v3852_v54, %v4455_v18  ;;  %v516_v4 = vmul.f32 1.442695, %v501_v55  ;;  %v3153_v45 = vpack.c.bf16 %v1019_v58, %v1015_v25  ;;  %v1016_v54 = vld [vmem:[#allocation8 + $0x90] sm:$0xff]  ;;  %v1023_v63 = vld [vmem:[#allocation8 + $0xc8] sm:$0xff]  ;;  %v1038_v24 = vld [vmem:[#allocation8 + $0x140] sm:$0xff] }
 0x1c4   :  { %3038 = vmatmul.mubr.f32.gmra.mrb[2].mxu1 %v569_v62  ;;  %v3155_v0 = vpack.c.bf16 %v1018_v43, %v1014_v48  ;;  %v3185_v53 = vpack.c.bf16 %v1021_v49, %v1017_v47  ;;  %v1020_v55 = vld [vmem:[#allocation8 + $0xb0] sm:$0xff]  ;;  %v1042_v21 = vld [vmem:[#allocation8 + $0x160] sm:$0xff]  ;;  %v1051_v27 = vld [vmem:[#allocation8 + $0x1a8] sm:$0xff] }
 0x1c5   :  { %v570_v5 = vmul.f32 %v562_v3, %v282_v60  ;;  %v539_v6 = vsub.f32 1.0, %v523_v51  ;;  %v2860_v31 = vadd.f32 -1.0, %v523_v51  ;;  %3855 = vpow2.f32 %v516_v4  ;;  %3184 = vmatpush1.bf16.msra.mxu1 %v3183_v52  ;;  %v1027_v60 = vld [vmem:[#allocation8 + $0xe8] sm:$0xff]  ;;  %v1025_v3 = vld [vmem:[#allocation8 + $0xd8] sm:$0xff]  ;;  %v1022_v4 = vld [vmem:[#allocation8 + $0xc0] sm:$0xff] }
 0x1c6   :  { %v3187_v62 = vpack.c.bf16 %v1020_v55, %v1016_v54  ;;  %3186 = vmatprep.subr.bf16.mxu1 %v3185_v53  ;;  %v3157_v51 = vpack.c.bf16 %v1027_v60, %v1023_v63  ;;  %v3167_v36 = vpack.c.bf16 %v1042_v21, %v1038_v24  ;;  %v3169_v44 = vpack.c.bf16 %v1051_v27, %v1047_v23  ;;  %v1053_v34 = vld [vmem:[#allocation8 + $0x1b8] sm:$0xff]  ;;  %v1048_v37 = vld [vmem:[#allocation8 + $0x190] sm:$0xff]  ;;  %v1055_v41 = vld [vmem:[#allocation8 + $0x1c8] sm:$0xff] }
 0x1c7   :  { %3040 = vmatprep.mubr.f32.mxu1 %v570_v5  ;;  %v555_v61 = vsel %vm531_vm5, %v539_v6, %v2860_v31  ;;  %v1026_v5 = vld [vmem:[#allocation8 + $0xe0] sm:$0xff]  ;;  %v1029_v6 = vld [vmem:[#allocation8 + $0xf8] sm:$0xff]  ;;  %v3201_v13 = vpack.c.bf16 %v1053_v34, %v1049_v26  ;;  %v1052_v39 = vld [vmem:[#allocation8 + $0x1b0] sm:$0xff]  ;;  %v4193_v60 = vmov 0.0  }
 0x1c8   :  { %v563_v10 = vadd.f32 1.0, %v555_v61  ;;  %v3159_v31 = vpack.c.bf16 %v1026_v5, %v1022_v4  ;;  %v3189_v61 = vpack.c.bf16 %v1029_v6, %v1025_v3  ;;  %v1059_v46 = vld [vmem:[#allocation8 + $0x1e8] sm:$0xff]  ;;  %v1057_v42 = vld [vmem:[#allocation8 + $0x1d8] sm:$0xff]  ;;  %v1054_v25 = vld [vmem:[#allocation8 + $0x1c0] sm:$0xff]  ;;  %1148 = vmatprep.mubr.f32.mxu0 %v4193_v60 }
 0x1c9   :  { %3188 = vmatpush1.bf16.msra.mxu1 %v3187_v62  ;;  %v3173_v52 = vpack.c.bf16 %v1059_v46, %v1055_v41  ;;  %v1058_v58 = vld [vmem:[#allocation8 + $0x1e0] sm:$0xff]  ;;  %v1061_v47 = vld [vmem:[#allocation8 + $0x1f8] sm:$0xff]  ;;  %v1056_v43 = vld [vmem:[#allocation8 + $0x1d0] sm:$0xff] }
 0x1ca   :  { %v571_v12 = vmul.f32 %v563_v10, %v283_v9  ;;  %v3854_v14 = vpop.eup %3853  ;;  %v1024_v9 = vld [vmem:[#allocation8 + $0xd0] sm:$0xff]  ;;  %3190 = vmatprep.subr.bf16.mxu1 %v3189_v61  ;;  %v3205_v48 = vpack.c.bf16 %v1061_v47, %v1057_v42  ;;  %v1311_v53 = vld [vmem:[#allocation10 + $0x8] sm:$0xff]  ;;  %v1313_v55 = vld [vmem:[#allocation10 + $0x18] sm:$0xff] }
 0x1cb   :  { %v524_v56 = vmul.f32 %v3854_v14, %v4468_v57  ;;  %v285_v57 = vmul.f32 0.5, %v4422_v30  ;;  %v1011_v30 = vld [vmem:[#allocation8 + $0x68] sm:$0xff]  ;;  %v1028_v10 = vld [vmem:[#allocation8 + $0xf0] sm:$0xff]  ;;  %v1317_v63 = vld [vmem:[#allocation10 + $0x38] sm:$0xff] }
 0x1cc   :  { %3041 = vmatmul.mubr.f32.gmra.mrb[4].mxu1 %v571_v12  ;;  %v3149_v35 = vpack.c.bf16 %v1011_v30, %v1007_v29  ;;  %v3191_v12 = vpack.c.bf16 %v1028_v10, %v1024_v9  ;;  %v1031_v14 = vld [vmem:[#allocation8 + $0x108] sm:$0xff]  ;;  %v1046_v29 = vld [vmem:[#allocation8 + $0x180] sm:$0xff]  ;;  %v1060_v49 = vld [vmem:[#allocation8 + $0x1f0] sm:$0xff]  ;;  %v4562_v3 = vpack.c.bf16 %v1317_v63, %v1313_v55 }
 0x1cd   :  { %v540_v11 = vsub.f32 1.0, %v524_v56  ;;  %v2861_v18 = vadd.f32 -1.0, %v524_v56  ;;  %v1035_v56 = vld [vmem:[#allocation8 + $0x128] sm:$0xff]  ;;  %v1050_v30 = vld [vmem:[#allocation8 + $0x1a0] sm:$0xff] }
 0x1ce   :  { %3192 = vmatpush1.bf16.msra.mxu1 %v3191_v12  ;;  %v1315_v54 = vld [vmem:[#allocation10 + $0x28] sm:$0xff] }
 0x1cf   :  { %v3856_v15 = vpop.eup %3855  ;;  %v556_v16 = vsel %vm532_vm6, %v540_v11, %v2861_v18  ;;  %v1033_v11 = vld [vmem:[#allocation8 + $0x118] sm:$0xff]  ;;  %v3161_v18 = vpack.c.bf16 %v1035_v56, %v1031_v14  ;;  %v4558_v62 = vpack.c.bf16 %v1315_v54, %v1311_v53 }
 0x1d0   :  { %v564_v8 = vadd.f32 1.0, %v556_v16  ;;  %v525_v50 = vmul.f32 %v3856_v15, %v4483_v32  ;;  %v3147_v32 = vpack.c.bf16 %v1002_v59, %v998_v17  ;;  %v1030_v15 = vld [vmem:[#allocation8 + $0x100] sm:$0xff]  ;;  %v1040_v59 = vld [vmem:[#allocation8 + $0x150] sm:$0xff] }
 0x1d1   :  { %v1034_v16 = vld [vmem:[#allocation8 + $0x120] sm:$0xff] }
 0x1d2   :  { %v572_v7 = vmul.f32 %v564_v8, %v284_v28  ;;  %v541_v19 = vsub.f32 1.0, %v525_v50  ;;  %v2862_v2 = vadd.f32 -1.0, %v525_v50  ;;  %3148 = vmatpush1.bf16.msra.mxu0 %v3147_v32  ;;  %v1037_v28 = vld [vmem:[#allocation8 + $0x138] sm:$0xff]  ;;  %v3163_v8 = vpack.c.bf16 %v1034_v16, %v1030_v15 }
 0x1d3   :  { %3150 = vmatprep.subr.bf16.mxu0 %v3149_v35  ;;  %v3193_v50 = vpack.c.bf16 %v1037_v28, %v1033_v11  ;;  %v3199_v32 = vpack.c.bf16 %v1044_v20, %v1040_v59  ;;  %v3171_v35 = vpack.c.bf16 %v1050_v30, %v1046_v29 }
 0x1d4   :  { %3043 = vmatprep.mubr.f32.mxu1 %v572_v7  ;;  %v557_v38 = vsel %vm533_vm7, %v541_v19, %v2862_v2  ;;  %v1032_v7 = vld [vmem:[#allocation8 + $0x110] sm:$0xff] }
 0x1d5   :  { %v565_v33 = vadd.f32 1.0, %v557_v38  ;;  %v1036_v19 = vld [vmem:[#allocation8 + $0x130] sm:$0xff]  ;;  %3194 = vmatprep.subr.bf16.mxu1 %v3193_v50  ;;  %v1039_v38 = vld [vmem:[#allocation8 + $0x148] sm:$0xff] }
 0x1d6   :  { %3152 = vmatpush1.bf16.msra.mxu0 %v3151_v40  ;;  %v3195_v2 = vpack.c.bf16 %v1036_v19, %v1032_v7  ;;  %v3203_v40 = vpack.c.bf16 %v1052_v39, %v1048_v37 }
 0x1d7   :  { %v573_v1 = vmul.f32 %v565_v33, %v285_v57  ;;  %3154 = vmatprep.subr.bf16.mxu0 %v3153_v45  ;;  %v1043_v57 = vld [vmem:[#allocation8 + $0x168] sm:$0xff]  ;;  %v1041_v33 = vld [vmem:[#allocation8 + $0x158] sm:$0xff]  ;;  %v3175_v45 = vpack.c.bf16 %v1058_v58, %v1054_v25 }
 0x1d8   :  { %3196 = vmatpush1.bf16.msra.mxu1 %v3195_v2  ;;  %v3197_v17 = vpack.c.bf16 %v1045_v22, %v1041_v33 }
 0x1d9   :  { %3044 = vmatmul.mubr.f32.gmra.mrb[6].mxu1 %v573_v1  ;;  %v3165_v1 = vpack.c.bf16 %v1043_v57, %v1039_v38 }
 0x1da   :  { %3156 = vmatpush1.bf16.msra.mxu0 %v3155_v0  ;;  %3198 = vmatprep.subr.bf16.mxu1 %v3197_v17  ;;  %v3207_v0 = vpack.c.bf16 %v1060_v49, %v1056_v43 }
 0x1db   :  { %3158 = vmatprep.subr.bf16.mxu0 %v3157_v51  ;;  %1261 = vmatprep.mubr.f32.mxu1 %v4193_v60  ;;  %v4569_v51 = vld [vmem:[%s5216_s4] ss:$0 sm:$0xff] }
 0x1dc   :  { %3200 = vmatpush1.bf16.msra.mxu1 %v3199_v32 }
 0x1dd   :  { %3202 = vmatprep.subr.bf16.mxu1 %v3201_v13 }
 0x1de   :  { %3160 = vmatpush1.bf16.msra.mxu0 %v3159_v31 }
 0x1df   :  { %3162 = vmatprep.subr.bf16.mxu0 %v3161_v18 }
 0x1e0   :  { %3204 = vmatpush1.bf16.msra.mxu1 %v3203_v40 }
 0x1e1   :  { %3206 = vmatprep.subr.bf16.mxu1 %v3205_v48 }
 0x1e2   :  { %3164 = vmatpush1.bf16.msra.mxu0 %v3163_v8 }
 0x1e3   :  { %3166 = vmatprep.subr.bf16.mxu0 %v3165_v1 }
 0x1e4   :  { %3208 = vmatpush1.bf16.msra.mxu1 %v3207_v0 }
 0x1e5   :  { %3242 = vmatprep.subr.bf16.mxu1 %v4562_v3 }
 0x1e6   :  { %3168 = vmatpush1.bf16.msra.mxu0 %v3167_v36 }
 0x1e7   :  { %3170 = vmatprep.subr.bf16.mxu0 %v3169_v44 }
 0x1ea   :  { %3172 = vmatpush1.bf16.msra.mxu0 %v3171_v35 }
 0x1eb   :  { %3174 = vmatprep.subr.bf16.mxu0 %v3173_v52 }
 0x1ee   :  { %3176 = vmatpush1.bf16.msra.mxu0 %v3175_v45 }
 0x1ef   :  { %3210 = vmatprep.subr.bf16.mxu0 %v4558_v62 }
 0x28e   :  { %v3036_v4 = vpop.f32.mrb[0].mxu1 }
 0x28f   :  { %v4572_v5 = vadd.f32 %v3036_v4, %v4569_v51  ;;  %v663_v6 = vpop.f32.mrb[1].mxu1 }
 0x290   :  { %v4575_v31 = vadd.f32 %v4569_v51, %v663_v6 }
 0x291   :  { %v4578_v61 = vmul.f32 0.70710677, %v4572_v5 }
 0x292   :  { %v4581_v9 = vmul.f32 0.70710677, %v4575_v31 }
 0x293   :  { %v719_v10 = vand.u32 2147483647, %v4578_v61  ;;  %vm951_vm8 = vcmp.ge.f32.partialorder %v4578_v61, 0.0 }
 0x294   :  { %v4585_v12 = vand.u32 2147483647, %v4581_v9  ;;  %vm950_vm9 = vcmp.ge.f32.partialorder %v4581_v9, 0.0 }
 0x295   :  { %v727_v14 = vmul.f32 0.5, %v719_v10  ;;  %v759_v42 = vsub.f32 0.0, %v719_v10 }
 0x296   :  { %v726_v56 = vmul.f32 0.5, %v4585_v12  ;;  %v758_v63 = vsub.f32 0.0, %v4585_v12 }
 0x297   :  { %v3039_v11 = vpop.f32.mrb[2].mxu1  ;;  %v735_v18 = vadd.f32 1.0, %v727_v14  ;;  %v767_v55 = vmul.f32 %v759_v42, %v719_v10 }
 0x298   :  { %v4589_v15 = vadd.f32 %v3039_v11, %v4569_v51  ;;  %v673_v16 = vpop.f32.mrb[3].mxu1  ;;  %v734_v28 = vadd.f32 1.0, %v726_v56 }
 0x299   :  { %v4592_v8 = vadd.f32 %v4569_v51, %v673_v16  ;;  %3857 = vrcp.f32 %v735_v18 }
 0x29a   :  { %v4595_v50 = vmul.f32 0.70710677, %v4589_v15  ;;  %3859 = vrcp.f32 %v734_v28 }
 0x29b   :  { %v4598_v7 = vmul.f32 0.70710677, %v4592_v8 }
 0x29c   :  { %v4601_v19 = vand.u32 2147483647, %v4595_v50  ;;  %vm953_vm10 = vcmp.ge.f32.partialorder %v4595_v50, 0.0 }
 0x29d   :  { %v4604_v2 = vand.u32 2147483647, %v4598_v7  ;;  %vm952_vm11 = vcmp.ge.f32.partialorder %v4598_v7, 0.0 }
 0x29e   :  { %v729_v38 = vmul.f32 0.5, %v4601_v19 }
 0x29f   :  { %v728_v57 = vmul.f32 0.5, %v4604_v2  ;;  %v3042_v33 = vpop.f32.mrb[4].mxu1 }
 0x2a0   :  { %v737_v1 = vadd.f32 1.0, %v729_v38  ;;  %v4609_v24 = vadd.f32 %v3042_v33, %v4569_v51  ;;  %v683_v21 = vpop.f32.mrb[5].mxu1 }
 0x2a1   :  { %v736_v22 = vadd.f32 1.0, %v728_v57  ;;  %v4612_v36 = vadd.f32 %v4569_v51, %v683_v21  ;;  %v766_v21 = vmul.f32 %v758_v63, %v4585_v12 }
 0x2a2   :  { %3861 = vrcp.f32 %v737_v1  ;;  %v4615_v17 = vmul.f32 0.70710677, %v4609_v24  ;;  %v4663_v1 = vadd.f32 -1.2655122, %v767_v55 }
 0x2a3   :  { %3863 = vrcp.f32 %v736_v22  ;;  %v4618_v59 = vmul.f32 0.70710677, %v4612_v36  ;;  %v4620_v20 = vpop.eup %3857 }
 0x2a4   :  { %v4623_v32 = vand.u32 2147483647, %v4615_v17  ;;  %v4625_v23 = vpop.eup %3859  ;;  %v783_v27 = vmul.f32 0.17087276, %v4620_v20  ;;  %vm955_vm12 = vcmp.ge.f32.partialorder %v4615_v17, 0.0 }
 0x2a5   :  { %v4629_v26 = vand.u32 2147483647, %v4618_v59  ;;  %v782_v44 = vmul.f32 0.17087276, %v4625_v23  ;;  %vm954_vm13 = vcmp.ge.f32.partialorder %v4618_v59, 0.0  ;;  %v1355_v59 = vld [vmem:[#allocation10 + $0x168] sm:$0xff] }
 0x2a6   :  { %v731_v29 = vmul.f32 0.5, %v4623_v32  ;;  %v791_v30 = vadd.f32 -0.82215226, %v783_v27 }
 0x2a7   :  { %v730_v34 = vmul.f32 0.5, %v4629_v26  ;;  %v790_v35 = vadd.f32 -0.82215226, %v782_v44 }
 0x2a8   :  { %v739_v13 = vadd.f32 1.0, %v731_v29  ;;  %v799_v37 = vmul.f32 %v4620_v20, %v791_v30 }
 0x2a9   :  { %v738_v39 = vadd.f32 1.0, %v730_v34  ;;  %v798_v40 = vmul.f32 %v4625_v23, %v790_v35 }
 0x2aa   :  { %3865 = vrcp.f32 %v739_v13  ;;  %v807_v41 = vadd.f32 1.4885159, %v799_v37 }
 0x2ab   :  { %3867 = vrcp.f32 %v738_v39  ;;  %v806_v52 = vadd.f32 1.4885159, %v798_v40 }
 0x2ac   :  { %v4636_v46 = vpop.eup %3861  ;;  %v815_v58 = vmul.f32 %v4620_v20, %v807_v41  ;;  %v3045_v45 = vpop.f32.mrb[6].mxu1 }
 0x2ad   :  { %v4638_v25 = vpop.eup %3863  ;;  %v785_v47 = vmul.f32 0.17087276, %v4636_v46  ;;  %v814_v48 = vmul.f32 %v4625_v23, %v806_v52  ;;  %v4645_v49 = vadd.f32 %v3045_v45, %v4569_v51  ;;  %v693_v0 = vpop.f32.mrb[7].mxu1 }
 0x2ae   :  { %v784_v43 = vmul.f32 0.17087276, %v4638_v25  ;;  %v823_v53 = vadd.f32 -1.135204, %v815_v58  ;;  %v4656_v28 = vadd.f32 %v4569_v51, %v693_v0  ;;  %v2864_v0 = vadd.f32 -1.2655122, %v766_v21 }
 0x2af   :  { %v793_v54 = vadd.f32 -0.82215226, %v785_v47  ;;  %v822_v4 = vadd.f32 -1.135204, %v814_v48  ;;  %v4651_v11 = vmul.f32 0.70710677, %v4645_v49 }
 0x2b0   :  { %v792_v6 = vadd.f32 -0.82215226, %v784_v43  ;;  %v831_v14 = vmul.f32 %v4620_v20, %v823_v53  ;;  %v4676_v12 = vmul.f32 0.70710677, %v4656_v28 }
 0x2b1   :  { %v801_v56 = vmul.f32 %v4636_v46, %v793_v54  ;;  %v830_v18 = vmul.f32 %v4625_v23, %v822_v4  ;;  %v4659_v57 = vand.u32 2147483647, %v4651_v11  ;;  %vm957_vm14 = vcmp.ge.f32.partialorder %v4651_v11, 0.0 }
 0x2b2   :  { %v800_v16 = vmul.f32 %v4638_v25, %v792_v6  ;;  %v839_v38 = vadd.f32 0.27886808, %v831_v14  ;;  %v4688_v21 = vand.u32 2147483647, %v4676_v12  ;;  %vm956_vm15 = vcmp.ge.f32.partialorder %v4676_v12, 0.0 }
 0x2b3   :  { %v809_v10 = vadd.f32 1.4885159, %v801_v56  ;;  %v838_v22 = vadd.f32 0.27886808, %v830_v18  ;;  %v733_v34 = vmul.f32 0.5, %v4659_v57 }
 0x2b4   :  { %v4661_v33 = vpop.eup %3865  ;;  %v808_v27 = vadd.f32 1.4885159, %v800_v16  ;;  %v847_v29 = vmul.f32 %v4620_v20, %v839_v38 }
 0x2b5   :  { %v4666_v44 = vpop.eup %3867  ;;  %v817_v51 = vmul.f32 %v4636_v46, %v809_v10  ;;  %v787_v30 = vmul.f32 0.17087276, %v4661_v33  ;;  %v846_v35 = vmul.f32 %v4625_v23, %v838_v22  ;;  %v741_v43 = vadd.f32 1.0, %v733_v34  ;;  %v1314_v34 = vld [vmem:[#allocation10 + $0x20] sm:$0xff] }
 0x2b6   :  { %v816_v13 = vmul.f32 %v4638_v25, %v808_v27  ;;  %v786_v37 = vmul.f32 0.17087276, %v4666_v44  ;;  %v855_v39 = vadd.f32 -0.18628806, %v847_v29  ;;  %v761_v27 = vsub.f32 0.0, %v4601_v19 }
 0x2b7   :  { %v825_v40 = vadd.f32 -1.135204, %v817_v51  ;;  %v795_v41 = vadd.f32 -0.82215226, %v787_v30  ;;  %v854_v42 = vadd.f32 -0.18628806, %v846_v35  ;;  %3869 = vrcp.f32 %v741_v43 }
 0x2b8   :  { %v824_v52 = vadd.f32 -1.135204, %v816_v13  ;;  %v794_v58 = vadd.f32 -0.82215226, %v786_v37  ;;  %v863_v47 = vmul.f32 %v4620_v20, %v855_v39  ;;  %v1310_v30 = vld [vmem:[#allocation10] sm:$0xff] }
 0x2b9   :  { %v833_v45 = vmul.f32 %v4636_v46, %v825_v40  ;;  %v803_v48 = vmul.f32 %v4661_v33, %v795_v41  ;;  %v862_v53 = vmul.f32 %v4625_v23, %v854_v42 }
 0x2ba   :  { %v832_v54 = vmul.f32 %v4638_v25, %v824_v52  ;;  %v802_v55 = vmul.f32 %v4666_v44, %v794_v58  ;;  %v871_v63 = vadd.f32 0.09678418, %v863_v47  ;;  %v732_v47 = vmul.f32 0.5, %v4688_v21 }
 0x2bb   :  { %v841_v4 = vadd.f32 0.27886808, %v833_v45  ;;  %v811_v6 = vadd.f32 1.4885159, %v803_v48  ;;  %v870_v14 = vadd.f32 0.09678418, %v862_v53 }
 0x2bc   :  { %v840_v56 = vadd.f32 0.27886808, %v832_v54  ;;  %v810_v18 = vadd.f32 1.4885159, %v802_v55  ;;  %v879_v16 = vmul.f32 %v4620_v20, %v871_v63  ;;  %v760_v48 = vsub.f32 0.0, %v4604_v2 }
 0x2bd   :  { %v849_v38 = vmul.f32 %v4636_v46, %v841_v4  ;;  %v819_v10 = vmul.f32 %v4661_v33, %v811_v6  ;;  %v878_v22 = vmul.f32 %v4625_v23, %v870_v14  ;;  %v4702_v4 = vpack.c.bf16 %v1314_v34, %v1310_v30 }
 0x2be   :  { %v848_v29 = vmul.f32 %v4638_v25, %v840_v56  ;;  %v818_v51 = vmul.f32 %v4666_v44, %v810_v18  ;;  %v887_v35 = vadd.f32 0.37409195, %v879_v16  ;;  %v769_v14 = vmul.f32 %v761_v27, %v4601_v19 }
 0x2bf   :  { %v857_v13 = vadd.f32 -0.18628806, %v849_v38  ;;  %v827_v37 = vadd.f32 -1.135204, %v819_v10  ;;  %v886_v39 = vadd.f32 0.37409195, %v878_v22 }
 0x2c0   :  { %v856_v40 = vadd.f32 -0.18628806, %v848_v29  ;;  %v826_v41 = vadd.f32 -1.135204, %v818_v51  ;;  %v895_v42 = vmul.f32 %v4620_v20, %v887_v35  ;;  %v740_v29 = vadd.f32 1.0, %v732_v47 }
 0x2c1   :  { %v865_v52 = vmul.f32 %v4636_v46, %v857_v13  ;;  %v835_v58 = vmul.f32 %v4661_v33, %v827_v37  ;;  %v894_v45 = vmul.f32 %v4625_v23, %v886_v39  ;;  %v4705_v16 = vpop.eup %3869 }
 0x2c2   :  { %v864_v43 = vmul.f32 %v4638_v25, %v856_v40  ;;  %v834_v53 = vmul.f32 %v4666_v44, %v826_v41  ;;  %v903_v54 = vadd.f32 1.0000237, %v895_v42  ;;  %v789_v34 = vmul.f32 0.17087276, %v4705_v16 }
 0x2c3   :  { %v873_v55 = vadd.f32 0.09678418, %v865_v52  ;;  %v843_v63 = vadd.f32 0.27886808, %v835_v58  ;;  %v902_v6 = vadd.f32 1.0000237, %v894_v45  ;;  %3871 = vrcp.f32 %v740_v29 }
 0x2c4   :  { %v872_v56 = vadd.f32 0.09678418, %v864_v43  ;;  %v842_v18 = vadd.f32 0.27886808, %v834_v53  ;;  %v911_v38 = vmul.f32 %v4620_v20, %v903_v54  ;;  %v797_v41 = vadd.f32 -0.82215226, %v789_v34 }
 0x2c5   :  { %v881_v10 = vmul.f32 %v4636_v46, %v873_v55  ;;  %v851_v22 = vmul.f32 %v4661_v33, %v843_v63  ;;  %v910_v51 = vmul.f32 %v4625_v23, %v902_v6  ;;  %v768_v58 = vmul.f32 %v760_v48, %v4604_v2  ;;  %v1312_v54 = vld [vmem:[#allocation10 + $0x10] sm:$0xff]  ;;  %v1323_v63 = vld [vmem:[#allocation10 + $0x68] sm:$0xff] }
 0x2c6   :  { %v880_v35 = vmul.f32 %v4638_v25, %v872_v56  ;;  %v850_v30 = vmul.f32 %v4666_v44, %v842_v18  ;;  %v919_v19 = vadd.f32 %v4663_v1, %v911_v38  ;;  %v805_v1 = vmul.f32 %v4705_v16, %v797_v41  ;;  %v1316_v55 = vld [vmem:[#allocation10 + $0x30] sm:$0xff]  ;;  %v1321_v41 = vld [vmem:[#allocation10 + $0x58] sm:$0xff] }
 0x2c7   :  { %v889_v27 = vadd.f32 0.37409195, %v881_v10  ;;  %v859_v13 = vadd.f32 -0.18628806, %v851_v22  ;;  %v918_v37 = vadd.f32 %v2864_v0, %v910_v51  ;;  %v1319_v0 = vld [vmem:[#allocation10 + $0x48] sm:$0xff]  ;;  %v763_v22 = vsub.f32 0.0, %v4623_v32 }
 0x2c8   :  { %v888_v39 = vadd.f32 0.37409195, %v880_v35  ;;  %v858_v40 = vadd.f32 -0.18628806, %v850_v30  ;;  %v928_v42 = vmul.f32 1.442695, %v919_v19 }
 0x2c9   :  { %v897_v52 = vmul.f32 %v4636_v46, %v889_v27  ;;  %v867_v47 = vmul.f32 %v4661_v33, %v859_v13  ;;  %v926_v45 = vmul.f32 1.442695, %v918_v37  ;;  %v2867_v6 = vadd.f32 -1.2655122, %v769_v14  ;;  %v1318_v35 = vld [vmem:[#allocation10 + $0x40] sm:$0xff] }
 0x2ca   :  { %v896_v43 = vmul.f32 %v4638_v25, %v888_v39  ;;  %v866_v53 = vmul.f32 %v4666_v44, %v858_v40  ;;  %3873 = vpow2.f32 %v928_v42  ;;  %v813_v48 = vadd.f32 1.4885159, %v805_v1  ;;  %v1322_v30 = vld [vmem:[#allocation10 + $0x60] sm:$0xff]  ;;  %v1325_v42 = vld [vmem:[#allocation10 + $0x78] sm:$0xff] }
 0x2cb   :  { %v905_v56 = vadd.f32 1.0000237, %v897_v52  ;;  %v875_v18 = vadd.f32 0.09678418, %v867_v47  ;;  %3875 = vpow2.f32 %v926_v45  ;;  %v762_v51 = vsub.f32 0.0, %v4629_v26 }
 0x2cc   :  { %v904_v38 = vadd.f32 1.0000237, %v896_v43  ;;  %v874_v2 = vadd.f32 0.09678418, %v866_v53  ;;  %v2866_v34 = vadd.f32 -1.2655122, %v768_v58  ;;  %v821_v27 = vmul.f32 %v4705_v16, %v813_v48 }
 0x2cd   :  { %v913_v10 = vmul.f32 %v4636_v46, %v905_v56  ;;  %v883_v29 = vmul.f32 %v4661_v33, %v875_v18  ;;  %v4728_v39 = vpack.c.bf16 %v1316_v55, %v1312_v54  ;;  %v4730_v40 = vpack.c.bf16 %v1323_v63, %v1319_v0  ;;  %v1320_v58 = vld [vmem:[#allocation10 + $0x50] sm:$0xff]  ;;  %v4734_v1 = vpop.eup %3871  ;;  %v1331_v48 = vld [vmem:[#allocation10 + $0xa8] sm:$0xff] }
 0x2ce   :  { %v912_v19 = vmul.f32 %v4638_v25, %v904_v38  ;;  %v882_v14 = vmul.f32 %v4666_v44, %v874_v2  ;;  %v829_v45 = vadd.f32 -1.135204, %v821_v27  ;;  %v4732_v43 = vpack.c.bf16 %v1322_v30, %v1318_v35  ;;  %v1324_v53 = vld [vmem:[#allocation10 + $0x70] sm:$0xff]  ;;  %v1327_v2 = vld [vmem:[#allocation10 + $0x88] sm:$0xff] }
 0x2cf   :  { %v921_v13 = vadd.f32 %v2867_v6, %v913_v10  ;;  %v891_v37 = vadd.f32 0.37409195, %v883_v29  ;;  %v771_v18 = vmul.f32 %v763_v22, %v4623_v32  ;;  %v770_v54 = vmul.f32 %v762_v51, %v4629_v26  ;;  %v1326_v32 = vld [vmem:[#allocation10 + $0x80] sm:$0xff] }
 0x2d0   :  { %v920_v52 = vadd.f32 %v2866_v34, %v912_v19  ;;  %v890_v47 = vadd.f32 0.37409195, %v882_v14  ;;  %v837_v63 = vmul.f32 %v4705_v16, %v829_v45  ;;  %v788_v38 = vmul.f32 0.17087276, %v4734_v1  ;;  %v1330_v22 = vld [vmem:[#allocation10 + $0xa0] sm:$0xff] }
 0x2d1   :  { %v932_v56 = vmul.f32 1.442695, %v921_v13  ;;  %v899_v6 = vmul.f32 %v4661_v33, %v891_v37  ;;  %v4742_v29 = vpack.c.bf16 %v1325_v42, %v1321_v41  ;;  %v4744_v35 = vpack.c.bf16 %v1324_v53, %v1320_v58 }
 0x2d2   :  { %v930_v55 = vmul.f32 1.442695, %v920_v52  ;;  %v898_v0 = vmul.f32 %v4666_v44, %v890_v47  ;;  %v845_v26 = vadd.f32 0.27886808, %v837_v63  ;;  %v796_v51 = vadd.f32 -0.82215226, %v788_v38 }
 0x2d3   :  { %3877 = vpow2.f32 %v932_v56  ;;  %v907_v10 = vadd.f32 1.0000237, %v899_v6  ;;  %v2869_v19 = vadd.f32 -1.2655122, %v771_v18  ;;  %v2868_v27 = vadd.f32 -1.2655122, %v770_v54 }
 0x2d4   :  { %3879 = vpow2.f32 %v930_v55  ;;  %v906_v30 = vadd.f32 1.0000237, %v898_v0  ;;  %v3874_v34 = vpop.eup %3873  ;;  %v4747_v13 = vpack.c.bf16 %v1331_v48, %v1327_v2  ;;  %v853_v41 = vmul.f32 %v4705_v16, %v845_v26  ;;  %v1328_v26 = vld [vmem:[#allocation10 + $0x90] sm:$0xff] }
 0x2d5   :  { %v915_v14 = vmul.f32 %v4661_v33, %v907_v10  ;;  %v3876_v37 = vpop.eup %3875  ;;  %v804_v42 = vmul.f32 %v4734_v1, %v796_v51  ;;  %v943_v47 = vmul.f32 %v3874_v34, %v4620_v20  ;;  %v4755_v53 = vpack.c.bf16 %v1330_v22, %v1326_v32  ;;  %v1329_v10 = vld [vmem:[#allocation10 + $0x98] sm:$0xff]  ;;  %v1332_v51 = vld [vmem:[#allocation10 + $0xb0] sm:$0xff]  ;;  %v1335_v34 = vld [vmem:[#allocation10 + $0xc8] sm:$0xff] }
 0x2d6   :  { %v914_v52 = vmul.f32 %v4666_v44, %v906_v30  ;;  %v942_v45 = vmul.f32 %v3876_v37, %v4625_v23  ;;  %v861_v18 = vadd.f32 -0.18628806, %v853_v41  ;;  %v1333_v23 = vld [vmem:[#allocation10 + $0xb8] sm:$0xff]  ;;  %v702_v32 = vmul.f32 0.5, %v4575_v31 }
 0x2d7   :  { %v923_v58 = vadd.f32 %v2869_v19, %v915_v14  ;;  %v812_v6 = vadd.f32 1.4885159, %v804_v42  ;;  %v959_v54 = vsub.f32 1.0, %v943_v47  ;;  %v2873_v38 = vadd.f32 -1.0, %v943_v47 }
 0x2d8   :  { %v922_v56 = vadd.f32 %v2868_v27, %v914_v52  ;;  %v958_v55 = vsub.f32 1.0, %v942_v45  ;;  %v2872_v0 = vadd.f32 -1.0, %v942_v45  ;;  %v869_v20 = vmul.f32 %v4705_v16, %v861_v18  ;;  %v1339_v27 = vld [vmem:[#allocation10 + $0xe8] sm:$0xff] }
 0x2d9   :  { %v936_v63 = vmul.f32 1.442695, %v923_v58  ;;  %v820_v48 = vmul.f32 %v4734_v1, %v812_v6  ;;  %v975_v30 = vsel %vm951_vm8, %v959_v54, %v2873_v38  ;;  %v703_v52 = vmul.f32 0.5, %v4572_v5  ;;  %v1334_v5 = vld [vmem:[#allocation10 + $0xc0] sm:$0xff] }
 0x2da   :  { %v934_v2 = vmul.f32 1.442695, %v922_v56  ;;  %v974_v22 = vsel %vm950_vm9, %v958_v55, %v2872_v0  ;;  %v877_v9 = vadd.f32 0.09678418, %v869_v20  ;;  %v765_v41 = vsub.f32 0.0, %v4659_v57  ;;  %v1338_v0 = vld [vmem:[#allocation10 + $0xe0] sm:$0xff] }
 0x2db   :  { %3881 = vpow2.f32 %v936_v63  ;;  %v982_v19 = vadd.f32 1.0, %v974_v22  ;;  %v828_v14 = vadd.f32 -1.135204, %v820_v48  ;;  %v983_v42 = vadd.f32 1.0, %v975_v30  ;;  %v1341_v22 = vld [vmem:[#allocation10 + $0xf8] sm:$0xff]  ;;  %v1340_v30 = vld [vmem:[#allocation10 + $0xf0] sm:$0xff] }
 0x2dc   :  { %3883 = vpow2.f32 %v934_v2  ;;  %v4765_v31 = vpack.c.bf16 %v1333_v23, %v1329_v10  ;;  %v885_v61 = vmul.f32 %v4705_v16, %v877_v9  ;;  %v4771_v54 = vpack.c.bf16 %v1332_v51, %v1328_v26  ;;  %v1337_v10 = vld [vmem:[#allocation10 + $0xd8] sm:$0xff]  ;;  %v1347_v9 = vld [vmem:[#allocation10 + $0x128] sm:$0xff] }
 0x2dd   :  { %v3878_v37 = vpop.eup %3877  ;;  %v990_v45 = vmul.f32 %v982_v19, %v702_v32  ;;  %v836_v58 = vmul.f32 %v4734_v1, %v828_v14  ;;  %v991_v18 = vmul.f32 %v983_v42, %v703_v52  ;;  %v4773_v55 = vpack.c.bf16 %v1339_v27, %v1335_v34  ;;  %v1343_v19 = vld [vmem:[#allocation10 + $0x108] sm:$0xff] }
 0x2de   :  { %v3880_v47 = vpop.eup %3879  ;;  %v945_v56 = vmul.f32 %v3878_v37, %v4636_v46  ;;  %v893_v63 = vadd.f32 0.37409195, %v885_v61  ;;  %v773_v48 = vmul.f32 %v765_v41, %v4659_v57  ;;  %v1336_v57 = vld [vmem:[#allocation10 + $0xd0] sm:$0xff]  ;;  %v705_v26 = vmul.f32 0.5, %v4589_v15  ;;  %v1349_v61 = vld [vmem:[#allocation10 + $0x138] sm:$0xff] }
 0x2df   :  { %v944_v6 = vmul.f32 %v3880_v47, %v4638_v25  ;;  %v844_v38 = vadd.f32 0.27886808, %v836_v58  ;;  %1149 = vmatmul.mubr.f32.vlgmr.msra.gmra.mrb[16].mxu0 %v990_v45  ;;  %1262 = vmatmul.mubr.f32.vlgmr.msra.gmra.mrb[8].mxu1 %v990_v45  ;;  %v4787_v34 = vpack.c.bf16 %v1338_v0, %v1334_v5  ;;  %v704_v14 = vmul.f32 0.5, %v4592_v8  ;;  %v1345_v45 = vld [vmem:[#allocation10 + $0x118] sm:$0xff] }
 0x2e0   :  { %v961_v2 = vsub.f32 1.0, %v945_v56  ;;  %v2875_v20 = vadd.f32 -1.0, %v945_v56  ;;  %3212 = vmatpush1.bf16.msra.mxu0 %v4702_v4  ;;  %3244 = vmatpush1.bf16.msra.mxu1 %v4728_v39  ;;  %v901_v23 = vmul.f32 %v4705_v16, %v893_v63  ;;  %v4792_v42 = vpack.c.bf16 %v1341_v22, %v1337_v10  ;;  %v1342_v10 = vld [vmem:[#allocation10 + $0x100] sm:$0xff]  ;;  %v1344_v22 = vld [vmem:[#allocation10 + $0x110] sm:$0xff] }
 0x2e1   :  { %v960_v46 = vsub.f32 1.0, %v944_v6  ;;  %v2874_v25 = vadd.f32 -1.0, %v944_v6  ;;  %v852_v32 = vmul.f32 %v4734_v1, %v844_v38  ;;  %1154 = vmatprep.mubr.f32.mxu0 %v4193_v60  ;;  %1267 = vmatprep.mubr.f32.mxu1 %v4193_v60  ;;  %v4794_v47 = vpack.c.bf16 %v1340_v30, %v1336_v57  ;;  %v1348_v57 = vld [vmem:[#allocation10 + $0x130] sm:$0xff] }
 0x2e2   :  { %v977_v50 = vsel %vm953_vm10, %v961_v2, %v2875_v20  ;;  %3214 = vmatprep.subr.bf16.mxu0 %v4730_v40  ;;  %3246 = vmatprep.subr.bf16.mxu1 %v4742_v29  ;;  %v909_v27 = vadd.f32 1.0000237, %v901_v23  ;;  %v2871_v56 = vadd.f32 -1.2655122, %v773_v48  ;;  %v4802_v5 = vpack.c.bf16 %v1347_v9, %v1343_v19  ;;  %v1346_v23 = vld [vmem:[#allocation10 + $0x120] sm:$0xff] }
 0x2e3   :  { %v976_v51 = vsel %vm952_vm11, %v960_v46, %v2874_v25  ;;  %v985_v7 = vadd.f32 1.0, %v977_v50  ;;  %v860_v37 = vadd.f32 -0.18628806, %v852_v32  ;;  %1155 = vmatmul.mubr.f32.gmra.mrb[18].mxu0 %v991_v18  ;;  %1268 = vmatmul.mubr.f32.gmra.mrb[10].mxu1 %v991_v18  ;;  %v764_v2 = vsub.f32 0.0, %v4688_v21 }
 0x2e4   :  { %v984_v52 = vadd.f32 1.0, %v976_v51  ;;  %3216 = vmatpush1.bf16.msra.mxu0 %v4732_v43  ;;  %3248 = vmatpush1.bf16.msra.mxu1 %v4744_v35  ;;  %v917_v8 = vmul.f32 %v4705_v16, %v909_v27  ;;  %v4807_v48 = vpack.c.bf16 %v1349_v61, %v1345_v45  ;;  %v707_v30 = vmul.f32 0.5, %v4609_v24  ;;  %v1351_v51 = vld [vmem:[#allocation10 + $0x148] sm:$0xff]  ;;  %v1353_v27 = vld [vmem:[#allocation10 + $0x158] sm:$0xff] }
 0x2e5   :  { %v3882_v41 = vpop.eup %3881  ;;  %v993_v15 = vmul.f32 %v985_v7, %v705_v26  ;;  %v868_v6 = vmul.f32 %v4734_v1, %v860_v37  ;;  %1160 = vmatprep.mubr.f32.mxu0 %v4193_v60  ;;  %1273 = vmatprep.mubr.f32.mxu1 %v4193_v60  ;;  %v706_v26 = vmul.f32 0.5, %v4612_v36  ;;  %v1357_v37 = vld [vmem:[#allocation10 + $0x178] sm:$0xff]  ;;  %v772_v24 = vmul.f32 %v764_v2, %v4688_v21  ;;  %v1356_v21 = vld [vmem:[#allocation10 + $0x170] sm:$0xff] }
 0x2e6   :  { %v3884_v58 = vpop.eup %3883  ;;  %v992_v18 = vmul.f32 %v984_v52, %v704_v14  ;;  %3218 = vmatprep.subr.bf16.mxu0 %v4747_v13  ;;  %3250 = vmatprep.subr.bf16.mxu1 %v4765_v31  ;;  %v947_v63 = vmul.f32 %v3882_v41, %v4661_v33  ;;  %v925_v38 = vadd.f32 %v2871_v56, %v917_v8  ;;  %v1350_v41 = vld [vmem:[#allocation10 + $0x140] sm:$0xff]  ;;  %v1352_v56 = vld [vmem:[#allocation10 + $0x150] sm:$0xff]  ;;  %v1365_v2 = vld [vmem:[#allocation10 + $0x1b8] sm:$0xff] }
 0x2e7   :  { %v946_v0 = vmul.f32 %v3884_v58, %v4666_v44  ;;  %v876_v20 = vadd.f32 0.09678418, %v868_v6  ;;  %v4823_v36 = vpack.c.bf16 %v1346_v23, %v1342_v10  ;;  %v4825_v52 = vpack.c.bf16 %v1348_v57, %v1344_v22  ;;  %v1354_v58 = vld [vmem:[#allocation10 + $0x160] sm:$0xff] }
 0x2e8   :  { %1161 = vmatmul.mubr.f32.gmra.mrb[20].mxu0 %v992_v18  ;;  %1274 = vmatmul.mubr.f32.gmra.mrb[12].mxu1 %v992_v18  ;;  %v963_v32 = vsub.f32 1.0, %v947_v63  ;;  %v2877_v44 = vadd.f32 -1.0, %v947_v63  ;;  %v940_v33 = vmul.f32 1.442695, %v925_v38  ;;  %v4832_v8 = vpack.c.bf16 %v1355_v59, %v1351_v51  ;;  %v1359_v18 = vld [vmem:[#allocation10 + $0x188] sm:$0xff]  ;;  %v1361_v38 = vld [vmem:[#allocation10 + $0x198] sm:$0xff] }
 0x2e9   :  { %3220 = vmatpush1.bf16.msra.mxu0 %v4755_v53  ;;  %3252 = vmatpush1.bf16.msra.mxu1 %v4771_v54  ;;  %v962_v46 = vsub.f32 1.0, %v946_v0  ;;  %v2876_v25 = vadd.f32 -1.0, %v946_v0  ;;  %v884_v50 = vmul.f32 %v4734_v1, %v876_v20  ;;  %v4834_v6 = vpack.c.bf16 %v1357_v37, %v1353_v27  ;;  %v1363_v63 = vld [vmem:[#allocation10 + $0x1a8] sm:$0xff]  ;;  %v1362_v10 = vld [vmem:[#allocation10 + $0x1a0] sm:$0xff] }
 0x2ea   :  { %1166 = vmatprep.mubr.f32.mxu0 %v4193_v60  ;;  %1279 = vmatprep.mubr.f32.mxu1 %v4193_v60  ;;  %v979_v7 = vsel %vm955_vm12, %v963_v32, %v2877_v44  ;;  %3885 = vpow2.f32 %v940_v33  ;;  %v4838_v20 = vpack.c.bf16 %v1354_v58, %v1350_v41  ;;  %v2870_v23 = vadd.f32 -1.2655122, %v772_v24  ;;  %v1360_v44 = vld [vmem:[#allocation10 + $0x190] sm:$0xff]  ;;  %v1370_v37 = vld [vmem:[#allocation10 + $0x1e0] sm:$0xff] }
 0x2eb   :  { %3222 = vmatprep.subr.bf16.mxu0 %v4773_v55  ;;  %3254 = vmatprep.subr.bf16.mxu1 %v4792_v42  ;;  %v978_v17 = vsel %vm954_vm13, %v962_v46, %v2876_v25  ;;  %v892_v19 = vadd.f32 0.37409195, %v884_v50  ;;  %v987_v14 = vadd.f32 1.0, %v979_v7  ;;  %v4840_v46 = vpack.c.bf16 %v1356_v21, %v1352_v56  ;;  %v1358_v25 = vld [vmem:[#allocation10 + $0x180] sm:$0xff]  ;;  %v1364_v33 = vld [vmem:[#allocation10 + $0x1b0] sm:$0xff]  ;;  %v1367_v50 = vld [vmem:[#allocation10 + $0x1c8] sm:$0xff] }
 0x2ec   :  { %1167 = vmatmul.mubr.f32.gmra.mrb[22].mxu0 %v993_v15  ;;  %1280 = vmatmul.mubr.f32.gmra.mrb[14].mxu1 %v993_v15  ;;  %v986_v9 = vadd.f32 1.0, %v978_v17  ;;  %v4847_v22 = vpack.c.bf16 %v1363_v63, %v1359_v18  ;;  %v4849_v57 = vpack.c.bf16 %v1365_v2, %v1361_v38  ;;  %v1373_v17 = vld [vmem:[#allocation10 + $0x1f8] sm:$0xff]  ;;  %v4853_v59 = vpack.c.bf16 %v1362_v10, %v1358_v25  ;;  %v1368_v41 = vld [vmem:[#allocation10 + $0x1d0] sm:$0xff] }
 0x2ed   :  { %3224 = vmatpush1.bf16.msra.mxu0 %v4787_v34  ;;  %3256 = vmatpush1.bf16.msra.mxu1 %v4794_v47  ;;  %v900_v45 = vmul.f32 %v4734_v1, %v892_v19  ;;  %v995_v61 = vmul.f32 %v987_v14, %v707_v30  ;;  %v1371_v30 = vld [vmem:[#allocation10 + $0x1e8] sm:$0xff]  ;;  %v4855_v7 = vpack.c.bf16 %v1364_v33, %v1360_v44  ;;  %v1366_v19 = vld [vmem:[#allocation10 + $0x1c0] sm:$0xff] }
 0x2ee   :  { %1172 = vmatprep.mubr.f32.mxu0 %v4193_v60  ;;  %1285 = vmatprep.mubr.f32.mxu1 %v4193_v60  ;;  %v994_v15 = vmul.f32 %v986_v9, %v706_v26  ;;  %v1369_v26 = vld [vmem:[#allocation10 + $0x1d8] sm:$0xff]  ;;  %v4859_v27 = vpack.c.bf16 %v1371_v30, %v1367_v50  ;;  %v4868_v56 = vpack.c.bf16 %v1370_v37, %v1366_v19  ;;  %v1062_v44 = vld [vmem:[%s5218_s6] sm:$0xf] }
 0x2ef   :  { %3226 = vmatprep.subr.bf16.mxu0 %v4802_v5  ;;  %3258 = vmatprep.subr.bf16.mxu1 %v4807_v48  ;;  %v908_v0 = vadd.f32 1.0000237, %v900_v45  ;;  %v4861_v24 = vpack.c.bf16 %v1373_v17, %v1369_v26  ;;  %v1372_v45 = vld [vmem:[#allocation10 + $0x1f0] sm:$0xff] }
 0x2f0   :  { %1173 = vmatmul.mubr.f32.gmra.mrb[24].mxu0 %v994_v15  ;;  %1286 = vmatmul.mubr.f32.gmra.mrb[16].mxu1 %v994_v15  ;;  %v4870_v21 = vpack.c.bf16 %v1372_v45, %v1368_v41 }
 0x2f1   :  { %3228 = vmatpush1.bf16.msra.mxu0 %v4823_v36  ;;  %3260 = vmatpush1.bf16.msra.mxu1 %v4825_v52  ;;  %v916_v32 = vmul.f32 %v4734_v1, %v908_v0 }
 0x2f2   :  { %1178 = vmatprep.mubr.f32.mxu0 %v4193_v60  ;;  %1291 = vmatprep.mubr.f32.mxu1 %v4193_v60 }
 0x2f3   :  { %3230 = vmatprep.subr.bf16.mxu0 %v4832_v8  ;;  %3262 = vmatprep.subr.bf16.mxu1 %v4834_v6  ;;  %v924_v51 = vadd.f32 %v2870_v23, %v916_v32 }
 0x2f4   :  { %1179 = vmatmul.mubr.f32.gmra.mrb[26].mxu0 %v995_v61  ;;  %1292 = vmatmul.mubr.f32.gmra.mrb[18].mxu1 %v995_v61  ;;  %v3886_v9 = vpop.eup %3885 }
 0x2f5   :  { %3232 = vmatpush1.bf16.msra.mxu0 %v4838_v20  ;;  %3264 = vmatpush1.bf16.msra.mxu1 %v4840_v46  ;;  %v938_v14 = vmul.f32 1.442695, %v924_v51  ;;  %v949_v15 = vmul.f32 %v3886_v9, %v4705_v16  ;;  %v709_v16 = vmul.f32 0.5, %v4645_v49  ;;  %v708_v49 = vmul.f32 0.5, %v4656_v28 }
 0x2f6   :  { %1184 = vmatprep.mubr.f32.mxu0 %v4193_v60  ;;  %1297 = vmatprep.mubr.f32.mxu1 %v4193_v60  ;;  %v1064_v28 = vlaneseq }
 0x2f7   :  { %3234 = vmatprep.subr.bf16.mxu0 %v4847_v22  ;;  %3266 = vmatprep.subr.bf16.mxu1 %v4849_v57  ;;  %3887 = vpow2.f32 %v938_v14  ;;  %v965_v61 = vsub.f32 1.0, %v949_v15  ;;  %v2879_v58 = vadd.f32 -1.0, %v949_v15 }
 0x2f8   :  { %v1065_v12 = vshrl.u32 %v1064_v28, 7 }
 0x2f9   :  { %3236 = vmatpush1.bf16.msra.mxu0 %v4853_v59  ;;  %3268 = vmatpush1.bf16.msra.mxu1 %v4855_v7  ;;  %v981_v18 = vsel %vm957_vm14, %v965_v61, %v2879_v58 }
 0x2fa   :  { %3238 = vmatprep.subr.bf16.mxu0 %v4859_v27  ;;  %3270 = vmatprep.subr.bf16.mxu1 %v4861_v24  ;;  %v989_v0 = vadd.f32 1.0, %v981_v18  ;;  %v1070_v33 = vsub.s32 1, %v1065_v12  ;;  %v1078_v51 = vsub.s32 3, %v1065_v12  ;;  %v1074_v61 = vsub.s32 2, %v1065_v12 }
 0x2fc   :  { %v997_v63 = vmul.f32 %v989_v0, %v709_v16  ;;  %v4928_v30 = vrot.slane %v1062_v44, %v1070_v33  ;;  %v4932_v15 = vrot.slane %v1062_v44, %v1078_v51  ;;  %v4935_v18 = vrot.slane %v1062_v44, %v1074_v61 }
 0x2fd   :  { %3240 = vmatpush1.bf16.msra.mxu0 %v4868_v56  ;;  %3272 = vmatpush1.bf16.msra.mxu1 %v4870_v21 }
 0x2fe   :  { %3274 = vmatprep.subr.bf16.mxu0 %v4558_v62  ;;  %3306 = vmatprep.subr.bf16.mxu1 %v4562_v3 }
 0x301   :  { %v3888_v38 = vpop.eup %3887 }
 0x302   :  { %v948_v11 = vmul.f32 %v3888_v38, %v4734_v1  ;;  %v1066_v1 = vsub.s32 0, %v1065_v12 }
 0x304   :  { %v964_v2 = vsub.f32 1.0, %v948_v11  ;;  %v2878_v25 = vadd.f32 -1.0, %v948_v11  ;;  %v4926_v50 = vrot.slane %v1062_v44, %v1066_v1 }
 0x306   :  { %v980_v10 = vsel %vm956_vm15, %v964_v2, %v2878_v25 }
 0x307   :  { %v988_v23 = vadd.f32 1.0, %v980_v10 }
 0x309   :  { %v996_v32 = vmul.f32 %v988_v23, %v708_v49 }
 0x30b   :  { %1185 = vmatmul.mubr.f32.gmra.mrb[28].mxu0 %v996_v32  ;;  %1298 = vmatmul.mubr.f32.gmra.mrb[20].mxu1 %v996_v32 }
 0x30c   :  { %1190 = vmatprep.mubr.f32.mxu0 %v4193_v60  ;;  %1303 = vmatprep.mubr.f32.mxu1 %v4193_v60 }
 0x30f   :  { %1191 = vmatmul.mubr.f32.gmra.mrb[30].mxu0 %v997_v63  ;;  %1304 = vmatmul.mubr.f32.gmra.mrb[22].mxu1 %v997_v63 }
 0x310   :  { %1438 = vmatprep.mubr.f32.mxu0 %v4193_v60  ;;  %1509 = vmatprep.mubr.f32.mxu1 %v4193_v60 }
 0x313   :  { %1439 = vmatmul.mubr.f32.vlgmr.msra.gmra.mrb[16].mxu0 %v4193_v60  ;;  %1510 = vmatmul.mubr.f32.vlgmr.msra.gmra.mrb[8].mxu1 %v4193_v60 }
 0x314   :  { %3276 = vmatpush1.bf16.msra.mxu0 %v4702_v4  ;;  %3308 = vmatpush1.bf16.msra.mxu1 %v4728_v39 }
 0x315   :  { %3278 = vmatprep.subr.bf16.mxu0 %v4730_v40  ;;  %3310 = vmatprep.subr.bf16.mxu1 %v4742_v29 }
 0x316   :  { %1608 = vmatprep.mubr.f32.mxu0 %v4193_v60  ;;  %1679 = vmatprep.mubr.f32.mxu1 %v4193_v60 }
 0x318   :  { %3280 = vmatpush1.bf16.msra.mxu0 %v4732_v43  ;;  %3312 = vmatpush1.bf16.msra.mxu1 %v4744_v35 }
 0x319   :  { %3282 = vmatprep.subr.bf16.mxu0 %v4747_v13  ;;  %3314 = vmatprep.subr.bf16.mxu1 %v4765_v31 }
 0x31c   :  { %3284 = vmatpush1.bf16.msra.mxu0 %v4755_v53  ;;  %3316 = vmatpush1.bf16.msra.mxu1 %v4771_v54 }
 0x31d   :  { %3286 = vmatprep.subr.bf16.mxu0 %v4773_v55  ;;  %3318 = vmatprep.subr.bf16.mxu1 %v4792_v42 }
 0x320   :  { %3288 = vmatpush1.bf16.msra.mxu0 %v4787_v34  ;;  %3320 = vmatpush1.bf16.msra.mxu1 %v4794_v47 }
 0x321   :  { %3290 = vmatprep.subr.bf16.mxu0 %v4802_v5  ;;  %3322 = vmatprep.subr.bf16.mxu1 %v4807_v48 }
 0x324   :  { %3292 = vmatpush1.bf16.msra.mxu0 %v4823_v36  ;;  %3324 = vmatpush1.bf16.msra.mxu1 %v4825_v52 }
 0x325   :  { %3294 = vmatprep.subr.bf16.mxu0 %v4832_v8  ;;  %3326 = vmatprep.subr.bf16.mxu1 %v4834_v6 }
 0x328   :  { %3296 = vmatpush1.bf16.msra.mxu0 %v4838_v20  ;;  %3328 = vmatpush1.bf16.msra.mxu1 %v4840_v46 }
 0x329   :  { %3298 = vmatprep.subr.bf16.mxu0 %v4847_v22  ;;  %3330 = vmatprep.subr.bf16.mxu1 %v4849_v57 }
 0x32c   :  { %3300 = vmatpush1.bf16.msra.mxu0 %v4853_v59  ;;  %3332 = vmatpush1.bf16.msra.mxu1 %v4855_v7 }
 0x32d   :  { %3302 = vmatprep.subr.bf16.mxu0 %v4859_v27  ;;  %3334 = vmatprep.subr.bf16.mxu1 %v4861_v24 }
 0x330   :  { %3304 = vmatpush1.bf16.msra.mxu0 %v4868_v56  ;;  %3336 = vmatpush1.bf16.msra.mxu1 %v4870_v21 }
 0x331   :  { %3338 = vmatprep.subr.bf16.mxu0 %v4558_v62  ;;  %3370 = vmatprep.subr.bf16.mxu1 %v4562_v3 }
 0x3e6   :  { %v1440_v26 = vpop.f32.mrb[16].mxu0  ;;  %v1511_v17 = vpop.f32.mrb[8].mxu1 }
 0x3e7   :  { %v3745_v19 = vadd.f32 %v1440_v26, %v4926_v50  ;;  %v1442_v9 = vpop.f32.mrb[17].mxu0  ;;  %v1513_v14 = vpop.f32.mrb[9].mxu1  ;;  %v3761_v0 = vadd.f32 %v1511_v17, %v4935_v18 }
 0x3e8   :  { %v3746_v37 = vadd.f32 %v1442_v9, %v4928_v30  ;;  %v3762_v58 = vadd.f32 %v1513_v14, %v4932_v15 }
 0x3e9   :  { %v2880_v41 = vmul.f32 -1.442695, %v3745_v19 }
 0x3ea   :  { %v2881_v45 = vmul.f32 -1.442695, %v3746_v37  ;;  %v2882_v16 = vmul.f32 -1.442695, %v3762_v58 }
 0x3eb   :  { %3889 = vpow2.f32 %v2880_v41 }
 0x3ec   :  { %3891 = vpow2.f32 %v2881_v45 }
 0x3ed   :  { %3893 = vpow2.f32 %v2882_v16 }
 0x3ee   :  { %3895 = vtanh.f32 %v3761_v0 }
 0x3f5   :  { %v3890_v63 = vpop.eup %3889 }
 0x3f6   :  { %v3892_v38 = vpop.eup %3891  ;;  %v1523_v11 = vadd.f32 1.0, %v3890_v63 }
 0x3f7   :  { %v1529_v2 = vadd.f32 1.0, %v3892_v38  ;;  %v3894_v25 = vpop.eup %3893 }
 0x3f8   :  { %3897 = vrcp.f32 %v1523_v11  ;;  %v3896_v10 = vpop.eup %3895  ;;  %v1536_v28 = vadd.f32 1.0, %v3894_v25 }
 0x3f9   :  { %3899 = vrcp.f32 %v1529_v2 }
 0x3fa   :  { %3901 = vrcp.f32 %v1536_v28 }
 0x402   :  { %v3898_v49 = vpop.eup %3897 }
 0x403   :  { %v3900_v23 = vpop.eup %3899  ;;  %v1540_v32 = vmul.f32 %v3898_v49, %v3896_v10 }
 0x404   :  { %v1539_v12 = vmul.f32 0.0, %v3900_v23  ;;  %v3902_v44 = vpop.eup %3901 }
 0x406   :  { %v4938_v1 = vadd.f32 %v1540_v32, %v1539_v12 }
 0x408   :  { %3903 = vtanh.f32 %v4938_v1 }
 0x412   :  { %v3904_v33 = vpop.eup %3903 }
 0x413   :  { %v1543_v26 = vmul.f32 %v3904_v33, %v3902_v44 }
 0x415   :  { %1609 = vmatmul.mubr.f32.vlgmr.msra.gmra.mrb[18].mxu0 %v1543_v26  ;;  %1680 = vmatmul.mubr.f32.vlgmr.msra.gmra.mrb[10].mxu1 %v1543_v26 }
 0x416   :  { %3340 = vmatpush1.bf16.msra.mxu0 %v4702_v4  ;;  %3372 = vmatpush1.bf16.msra.mxu1 %v4728_v39 }
 0x417   :  { %3342 = vmatprep.subr.bf16.mxu0 %v4730_v40  ;;  %3374 = vmatprep.subr.bf16.mxu1 %v4742_v29 }
 0x418   :  { %1778 = vmatprep.mubr.f32.mxu0 %v4193_v60  ;;  %1849 = vmatprep.mubr.f32.mxu1 %v4193_v60 }
 0x41a   :  { %3344 = vmatpush1.bf16.msra.mxu0 %v4732_v43  ;;  %3376 = vmatpush1.bf16.msra.mxu1 %v4744_v35 }
 0x41b   :  { %3346 = vmatprep.subr.bf16.mxu0 %v4747_v13  ;;  %3378 = vmatprep.subr.bf16.mxu1 %v4765_v31 }
 0x41e   :  { %3348 = vmatpush1.bf16.msra.mxu0 %v4755_v53  ;;  %3380 = vmatpush1.bf16.msra.mxu1 %v4771_v54 }
 0x41f   :  { %3350 = vmatprep.subr.bf16.mxu0 %v4773_v55  ;;  %3382 = vmatprep.subr.bf16.mxu1 %v4792_v42 }
 0x422   :  { %3352 = vmatpush1.bf16.msra.mxu0 %v4787_v34  ;;  %3384 = vmatpush1.bf16.msra.mxu1 %v4794_v47 }
 0x423   :  { %3354 = vmatprep.subr.bf16.mxu0 %v4802_v5  ;;  %3386 = vmatprep.subr.bf16.mxu1 %v4807_v48 }
 0x426   :  { %3356 = vmatpush1.bf16.msra.mxu0 %v4823_v36  ;;  %3388 = vmatpush1.bf16.msra.mxu1 %v4825_v52 }
 0x427   :  { %3358 = vmatprep.subr.bf16.mxu0 %v4832_v8  ;;  %3390 = vmatprep.subr.bf16.mxu1 %v4834_v6 }
 0x42a   :  { %3360 = vmatpush1.bf16.msra.mxu0 %v4838_v20  ;;  %3392 = vmatpush1.bf16.msra.mxu1 %v4840_v46 }
 0x42b   :  { %3362 = vmatprep.subr.bf16.mxu0 %v4847_v22  ;;  %3394 = vmatprep.subr.bf16.mxu1 %v4849_v57 }
 0x42e   :  { %3364 = vmatpush1.bf16.msra.mxu0 %v4853_v59  ;;  %3396 = vmatpush1.bf16.msra.mxu1 %v4855_v7 }
 0x42f   :  { %3366 = vmatprep.subr.bf16.mxu0 %v4859_v27  ;;  %3398 = vmatprep.subr.bf16.mxu1 %v4861_v24 }
 0x432   :  { %3368 = vmatpush1.bf16.msra.mxu0 %v4868_v56  ;;  %3400 = vmatpush1.bf16.msra.mxu1 %v4870_v21 }
 0x433   :  { %3402 = vmatprep.subr.bf16.mxu0 %v4558_v62  ;;  %3434 = vmatprep.subr.bf16.mxu1 %v4562_v3 }
 0x4e8   :  { %v1610_v17 = vpop.f32.mrb[18].mxu0  ;;  %v1681_v51 = vpop.f32.mrb[10].mxu1 }
 0x4e9   :  { %v3747_v19 = vadd.f32 %v1610_v17, %v4926_v50  ;;  %v1612_v9 = vpop.f32.mrb[19].mxu0  ;;  %v1683_v14 = vpop.f32.mrb[11].mxu1  ;;  %v3763_v16 = vadd.f32 %v1681_v51, %v4935_v18 }
 0x4ea   :  { %v3748_v37 = vadd.f32 %v1612_v9, %v4928_v30  ;;  %v3764_v61 = vadd.f32 %v1683_v14, %v4932_v15 }
 0x4eb   :  { %v2883_v41 = vmul.f32 -1.442695, %v3747_v19 }
 0x4ec   :  { %v2884_v45 = vmul.f32 -1.442695, %v3748_v37  ;;  %v2885_v58 = vmul.f32 -1.442695, %v3764_v61 }
 0x4ed   :  { %3905 = vpow2.f32 %v2883_v41 }
 0x4ee   :  { %3907 = vpow2.f32 %v2884_v45 }
 0x4ef   :  { %3909 = vpow2.f32 %v2885_v58 }
 0x4f0   :  { %3911 = vtanh.f32 %v3763_v16 }
 0x4f7   :  { %v3906_v0 = vpop.eup %3905 }
 0x4f8   :  { %v3908_v63 = vpop.eup %3907  ;;  %v1693_v38 = vadd.f32 1.0, %v3906_v0 }
 0x4f9   :  { %v1699_v11 = vadd.f32 1.0, %v3908_v63  ;;  %v3910_v2 = vpop.eup %3909 }
 0x4fa   :  { %3913 = vrcp.f32 %v1693_v38  ;;  %v3912_v25 = vpop.eup %3911  ;;  %v1706_v32 = vadd.f32 1.0, %v3910_v2 }
 0x4fb   :  { %3915 = vrcp.f32 %v1699_v11 }
 0x4fc   :  { %3917 = vrcp.f32 %v1706_v32 }
 0x504   :  { %v3914_v10 = vpop.eup %3913 }
 0x505   :  { %v3916_v49 = vpop.eup %3915  ;;  %v1710_v23 = vmul.f32 %v3914_v10, %v3912_v25 }
 0x506   :  { %v1709_v28 = vmul.f32 %v3916_v49, %v4938_v1  ;;  %v3918_v44 = vpop.eup %3917 }
 0x508   :  { %v4980_v12 = vadd.f32 %v1710_v23, %v1709_v28 }
 0x50a   :  { %3919 = vtanh.f32 %v4980_v12 }
 0x514   :  { %v3920_v33 = vpop.eup %3919 }
 0x515   :  { %v1713_v26 = vmul.f32 %v3920_v33, %v3918_v44 }
 0x517   :  { %1779 = vmatmul.mubr.f32.vlgmr.msra.gmra.mrb[20].mxu0 %v1713_v26  ;;  %1850 = vmatmul.mubr.f32.vlgmr.msra.gmra.mrb[12].mxu1 %v1713_v26 }
 0x518   :  { %3404 = vmatpush1.bf16.msra.mxu0 %v4702_v4  ;;  %3436 = vmatpush1.bf16.msra.mxu1 %v4728_v39 }
 0x519   :  { %3406 = vmatprep.subr.bf16.mxu0 %v4730_v40  ;;  %3438 = vmatprep.subr.bf16.mxu1 %v4742_v29 }
 0x51a   :  { %1948 = vmatprep.mubr.f32.mxu0 %v4193_v60  ;;  %2019 = vmatprep.mubr.f32.mxu1 %v4193_v60 }
 0x51c   :  { %3408 = vmatpush1.bf16.msra.mxu0 %v4732_v43  ;;  %3440 = vmatpush1.bf16.msra.mxu1 %v4744_v35 }
 0x51d   :  { %3410 = vmatprep.subr.bf16.mxu0 %v4747_v13  ;;  %3442 = vmatprep.subr.bf16.mxu1 %v4765_v31 }
 0x520   :  { %3412 = vmatpush1.bf16.msra.mxu0 %v4755_v53  ;;  %3444 = vmatpush1.bf16.msra.mxu1 %v4771_v54 }
 0x521   :  { %3414 = vmatprep.subr.bf16.mxu0 %v4773_v55  ;;  %3446 = vmatprep.subr.bf16.mxu1 %v4792_v42 }
 0x524   :  { %3416 = vmatpush1.bf16.msra.mxu0 %v4787_v34  ;;  %3448 = vmatpush1.bf16.msra.mxu1 %v4794_v47 }
 0x525   :  { %3418 = vmatprep.subr.bf16.mxu0 %v4802_v5  ;;  %3450 = vmatprep.subr.bf16.mxu1 %v4807_v48 }
 0x528   :  { %3420 = vmatpush1.bf16.msra.mxu0 %v4823_v36  ;;  %3452 = vmatpush1.bf16.msra.mxu1 %v4825_v52 }
 0x529   :  { %3422 = vmatprep.subr.bf16.mxu0 %v4832_v8  ;;  %3454 = vmatprep.subr.bf16.mxu1 %v4834_v6 }
 0x52c   :  { %3424 = vmatpush1.bf16.msra.mxu0 %v4838_v20  ;;  %3456 = vmatpush1.bf16.msra.mxu1 %v4840_v46 }
 0x52d   :  { %3426 = vmatprep.subr.bf16.mxu0 %v4847_v22  ;;  %3458 = vmatprep.subr.bf16.mxu1 %v4849_v57 }
 0x530   :  { %3428 = vmatpush1.bf16.msra.mxu0 %v4853_v59  ;;  %3460 = vmatpush1.bf16.msra.mxu1 %v4855_v7 }
 0x531   :  { %3430 = vmatprep.subr.bf16.mxu0 %v4859_v27  ;;  %3462 = vmatprep.subr.bf16.mxu1 %v4861_v24 }
 0x534   :  { %3432 = vmatpush1.bf16.msra.mxu0 %v4868_v56  ;;  %3464 = vmatpush1.bf16.msra.mxu1 %v4870_v21 }
 0x535   :  { %3466 = vmatprep.subr.bf16.mxu0 %v4558_v62  ;;  %3498 = vmatprep.subr.bf16.mxu1 %v4562_v3 }
 0x5ea   :  { %v1780_v1 = vpop.f32.mrb[20].mxu0  ;;  %v1851_v17 = vpop.f32.mrb[12].mxu1 }
 0x5eb   :  { %v3749_v51 = vadd.f32 %v1780_v1, %v4926_v50  ;;  %v1782_v19 = vpop.f32.mrb[21].mxu0  ;;  %v1853_v9 = vpop.f32.mrb[13].mxu1  ;;  %v3765_v58 = vadd.f32 %v1851_v17, %v4935_v18 }
 0x5ec   :  { %v3750_v14 = vadd.f32 %v1782_v19, %v4928_v30  ;;  %v3766_v45 = vadd.f32 %v1853_v9, %v4932_v15 }
 0x5ed   :  { %v2886_v37 = vmul.f32 -1.442695, %v3749_v51 }
 0x5ee   :  { %v2887_v41 = vmul.f32 -1.442695, %v3750_v14  ;;  %v2888_v61 = vmul.f32 -1.442695, %v3766_v45 }
 0x5ef   :  { %3921 = vpow2.f32 %v2886_v37 }
 0x5f0   :  { %3923 = vpow2.f32 %v2887_v41 }
 0x5f1   :  { %3925 = vpow2.f32 %v2888_v61 }
 0x5f2   :  { %3927 = vtanh.f32 %v3765_v58 }
 0x5f9   :  { %v3922_v16 = vpop.eup %3921 }
 0x5fa   :  { %v3924_v0 = vpop.eup %3923  ;;  %v1863_v63 = vadd.f32 1.0, %v3922_v16 }
 0x5fb   :  { %v1869_v38 = vadd.f32 1.0, %v3924_v0  ;;  %v3926_v11 = vpop.eup %3925 }
 0x5fc   :  { %3929 = vrcp.f32 %v1863_v63  ;;  %v3928_v2 = vpop.eup %3927  ;;  %v1876_v23 = vadd.f32 1.0, %v3926_v11 }
 0x5fd   :  { %3931 = vrcp.f32 %v1869_v38 }
 0x5fe   :  { %3933 = vrcp.f32 %v1876_v23 }
 0x606   :  { %v3930_v25 = vpop.eup %3929 }
 0x607   :  { %v3932_v10 = vpop.eup %3931  ;;  %v1880_v49 = vmul.f32 %v3930_v25, %v3928_v2 }
 0x608   :  { %v1879_v32 = vmul.f32 %v3932_v10, %v4980_v12  ;;  %v3934_v44 = vpop.eup %3933 }
 0x60a   :  { %v5022_v28 = vadd.f32 %v1880_v49, %v1879_v32 }
 0x60c   :  { %3935 = vtanh.f32 %v5022_v28 }
 0x616   :  { %v3936_v33 = vpop.eup %3935 }
 0x617   :  { %v1883_v26 = vmul.f32 %v3936_v33, %v3934_v44 }
 0x619   :  { %1949 = vmatmul.mubr.f32.vlgmr.msra.gmra.mrb[22].mxu0 %v1883_v26  ;;  %2020 = vmatmul.mubr.f32.vlgmr.msra.gmra.mrb[14].mxu1 %v1883_v26 }
 0x61a   :  { %3468 = vmatpush1.bf16.msra.mxu0 %v4702_v4  ;;  %3500 = vmatpush1.bf16.msra.mxu1 %v4728_v39 }
 0x61b   :  { %3470 = vmatprep.subr.bf16.mxu0 %v4730_v40  ;;  %3502 = vmatprep.subr.bf16.mxu1 %v4742_v29 }
 0x61c   :  { %2118 = vmatprep.mubr.f32.mxu0 %v4193_v60  ;;  %2189 = vmatprep.mubr.f32.mxu1 %v4193_v60 }
 0x61e   :  { %3472 = vmatpush1.bf16.msra.mxu0 %v4732_v43  ;;  %3504 = vmatpush1.bf16.msra.mxu1 %v4744_v35 }
 0x61f   :  { %3474 = vmatprep.subr.bf16.mxu0 %v4747_v13  ;;  %3506 = vmatprep.subr.bf16.mxu1 %v4765_v31 }
 0x622   :  { %3476 = vmatpush1.bf16.msra.mxu0 %v4755_v53  ;;  %3508 = vmatpush1.bf16.msra.mxu1 %v4771_v54 }
 0x623   :  { %3478 = vmatprep.subr.bf16.mxu0 %v4773_v55  ;;  %3510 = vmatprep.subr.bf16.mxu1 %v4792_v42 }
 0x626   :  { %3480 = vmatpush1.bf16.msra.mxu0 %v4787_v34  ;;  %3512 = vmatpush1.bf16.msra.mxu1 %v4794_v47 }
 0x627   :  { %3482 = vmatprep.subr.bf16.mxu0 %v4802_v5  ;;  %3514 = vmatprep.subr.bf16.mxu1 %v4807_v48 }
 0x62a   :  { %3484 = vmatpush1.bf16.msra.mxu0 %v4823_v36  ;;  %3516 = vmatpush1.bf16.msra.mxu1 %v4825_v52 }
 0x62b   :  { %3486 = vmatprep.subr.bf16.mxu0 %v4832_v8  ;;  %3518 = vmatprep.subr.bf16.mxu1 %v4834_v6 }
 0x62e   :  { %3488 = vmatpush1.bf16.msra.mxu0 %v4838_v20  ;;  %3520 = vmatpush1.bf16.msra.mxu1 %v4840_v46 }
 0x62f   :  { %3490 = vmatprep.subr.bf16.mxu0 %v4847_v22  ;;  %3522 = vmatprep.subr.bf16.mxu1 %v4849_v57 }
 0x632   :  { %3492 = vmatpush1.bf16.msra.mxu0 %v4853_v59  ;;  %3524 = vmatpush1.bf16.msra.mxu1 %v4855_v7 }
 0x633   :  { %3494 = vmatprep.subr.bf16.mxu0 %v4859_v27  ;;  %3526 = vmatprep.subr.bf16.mxu1 %v4861_v24 }
 0x636   :  { %3496 = vmatpush1.bf16.msra.mxu0 %v4868_v56  ;;  %3528 = vmatpush1.bf16.msra.mxu1 %v4870_v21 }
 0x637   :  { %3530 = vmatprep.subr.bf16.mxu0 %v4558_v62  ;;  %3562 = vmatprep.subr.bf16.mxu1 %v4562_v3 }
 0x6ec   :  { %v1950_v12 = vpop.f32.mrb[22].mxu0  ;;  %v2021_v1 = vpop.f32.mrb[14].mxu1 }
 0x6ed   :  { %v3751_v17 = vadd.f32 %v1950_v12, %v4926_v50  ;;  %v1952_v51 = vpop.f32.mrb[23].mxu0  ;;  %v2023_v19 = vpop.f32.mrb[15].mxu1  ;;  %v3767_v61 = vadd.f32 %v2021_v1, %v4935_v18 }
 0x6ee   :  { %v3752_v9 = vadd.f32 %v1952_v51, %v4928_v30  ;;  %v3768_v41 = vadd.f32 %v2023_v19, %v4932_v15 }
 0x6ef   :  { %v2889_v14 = vmul.f32 -1.442695, %v3751_v17 }
 0x6f0   :  { %v2890_v37 = vmul.f32 -1.442695, %v3752_v9  ;;  %v2891_v45 = vmul.f32 -1.442695, %v3768_v41 }
 0x6f1   :  { %3937 = vpow2.f32 %v2889_v14 }
 0x6f2   :  { %3939 = vpow2.f32 %v2890_v37 }
 0x6f3   :  { %3941 = vpow2.f32 %v2891_v45 }
 0x6f4   :  { %3943 = vtanh.f32 %v3767_v61 }
 0x6fb   :  { %v3938_v58 = vpop.eup %3937 }
 0x6fc   :  { %v3940_v16 = vpop.eup %3939  ;;  %v2033_v0 = vadd.f32 1.0, %v3938_v58 }
 0x6fd   :  { %v2039_v63 = vadd.f32 1.0, %v3940_v16  ;;  %v3942_v38 = vpop.eup %3941 }
 0x6fe   :  { %3945 = vrcp.f32 %v2033_v0  ;;  %v3944_v11 = vpop.eup %3943  ;;  %v2046_v49 = vadd.f32 1.0, %v3942_v38 }
 0x6ff   :  { %3947 = vrcp.f32 %v2039_v63 }
 0x700   :  { %3949 = vrcp.f32 %v2046_v49 }
 0x708   :  { %v3946_v2 = vpop.eup %3945 }
 0x709   :  { %v3948_v25 = vpop.eup %3947  ;;  %v2050_v10 = vmul.f32 %v3946_v2, %v3944_v11 }
 0x70a   :  { %v2049_v23 = vmul.f32 %v3948_v25, %v5022_v28  ;;  %v3950_v44 = vpop.eup %3949 }
 0x70c   :  { %v5064_v32 = vadd.f32 %v2050_v10, %v2049_v23 }
 0x70e   :  { %3951 = vtanh.f32 %v5064_v32 }
 0x718   :  { %v3952_v33 = vpop.eup %3951 }
 0x719   :  { %v2053_v26 = vmul.f32 %v3952_v33, %v3950_v44 }
 0x71b   :  { %2119 = vmatmul.mubr.f32.vlgmr.msra.gmra.mrb[24].mxu0 %v2053_v26  ;;  %2190 = vmatmul.mubr.f32.vlgmr.msra.gmra.mrb[16].mxu1 %v2053_v26 }
 0x71c   :  { %3532 = vmatpush1.bf16.msra.mxu0 %v4702_v4  ;;  %3564 = vmatpush1.bf16.msra.mxu1 %v4728_v39 }
 0x71d   :  { %3534 = vmatprep.subr.bf16.mxu0 %v4730_v40  ;;  %3566 = vmatprep.subr.bf16.mxu1 %v4742_v29 }
 0x71e   :  { %2288 = vmatprep.mubr.f32.mxu0 %v4193_v60  ;;  %2359 = vmatprep.mubr.f32.mxu1 %v4193_v60 }
 0x720   :  { %3536 = vmatpush1.bf16.msra.mxu0 %v4732_v43  ;;  %3568 = vmatpush1.bf16.msra.mxu1 %v4744_v35 }
 0x721   :  { %3538 = vmatprep.subr.bf16.mxu0 %v4747_v13  ;;  %3570 = vmatprep.subr.bf16.mxu1 %v4765_v31 }
 0x724   :  { %3540 = vmatpush1.bf16.msra.mxu0 %v4755_v53  ;;  %3572 = vmatpush1.bf16.msra.mxu1 %v4771_v54 }
 0x725   :  { %3542 = vmatprep.subr.bf16.mxu0 %v4773_v55  ;;  %3574 = vmatprep.subr.bf16.mxu1 %v4792_v42 }
 0x728   :  { %3544 = vmatpush1.bf16.msra.mxu0 %v4787_v34  ;;  %3576 = vmatpush1.bf16.msra.mxu1 %v4794_v47 }
 0x729   :  { %3546 = vmatprep.subr.bf16.mxu0 %v4802_v5  ;;  %3578 = vmatprep.subr.bf16.mxu1 %v4807_v48 }
 0x72c   :  { %3548 = vmatpush1.bf16.msra.mxu0 %v4823_v36  ;;  %3580 = vmatpush1.bf16.msra.mxu1 %v4825_v52 }
 0x72d   :  { %3550 = vmatprep.subr.bf16.mxu0 %v4832_v8  ;;  %3582 = vmatprep.subr.bf16.mxu1 %v4834_v6 }
 0x730   :  { %3552 = vmatpush1.bf16.msra.mxu0 %v4838_v20  ;;  %3584 = vmatpush1.bf16.msra.mxu1 %v4840_v46 }
 0x731   :  { %3554 = vmatprep.subr.bf16.mxu0 %v4847_v22  ;;  %3586 = vmatprep.subr.bf16.mxu1 %v4849_v57 }
 0x734   :  { %3556 = vmatpush1.bf16.msra.mxu0 %v4853_v59  ;;  %3588 = vmatpush1.bf16.msra.mxu1 %v4855_v7 }
 0x735   :  { %3558 = vmatprep.subr.bf16.mxu0 %v4859_v27  ;;  %3590 = vmatprep.subr.bf16.mxu1 %v4861_v24 }
 0x738   :  { %3560 = vmatpush1.bf16.msra.mxu0 %v4868_v56  ;;  %3592 = vmatpush1.bf16.msra.mxu1 %v4870_v21 }
 0x739   :  { %3594 = vmatprep.subr.bf16.mxu0 %v4558_v62  ;;  %3626 = vmatprep.subr.bf16.mxu1 %v4562_v3 }
 0x7ee   :  { %v2120_v28 = vpop.f32.mrb[24].mxu0  ;;  %v2191_v12 = vpop.f32.mrb[16].mxu1 }
 0x7ef   :  { %v3753_v1 = vadd.f32 %v2120_v28, %v4926_v50  ;;  %v2122_v17 = vpop.f32.mrb[25].mxu0  ;;  %v2193_v51 = vpop.f32.mrb[17].mxu1  ;;  %v3769_v45 = vadd.f32 %v2191_v12, %v4935_v18 }
 0x7f0   :  { %v3754_v19 = vadd.f32 %v2122_v17, %v4928_v30  ;;  %v3770_v37 = vadd.f32 %v2193_v51, %v4932_v15 }
 0x7f1   :  { %v2892_v9 = vmul.f32 -1.442695, %v3753_v1 }
 0x7f2   :  { %v2893_v14 = vmul.f32 -1.442695, %v3754_v19  ;;  %v2894_v41 = vmul.f32 -1.442695, %v3770_v37 }
 0x7f3   :  { %3953 = vpow2.f32 %v2892_v9 }
 0x7f4   :  { %3955 = vpow2.f32 %v2893_v14 }
 0x7f5   :  { %3957 = vpow2.f32 %v2894_v41 }
 0x7f6   :  { %3959 = vtanh.f32 %v3769_v45 }
 0x7fd   :  { %v3954_v61 = vpop.eup %3953 }
 0x7fe   :  { %v3956_v58 = vpop.eup %3955  ;;  %v2203_v16 = vadd.f32 1.0, %v3954_v61 }
 0x7ff   :  { %v2209_v0 = vadd.f32 1.0, %v3956_v58  ;;  %v3958_v63 = vpop.eup %3957 }
 0x800   :  { %3961 = vrcp.f32 %v2203_v16  ;;  %v3960_v38 = vpop.eup %3959  ;;  %v2216_v10 = vadd.f32 1.0, %v3958_v63 }
 0x801   :  { %3963 = vrcp.f32 %v2209_v0 }
 0x802   :  { %3965 = vrcp.f32 %v2216_v10 }
 0x80a   :  { %v3962_v11 = vpop.eup %3961 }
 0x80b   :  { %v3964_v2 = vpop.eup %3963  ;;  %v2220_v25 = vmul.f32 %v3962_v11, %v3960_v38 }
 0x80c   :  { %v2219_v49 = vmul.f32 %v3964_v2, %v5064_v32  ;;  %v3966_v44 = vpop.eup %3965 }
 0x80e   :  { %v5106_v23 = vadd.f32 %v2220_v25, %v2219_v49 }
 0x810   :  { %3967 = vtanh.f32 %v5106_v23 }
 0x81a   :  { %v3968_v33 = vpop.eup %3967 }
 0x81b   :  { %v2223_v26 = vmul.f32 %v3968_v33, %v3966_v44  ;;  %v2737_v33 = vld [vmem:[#allocation11 + $0x18] sm:$0xff] }
 0x81d   :  { %2289 = vmatmul.mubr.f32.vlgmr.msra.gmra.mrb[26].mxu0 %v2223_v26  ;;  %2360 = vmatmul.mubr.f32.vlgmr.msra.gmra.mrb[18].mxu1 %v2223_v26 }
 0x81e   :  { %3596 = vmatpush1.bf16.msra.mxu0 %v4702_v4  ;;  %3628 = vmatpush1.bf16.msra.mxu1 %v4728_v39 }
 0x81f   :  { %3598 = vmatprep.subr.bf16.mxu0 %v4730_v40  ;;  %3630 = vmatprep.subr.bf16.mxu1 %v4742_v29 }
 0x820   :  { %2458 = vmatprep.mubr.f32.mxu0 %v4193_v60  ;;  %2529 = vmatprep.mubr.f32.mxu1 %v4193_v60 }
 0x822   :  { %3600 = vmatpush1.bf16.msra.mxu0 %v4732_v43  ;;  %3632 = vmatpush1.bf16.msra.mxu1 %v4744_v35 }
 0x823   :  { %3602 = vmatprep.subr.bf16.mxu0 %v4747_v13  ;;  %3634 = vmatprep.subr.bf16.mxu1 %v4765_v31 }
 0x826   :  { %3604 = vmatpush1.bf16.msra.mxu0 %v4755_v53  ;;  %3636 = vmatpush1.bf16.msra.mxu1 %v4771_v54 }
 0x827   :  { %3606 = vmatprep.subr.bf16.mxu0 %v4773_v55  ;;  %3638 = vmatprep.subr.bf16.mxu1 %v4792_v42 }
 0x82a   :  { %3608 = vmatpush1.bf16.msra.mxu0 %v4787_v34  ;;  %3640 = vmatpush1.bf16.msra.mxu1 %v4794_v47 }
 0x82b   :  { %3610 = vmatprep.subr.bf16.mxu0 %v4802_v5  ;;  %3642 = vmatprep.subr.bf16.mxu1 %v4807_v48 }
 0x82e   :  { %3612 = vmatpush1.bf16.msra.mxu0 %v4823_v36  ;;  %3644 = vmatpush1.bf16.msra.mxu1 %v4825_v52 }
 0x82f   :  { %3614 = vmatprep.subr.bf16.mxu0 %v4832_v8  ;;  %3646 = vmatprep.subr.bf16.mxu1 %v4834_v6 }
 0x832   :  { %3616 = vmatpush1.bf16.msra.mxu0 %v4838_v20  ;;  %3648 = vmatpush1.bf16.msra.mxu1 %v4840_v46 }
 0x833   :  { %3618 = vmatprep.subr.bf16.mxu0 %v4847_v22  ;;  %3650 = vmatprep.subr.bf16.mxu1 %v4849_v57 }
 0x836   :  { %3620 = vmatpush1.bf16.msra.mxu0 %v4853_v59  ;;  %3652 = vmatpush1.bf16.msra.mxu1 %v4855_v7 }
 0x837   :  { %3622 = vmatprep.subr.bf16.mxu0 %v4859_v27  ;;  %3654 = vmatprep.subr.bf16.mxu1 %v4861_v24 }
 0x83a   :  { %3624 = vmatpush1.bf16.msra.mxu0 %v4868_v56  ;;  %3656 = vmatpush1.bf16.msra.mxu1 %v4870_v21 }
 0x83b   :  { %3658 = vmatprep.subr.bf16.mxu0 %v4558_v62  ;;  %3690 = vmatprep.subr.bf16.mxu1 %v4562_v3 }
 0x8f0   :  { %v2290_v32 = vpop.f32.mrb[26].mxu0  ;;  %v2361_v28 = vpop.f32.mrb[18].mxu1 }
 0x8f1   :  { %v3755_v12 = vadd.f32 %v2290_v32, %v4926_v50  ;;  %v2292_v1 = vpop.f32.mrb[27].mxu0  ;;  %v2363_v17 = vpop.f32.mrb[19].mxu1  ;;  %v3771_v41 = vadd.f32 %v2361_v28, %v4935_v18  ;;  %v2738_v32 = vld [vmem:[#allocation11 + $0x20] sm:$0xff]  ;;  %v2739_v28 = vld [vmem:[#allocation11 + $0x28] sm:$0xff] }
 0x8f2   :  { %v3756_v51 = vadd.f32 %v2292_v1, %v4928_v30  ;;  %v3772_v14 = vadd.f32 %v2363_v17, %v4932_v15  ;;  %v2740_v1 = vld [vmem:[#allocation11 + $0x30] sm:$0xff]  ;;  %v2741_v17 = vld [vmem:[#allocation11 + $0x38] sm:$0xff] }
 0x8f3   :  { %v2895_v19 = vmul.f32 -1.442695, %v3755_v12  ;;  %v3728_v12 = vpack.c.bf16 %v2739_v28, %v2738_v32 }
 0x8f4   :  { %v2896_v9 = vmul.f32 -1.442695, %v3756_v51  ;;  %v2897_v37 = vmul.f32 -1.442695, %v3772_v14  ;;  %v3731_v51 = vpack.c.bf16 %v2741_v17, %v2740_v1 }
 0x8f5   :  { %3969 = vpow2.f32 %v2895_v19  ;;  %v2742_v19 = vld [vmem:[#allocation11 + $0x40] sm:$0xff] }
 0x8f6   :  { %3971 = vpow2.f32 %v2896_v9  ;;  %v2743_v9 = vld [vmem:[#allocation11 + $0x48] sm:$0xff] }
 0x8f7   :  { %3973 = vpow2.f32 %v2897_v37  ;;  %v3734_v14 = vpack.c.bf16 %v2743_v9, %v2742_v19  ;;  %v2744_v37 = vld [vmem:[#allocation11 + $0x50] sm:$0xff] }
 0x8f8   :  { %3975 = vtanh.f32 %v3771_v41  ;;  %v2745_v41 = vld [vmem:[#allocation11 + $0x58] sm:$0xff] }
 0x8ff   :  { %v3970_v62 = vpop.eup %3969 }
 0x900   :  { %v3972_v45 = vpop.eup %3971  ;;  %v2373_v3 = vadd.f32 1.0, %v3970_v62  ;;  %v3737_v62 = vpack.c.bf16 %v2745_v41, %v2744_v37 }
 0x901   :  { %v2379_v61 = vadd.f32 1.0, %v3972_v45  ;;  %v3974_v58 = vpop.eup %3973  ;;  %v2746_v45 = vld [vmem:[#allocation11 + $0x60] sm:$0xff] }
 0x902   :  { %3977 = vrcp.f32 %v2373_v3  ;;  %v3976_v16 = vpop.eup %3975  ;;  %v2386_v11 = vadd.f32 1.0, %v3974_v58  ;;  %v2747_v3 = vld [vmem:[#allocation11 + $0x68] sm:$0xff]  ;;  %v2748_v58 = vld [vmem:[#allocation11 + $0x70] sm:$0xff] }
 0x903   :  { %3979 = vrcp.f32 %v2379_v61  ;;  %v3740_v61 = vpack.c.bf16 %v2747_v3, %v2746_v45 }
 0x904   :  { %3981 = vrcp.f32 %v2386_v11 }
 0x90c   :  { %v3978_v0 = vpop.eup %3977 }
 0x90d   :  { %v3980_v63 = vpop.eup %3979  ;;  %v2390_v38 = vmul.f32 %v3978_v0, %v3976_v16  ;;  %v2749_v16 = vld [vmem:[#allocation11 + $0x78] sm:$0xff] }
 0x90e   :  { %v2389_v2 = vmul.f32 %v3980_v63, %v5106_v23  ;;  %v3982_v10 = vpop.eup %3981  ;;  %v2736_v23 = vld [vmem:[#allocation11 + $0x10] sm:$0xff]  ;;  %v3743_v0 = vpack.c.bf16 %v2749_v16, %v2748_v58 }
 0x90f   :  { %v3725_v26 = vpack.c.bf16 %v2737_v33, %v2736_v23 }
 0x910   :  { %v5148_v25 = vadd.f32 %v2390_v38, %v2389_v2 }
 0x912   :  { %3983 = vtanh.f32 %v5148_v25 }
 0x91c   :  { %v3984_v49 = vpop.eup %3983 }
 0x91d   :  { %v2393_v44 = vmul.f32 %v3984_v49, %v3982_v10 }
 0x91f   :  { %2459 = vmatmul.mubr.f32.vlgmr.msra.gmra.mrb[28].mxu0 %v2393_v44  ;;  %2530 = vmatmul.mubr.f32.vlgmr.msra.gmra.mrb[20].mxu1 %v2393_v44 }
 0x920   :  { %3660 = vmatpush1.bf16.msra.mxu0 %v4702_v4  ;;  %3692 = vmatpush1.bf16.msra.mxu1 %v4728_v39 }
 0x921   :  { %3662 = vmatprep.subr.bf16.mxu0 %v4730_v40  ;;  %3694 = vmatprep.subr.bf16.mxu1 %v4742_v29 }
 0x922   :  { %2628 = vmatprep.mubr.f32.mxu0 %v4193_v60  ;;  %2699 = vmatprep.mubr.f32.mxu1 %v4193_v60 }
 0x924   :  { %3664 = vmatpush1.bf16.msra.mxu0 %v4732_v43  ;;  %3696 = vmatpush1.bf16.msra.mxu1 %v4744_v35 }
 0x925   :  { %3666 = vmatprep.subr.bf16.mxu0 %v4747_v13  ;;  %3698 = vmatprep.subr.bf16.mxu1 %v4765_v31 }
 0x928   :  { %3668 = vmatpush1.bf16.msra.mxu0 %v4755_v53  ;;  %3700 = vmatpush1.bf16.msra.mxu1 %v4771_v54 }
 0x929   :  { %3670 = vmatprep.subr.bf16.mxu0 %v4773_v55  ;;  %3702 = vmatprep.subr.bf16.mxu1 %v4792_v42 }
 0x92c   :  { %3672 = vmatpush1.bf16.msra.mxu0 %v4787_v34  ;;  %3704 = vmatpush1.bf16.msra.mxu1 %v4794_v47 }
 0x92d   :  { %3674 = vmatprep.subr.bf16.mxu0 %v4802_v5  ;;  %3706 = vmatprep.subr.bf16.mxu1 %v4807_v48 }
 0x930   :  { %3676 = vmatpush1.bf16.msra.mxu0 %v4823_v36  ;;  %3708 = vmatpush1.bf16.msra.mxu1 %v4825_v52 }
 0x931   :  { %3678 = vmatprep.subr.bf16.mxu0 %v4832_v8  ;;  %3710 = vmatprep.subr.bf16.mxu1 %v4834_v6 }
 0x934   :  { %3680 = vmatpush1.bf16.msra.mxu0 %v4838_v20  ;;  %3712 = vmatpush1.bf16.msra.mxu1 %v4840_v46 }
 0x935   :  { %3682 = vmatprep.subr.bf16.mxu0 %v4847_v22  ;;  %3714 = vmatprep.subr.bf16.mxu1 %v4849_v57 }
 0x938   :  { %3684 = vmatpush1.bf16.msra.mxu0 %v4853_v59  ;;  %3716 = vmatpush1.bf16.msra.mxu1 %v4855_v7 }
 0x939   :  { %3686 = vmatprep.subr.bf16.mxu0 %v4859_v27  ;;  %3718 = vmatprep.subr.bf16.mxu1 %v4861_v24  ;;  %v2734_v27 = vld [vmem:[#allocation11] sm:$0xff]  ;;  %v2735_v24 = vld [vmem:[#allocation11 + $0x8] sm:$0xff] }
 0x93c   :  { %3688 = vmatpush1.bf16.msra.mxu0 %v4868_v56  ;;  %3720 = vmatpush1.bf16.msra.mxu1 %v4870_v21  ;;  %v3722_v56 = vpack.c.bf16 %v2735_v24, %v2734_v27  ;;  %v4194_v21 = vmov 0.0|0.0  }
 0x93d   :  { %3721 = vmatprep.subr.bf16.mxu0 %v4194_v21 }
 0x9f2   :  { %v2460_v4 = vpop.f32.mrb[28].mxu0  ;;  %v2531_v39 = vpop.f32.mrb[20].mxu1 }
 0x9f3   :  { %v3757_v40 = vadd.f32 %v2460_v4, %v4926_v50  ;;  %v2462_v43 = vpop.f32.mrb[29].mxu0  ;;  %v2533_v29 = vpop.f32.mrb[21].mxu1  ;;  %v3773_v55 = vadd.f32 %v2531_v39, %v4935_v18 }
 0x9f4   :  { %v3758_v35 = vadd.f32 %v2462_v43, %v4928_v30  ;;  %v3774_v31 = vadd.f32 %v2533_v29, %v4932_v15 }
 0x9f5   :  { %v2898_v13 = vmul.f32 -1.442695, %v3757_v40 }
 0x9f6   :  { %v2899_v53 = vmul.f32 -1.442695, %v3758_v35  ;;  %v2900_v54 = vmul.f32 -1.442695, %v3774_v31 }
 0x9f7   :  { %3985 = vpow2.f32 %v2898_v13 }
 0x9f8   :  { %3987 = vpow2.f32 %v2899_v53 }
 0x9f9   :  { %3989 = vpow2.f32 %v2900_v54 }
 0x9fa   :  { %3991 = vtanh.f32 %v3773_v55 }
 0xa01   :  { %v3986_v34 = vpop.eup %3985 }
 0xa02   :  { %v3988_v42 = vpop.eup %3987  ;;  %v2543_v47 = vadd.f32 1.0, %v3986_v34 }
 0xa03   :  { %v2549_v5 = vadd.f32 1.0, %v3988_v42  ;;  %v3990_v48 = vpop.eup %3989 }
 0xa04   :  { %3993 = vrcp.f32 %v2543_v47  ;;  %v3992_v36 = vpop.eup %3991  ;;  %v2556_v20 = vadd.f32 1.0, %v3990_v48  ;;  %v2904_v47 = vld [vmem:[%s5221_s9] ss:$0 sm:$0xff] }
 0xa05   :  { %3995 = vrcp.f32 %v2549_v5 }
 0xa06   :  { %3997 = vrcp.f32 %v2556_v20 }
 0xa0e   :  { %v3994_v52 = vpop.eup %3993 }
 0xa0f   :  { %v3996_v8 = vpop.eup %3995  ;;  %v2560_v6 = vmul.f32 %v3994_v52, %v3992_v36 }
 0xa10   :  { %v2559_v46 = vmul.f32 %v3996_v8, %v5148_v25  ;;  %v3998_v57 = vpop.eup %3997 }
 0xa12   :  { %v5188_v22 = vadd.f32 %v2560_v6, %v2559_v46 }
 0xa14   :  { %3999 = vtanh.f32 %v5188_v22 }
 0xa1e   :  { %v4000_v59 = vpop.eup %3999 }
 0xa1f   :  { %v2563_v7 = vmul.f32 %v4000_v59, %v3998_v57 }
 0xa21   :  { %2629 = vmatmul.mubr.f32.vlgmr.msra.gmra.mrb[30].mxu0 %v2563_v7  ;;  %2700 = vmatmul.mubr.f32.vlgmr.msra.gmra.mrb[22].mxu1 %v2563_v7 }
 0xa22   :  { %3723 = vmatpush3.bf16.msra.mxu0 %v3722_v56  ;;  %3078 = vmatprep.mubr.msk.f32.mxu0 %vm4195_vm0, %v4193_v60 }
 0xa23   :  { %3724 = vmatprep.subr.bf16.mxu0 %v4194_v21 }
 0xa26   :  { %3726 = vmatpush3.bf16.msra.mxu0 %v3725_v26 }
 0xa27   :  { %3727 = vmatprep.subr.bf16.mxu0 %v4194_v21 }
 0xa2a   :  { %3729 = vmatpush3.bf16.msra.mxu0 %v3728_v12 }
 0xa2b   :  { %3730 = vmatprep.subr.bf16.mxu0 %v4194_v21 }
 0xa2e   :  { %3732 = vmatpush3.bf16.msra.mxu0 %v3731_v51 }
 0xa2f   :  { %3733 = vmatprep.subr.bf16.mxu0 %v4194_v21 }
 0xa32   :  { %3735 = vmatpush3.bf16.msra.mxu0 %v3734_v14 }
 0xa33   :  { %3736 = vmatprep.subr.bf16.mxu0 %v4194_v21 }
 0xa36   :  { %3738 = vmatpush3.bf16.msra.mxu0 %v3737_v62 }
 0xa37   :  { %3739 = vmatprep.subr.bf16.mxu0 %v4194_v21 }
 0xa3a   :  { %3741 = vmatpush3.bf16.msra.mxu0 %v3740_v61 }
 0xa3b   :  { %3742 = vmatprep.subr.bf16.mxu0 %v4194_v21 }
 0xa3e   :  { %3744 = vmatpush3.bf16.msra.mxu0 %v3743_v0 }
 0xaf4   :  { %v2630_v63 = vpop.f32.mrb[30].mxu0  ;;  %v2701_v38 = vpop.f32.mrb[22].mxu1 }
 0xaf5   :  { %v3759_v11 = vadd.f32 %v2630_v63, %v4926_v50  ;;  %v2632_v2 = vpop.f32.mrb[31].mxu0  ;;  %v2703_v25 = vpop.f32.mrb[23].mxu1  ;;  %v3775_v39 = vadd.f32 %v2701_v38, %v4935_v18 }
 0xaf6   :  { %v3760_v10 = vadd.f32 %v2632_v2, %v4928_v30  ;;  %v3776_v60 = vadd.f32 %v2703_v25, %v4932_v15 }
 0xaf7   :  { %v2901_v49 = vmul.f32 -1.442695, %v3759_v11 }
 0xaf8   :  { %v2902_v44 = vmul.f32 -1.442695, %v3760_v10  ;;  %v2903_v4 = vmul.f32 -1.442695, %v3776_v60 }
 0xaf9   :  { %4001 = vpow2.f32 %v2901_v49 }
 0xafa   :  { %4003 = vpow2.f32 %v2902_v44 }
 0xafb   :  { %4005 = vpow2.f32 %v2903_v4 }
 0xafc   :  { %4007 = vtanh.f32 %v3775_v39 }
 0xb03   :  { %v4002_v40 = vpop.eup %4001 }
 0xb04   :  { %v4004_v43 = vpop.eup %4003  ;;  %v2713_v29 = vadd.f32 1.0, %v4002_v40 }
 0xb05   :  { %v2719_v35 = vadd.f32 1.0, %v4004_v43  ;;  %v4006_v50 = vpop.eup %4005 }
 0xb06   :  { %4009 = vrcp.f32 %v2713_v29  ;;  %v4008_v13 = vpop.eup %4007  ;;  %v2726_v54 = vadd.f32 1.0, %v4006_v50 }
 0xb07   :  { %4011 = vrcp.f32 %v2719_v35 }
 0xb08   :  { %4013 = vrcp.f32 %v2726_v54 }
 0xb10   :  { %v4010_v30 = vpop.eup %4009 }
 0xb11   :  { %v4012_v53 = vpop.eup %4011  ;;  %v2730_v31 = vmul.f32 %v4010_v30, %v4008_v13 }
 0xb12   :  { %v2729_v55 = vmul.f32 %v4012_v53, %v5188_v22  ;;  %v4014_v18 = vpop.eup %4013 }
 0xb14   :  { %v2731_v15 = vadd.f32 %v2730_v31, %v2729_v55 }
 0xb16   :  { %4015 = vtanh.f32 %v2731_v15 }
 0xb20   :  { %v4016_v34 = vpop.eup %4015 }
 0xb21   :  { %v2733_v42 = vmul.f32 %v4016_v34, %v4014_v18 }
 0xb23   :  { %3079 = vmatmul.mubr.f32.vlgmr.msra.gmra.mrb[32].mxu0 %v2733_v42 }
 0xbf6   :  { %v2823_v5 = vpop.f32.mrb[32].mxu0 }
 0xbf7   :  { %v2824_v48 = vadd.f32 %v2904_v47, %v2823_v5  ;;  %v3080_v36 = vpop.f32.mrb[33].mxu0 }
 0xbf9   :  { %2827 = vst [vmem:[#allocation13] sm:$0xff] %v2824_v48 }
 0xbfa   :  { %4160 = shalt.err (!%p4157_p10)
}
 0xbfb   :  { %s4161_s18 = scalar_lea.hbm %s5222_s10, 128 }
 0xbfc   :  { %p4162_p11 = scmp.ne.s32.totalorder %s5222_s10, %s4161_s18  ;;  %p4165_p12 = scmp.lt.u32.totalorder %s4161_s18, %s5222_s10 }
 0xbfe   :  { %p4167_p13 = pnand %p4165_p12, %p4162_p11 }
 0xc00   :  { %4170 = shalt.err (!%p4167_p13)
}
 0xc01   :  { %2837 = dma.vmem_to_hbm [thread:$0]  %s2835_s28, 128, %s5222_s10, [#allocation4]  }
 0xc02   :  { %4179 = dma.done.wait [#allocation4], 128  }
 0xc03   :  { %4180 = vsyncadd [#allocation4], 4294967168 }
 0xc04   :  { %2841 = vsyncpa [#allocation3], 1 }
 0xc05   :  { %2842 = vsyncpa [#allocation6], 1 }
 0xc06   :  { %2843 = vsyncpa [#allocation9], 1 }
 0xc07   :  { %2844 = vsyncpa [#allocation12], 1 }
 0xc08   :  { %2845 = vsyncpa [#allocation4], 1 }

</bundles_post_ra>
